<compile_context>
chip_gen: v7x
topology: tpu7x:2x2x1
jax: 0.10.0
libtpu: 0.0.40
codegen_flags: <defaults>
</compile_context>

<pallas_src>
import functools

import jax
import jax.numpy as jnp
from jax.experimental import pallas as pl
from jax.experimental.pallas import tpu as pltpu

K = 5      # Conv1d kernel size
PAD = 2    # 'same' padding for kernel size 5, stride 1


def _swish(v):
    # sigmoid = 1 / (1 + exp(-v)); exp and the approximate reciprocal run on
    # the EUP slot, one Newton step restores ~f32 accuracy.  The clamp keeps
    # exp finite so the Newton step never sees inf.
    d = 1.0 + jnp.exp(jnp.minimum(-v, 60.0))
    r = pl.reciprocal(d, approx=True)
    r = r * (2.0 - d * r)
    return v * r


def _cnn_kernel(x_ref, w1_ref, b1_ref, w2_ref, b2_ref, w3_ref, b3_ref,
                wfc_ref, bfc_ref, out_ref,
                p1_ref, p2_ref, p3_ref, h3_ref, hf_ref, *, b_tile, seq_len):
    L = seq_len
    BL = b_tile * L           # collapsed (time, batch-tile) rows
    GB = PAD * b_tile         # guard rows on each side of the padded scratch

    def conv_same(h, pad_ref, w_ref, b_ref):
        # Zero only the guard rows (never the whole buffer), write the body;
        # with the time-major row layout every tap is a contiguous slice and
        # shifting never crosses sample boundaries.
        zeros = jnp.zeros((GB, pad_ref.shape[1]), jnp.float32)
        pad_ref[0:GB, :] = zeros
        pad_ref[GB + BL:2 * GB + BL, :] = zeros
        pad_ref[GB:GB + BL, :] = h
        c_out = w_ref.shape[2]
        acc = jnp.zeros((BL, c_out), jnp.float32)
        for k in range(K):    # 5 shifted full-tile matmuls == conv1d 'same'
            acc = acc + jnp.dot(pad_ref[k * b_tile:k * b_tile + BL, :],
                                w_ref[k], preferred_element_type=jnp.float32)
        return acc + b_ref[...]

    h = _swish(x_ref[...].astype(jnp.float32))            # (BL, Cin)
    h = _swish(conv_same(h, p1_ref, w1_ref, b1_ref))       # (BL, C1)
    h = _swish(conv_same(h, p2_ref, w2_ref, b2_ref))       # (BL, C2)
    h = _swish(conv_same(h, p3_ref, w3_ref, b3_ref))       # (BL, C3)

    # FC: build the torch-Flatten layout (b_tile, L*C3) with L contiguous row
    # copies into a lane-dense scratch, then ONE (b_tile, L*C3) x (L*C3, O)
    # matmul (contraction dim L*C3 = 256 matches the MXU well).
    c3 = h.shape[1]
    h3_ref[...] = h
    for t in range(L):
        hf_ref[:, t * c3:(t + 1) * c3] = h3_ref[t * b_tile:(t + 1) * b_tile, :]
    out_ref[...] = (jnp.dot(hf_ref[...], wfc_ref[...],
                            preferred_element_type=jnp.float32)
                    + bfc_ref[...])


def cnn_classifier_forward(x, w1, b1, w2, b2, w3, b3, wfc2, bfc, *, b_tile=None):
    """x: (B, L, Cin); conv weights (K, Cin, Cout); wfc2: (L*C3, O)."""
    B, L, Cin = x.shape
    C1, C2, C3 = w1.shape[2], w2.shape[2], w3.shape[2]
    O = wfc2.shape[1]
    assert wfc2.shape[0] == L * C3

    if b_tile is None:
        b_tile = min(B, 128)          # sized comfortably for 16-32 MiB scoped VMEM
    b_tile = max(1, min(b_tile, B))
    nb = pl.cdiv(B, b_tile)
    b_pad = nb * b_tile
    BL = b_tile * L

    # Layout plumbing (pure XLA, outside the kernel): pad the batch to a
    # multiple of the tile and lay each batch tile out time-major
    # (row = t * b_tile + b) so in-kernel conv taps / FC gathers are contiguous.
    if b_pad != B:
        x = jnp.pad(x, ((0, b_pad - B), (0, 0), (0, 0)))
    x_t = (x.reshape(nb, b_tile, L, Cin)
             .transpose(0, 2, 1, 3)
             .reshape(nb * L * b_tile, Cin))

    def full_spec(shape):
        n = len(shape)
        return pl.BlockSpec(shape, lambda i, _n=n: (0,) * _n)

    kernel = functools.partial(_cnn_kernel, b_tile=b_tile, seq_len=L)

    out = pl.pallas_call(
        kernel,
        out_shape=jax.ShapeDtypeStruct((b_pad, O), jnp.float32),
        grid=(nb,),
        in_specs=[
            pl.BlockSpec((BL, Cin), lambda i: (i, 0)),   # one batch tile / step
            full_spec((K, Cin, C1)), full_spec((1, C1)),
            full_spec((K, C1, C2)), full_spec((1, C2)),
            full_spec((K, C2, C3)), full_spec((1, C3)),
            full_spec((L * C3, O)), full_spec((1, O)),
        ],
        out_specs=pl.BlockSpec((b_tile, O), lambda i: (i, 0)),
        scratch_shapes=[
            pltpu.VMEM(((L + 2 * PAD) * b_tile, Cin), jnp.float32),
            pltpu.VMEM(((L + 2 * PAD) * b_tile, C1), jnp.float32),
            pltpu.VMEM(((L + 2 * PAD) * b_tile, C2), jnp.float32),
            pltpu.VMEM((BL, C3), jnp.float32),
            pltpu.VMEM((b_tile, L * C3), jnp.float32),
        ],
        compiler_params=pltpu.CompilerParams(
            dimension_semantics=("parallel",)),
    )(x_t,
      w1, b1.reshape(1, C1),
      w2, b2.reshape(1, C2),
      w3, b3.reshape(1, C3),
      wfc2, bfc.reshape(1, O))
    return out[:B] if b_pad != B else out


def make_params(key, input_dim, c1, c2, c3, context_len, output_size):
    """He-style (kaiming_normal_, fan_in) weights matching the torch module.
    Biases are given small non-zero values to exercise the bias path (the
    torch init zeroes them; forward semantics are identical)."""
    ks = jax.random.split(key, 8)

    def kaiming(k, shape, fan_in):
        return jax.random.normal(k, shape, jnp.float32) * jnp.sqrt(2.0 / fan_in)

    # PyTorch layouts
    w1_t = kaiming(ks[0], (c1, input_dim, K), input_dim * K)          # (Cout, Cin, K)
    w2_t = kaiming(ks[1], (c2, c1, K), c1 * K)
    w3_t = kaiming(ks[2], (c3, c2, K), c2 * K)
    wfc_t = kaiming(ks[3], (output_size, c3 * context_len), c3 * context_len)
    b1 = 0.1 * jax.random.normal(ks[4], (c1,), jnp.float32)
    b2 = 0.1 * jax.random.normal(ks[5], (c2,), jnp.float32)
    b3 = 0.1 * jax.random.normal(ks[6], (c3,), jnp.float32)
    bfc = 0.1 * jax.random.normal(ks[7], (output_size,), jnp.float32)

    # Kernel layouts
    w1 = jnp.transpose(w1_t, (2, 1, 0))                                # (K, Cin, Cout)
    w2 = jnp.transpose(w2_t, (2, 1, 0))
    w3 = jnp.transpose(w3_t, (2, 1, 0))
    wfc2 = jnp.transpose(wfc_t)                                        # (L*C3, O)

    kernel_layout = (w1, b1, w2, b2, w3, b3, wfc2, bfc)
    torch_layout = (w1_t, b1, w2_t, b2, w3_t, b3, wfc_t, bfc)
    return kernel_layout, torch_layout


def reference_forward(x, torch_params):
    """Pure-JAX replica of the PyTorch forward."""
    w1_t, b1, w2_t, b2, w3_t, b3, wfc_t, bfc = torch_params
    h = jnp.transpose(x, (0, 2, 1))            # (B, C, L), torch transpose(1, 2)
    h = h * jax.nn.sigmoid(h)

    def conv1d_same(a, wt, bt):                # wt: (Cout, Cin, K)
        y = jax.lax.conv_general_dilated(
            a, wt, window_strides=(1,), padding=((PAD, PAD),),
            dimension_numbers=('NCH', 'OIH', 'NCH'))
        return y + bt[None, :, None]

    h = conv1d_same(h, w1_t, b1); h = h * jax.nn.sigmoid(h)
    h = conv1d_same(h, w2_t, b2); h = h * jax.nn.sigmoid(h)
    h = conv1d_same(h, w3_t, b3); h = h * jax.nn.sigmoid(h)
    h = jnp.transpose(h, (0, 2, 1))            # (B, L, C3)
    flat = h.reshape(h.shape[0], -1)           # torch Flatten (t-major, c-minor)
    return flat @ wfc_t.T + bfc[None, :]


if __name__ == "__main__":
    # Small, module-consistent shapes; b_tile=8 gives a 2-step ("parallel") grid.
    B, context_len, input_dim = 16, 16, 8
    conv1_1dim, conv1_2dim, conv1_3dim = 16, 16, 16
    output_size = 4

    key = jax.random.PRNGKey(0)
    kx, kp = jax.random.split(key)
    x = jax.random.normal(kx, (B, context_len, input_dim), jnp.float32)

    kernel_params, torch_params = make_params(
        kp, input_dim, conv1_1dim, conv1_2dim, conv1_3dim, context_len,
        output_size)

    out = cnn_classifier_forward(x, *kernel_params, b_tile=8)
    out = jax.block_until_ready(out)

    ref = reference_forward(x, torch_params)
    assert out.shape == (B, output_size)
    assert jnp.allclose(out, ref, atol=5e-4, rtol=5e-4), (out, ref)

    print("KERNEL_OK")
</pallas_src>

<mosaic_0001>
module attributes {stable_mosaic.version = 11 : i64} {
  func.func @_cnn_kernel(%arg0: i32, %arg1: memref<128x8xf32, #tpu.memory_space<vmem>>, %arg2: memref<5x8x16xf32, #tpu.memory_space<vmem>>, %arg3: memref<1x16xf32, #tpu.memory_space<vmem>>, %arg4: memref<5x16x16xf32, #tpu.memory_space<vmem>>, %arg5: memref<1x16xf32, #tpu.memory_space<vmem>>, %arg6: memref<5x16x16xf32, #tpu.memory_space<vmem>>, %arg7: memref<1x16xf32, #tpu.memory_space<vmem>>, %arg8: memref<256x4xf32, #tpu.memory_space<vmem>>, %arg9: memref<1x4xf32, #tpu.memory_space<vmem>>, %arg10: memref<8x4xf32, #tpu.memory_space<vmem>>, %arg11: memref<160x8xf32, #tpu.memory_space<vmem>>, %arg12: memref<160x16xf32, #tpu.memory_space<vmem>>, %arg13: memref<160x16xf32, #tpu.memory_space<vmem>>, %arg14: memref<128x16xf32, #tpu.memory_space<vmem>>, %arg15: memref<8x256xf32, #tpu.memory_space<vmem>>) attributes {dimension_semantics = [#tpu.dimension_semantics<parallel>], iteration_bounds = array<i64: 2>, scalar_prefetch = 0 : i64, scratch_operands = 5 : i64, tpu.core_type = #tpu.core_type<tc>, window_params = [{transform_indices = @transform_0, window_bounds = array<i64: 128, 8>}, {pipeline_mode = #tpu.pipeline_mode<synchronous>, transform_indices = @transform_1, window_bounds = array<i64: 5, 8, 16>}, {pipeline_mode = #tpu.pipeline_mode<synchronous>, transform_indices = @transform_2, window_bounds = array<i64: 1, 16>}, {pipeline_mode = #tpu.pipeline_mode<synchronous>, transform_indices = @transform_3, window_bounds = array<i64: 5, 16, 16>}, {pipeline_mode = #tpu.pipeline_mode<synchronous>, transform_indices = @transform_4, window_bounds = array<i64: 1, 16>}, {pipeline_mode = #tpu.pipeline_mode<synchronous>, transform_indices = @transform_5, window_bounds = array<i64: 5, 16, 16>}, {pipeline_mode = #tpu.pipeline_mode<synchronous>, transform_indices = @transform_6, window_bounds = array<i64: 1, 16>}, {pipeline_mode = #tpu.pipeline_mode<synchronous>, transform_indices = @transform_7, window_bounds = array<i64: 256, 4>}, {pipeline_mode = #tpu.pipeline_mode<synchronous>, transform_indices = @transform_8, window_bounds = array<i64: 1, 4>}, {transform_indices = @transform_9, window_bounds = array<i64: 8, 4>}]} {
    %c0 = arith.constant 0 : index
    %c0_0 = arith.constant 0 : index
    %0 = vector.load %arg1[%c0, %c0_0] : memref<128x8xf32, #tpu.memory_space<vmem>>, vector<128x8xf32>
    %cst = arith.constant 0.000000e+00 : f32
    %1 = vector.broadcast %cst : f32 to vector<128x8xf32>
    %2 = arith.subf %1, %0 : vector<128x8xf32>
    %cst_1 = arith.constant 6.000000e+01 : f32
    %3 = vector.broadcast %cst_1 : f32 to vector<128x8xf32>
    %4 = arith.minimumf %2, %3 : vector<128x8xf32>
    %5 = math.exp %4 : vector<128x8xf32>
    %cst_2 = arith.constant 1.000000e+00 : f32
    %6 = vector.broadcast %cst_2 : f32 to vector<128x8xf32>
    %7 = arith.addf %6, %5 : vector<128x8xf32>
    %8 = tpu.reciprocal %7 {approx = true} : vector<128x8xf32> -> vector<128x8xf32>
    %9 = arith.mulf %7, %8 : vector<128x8xf32>
    %cst_3 = arith.constant 2.000000e+00 : f32
    %10 = vector.broadcast %cst_3 : f32 to vector<128x8xf32>
    %11 = arith.subf %10, %9 : vector<128x8xf32>
    %12 = arith.mulf %8, %11 : vector<128x8xf32>
    %13 = arith.mulf %0, %12 : vector<128x8xf32>
    %cst_4 = arith.constant 0.000000e+00 : f32
    %14 = vector.broadcast %cst_4 : f32 to vector<16x8xf32>
    %c0_5 = arith.constant 0 : index
    %c0_6 = arith.constant 0 : index
    %15 = vector.load %arg11[%c0_5, %c0_6] : memref<160x8xf32, #tpu.memory_space<vmem>>, vector<16x8xf32>
    tpu.vector_store %arg11[%c0_5, %c0_6], %14 {strides = array<i32>} : memref<160x8xf32, #tpu.memory_space<vmem>>, vector<16x8xf32>,
    %c144 = arith.constant 144 : index
    %c0_7 = arith.constant 0 : index
    %16 = vector.load %arg11[%c144, %c0_7] : memref<160x8xf32, #tpu.memory_space<vmem>>, vector<16x8xf32>
    tpu.vector_store %arg11[%c144, %c0_7], %14 {strides = array<i32>} : memref<160x8xf32, #tpu.memory_space<vmem>>, vector<16x8xf32>,
    %c16 = arith.constant 16 : index
    %c0_8 = arith.constant 0 : index
    %17 = vector.load %arg11[%c16, %c0_8] : memref<160x8xf32, #tpu.memory_space<vmem>>, vector<128x8xf32>
    tpu.vector_store %arg11[%c16, %c0_8], %13 {strides = array<i32>} : memref<160x8xf32, #tpu.memory_space<vmem>>, vector<128x8xf32>,
    %cst_9 = arith.constant 0.000000e+00 : f32
    %18 = vector.broadcast %cst_9 : f32 to vector<128x16xf32>
    %c0_10 = arith.constant 0 : index
    %c0_11 = arith.constant 0 : index
    %19 = vector.load %arg11[%c0_10, %c0_11] : memref<160x8xf32, #tpu.memory_space<vmem>>, vector<128x8xf32>
    %c0_12 = arith.constant 0 : index
    %c0_13 = arith.constant 0 : index
    %c0_14 = arith.constant 0 : index
    %20 = vector.load %arg2[%c0_12, %c0_13, %c0_14] : memref<5x8x16xf32, #tpu.memory_space<vmem>>, vector<1x8x16xf32>
    %21 = vector.shape_cast %20 : vector<1x8x16xf32> to vector<8x16xf32>
    %cst_15 = arith.constant dense<0.000000e+00> : vector<128x16xf32>
    %22 = tpu.matmul %19, %21, %cst_15 {dimension_numbers = #tpu.dot_dimension_numbers<[1], [0], [0], [1], [0, 0, 1, 1], [], []>} : vector<128x8xf32>, vector<8x16xf32>, vector<128x16xf32> -> vector<128x16xf32>
    %23 = arith.addf %18, %22 : vector<128x16xf32>
    %c8 = arith.constant 8 : index
    %c0_16 = arith.constant 0 : index
    %24 = vector.load %arg11[%c8, %c0_16] : memref<160x8xf32, #tpu.memory_space<vmem>>, vector<128x8xf32>
    %c1 = arith.constant 1 : index
    %c0_17 = arith.constant 0 : index
    %c0_18 = arith.constant 0 : index
    %25 = vector.load %arg2[%c1, %c0_17, %c0_18] : memref<5x8x16xf32, #tpu.memory_space<vmem>>, vector<1x8x16xf32>
    %26 = vector.shape_cast %25 : vector<1x8x16xf32> to vector<8x16xf32>
    %cst_19 = arith.constant dense<0.000000e+00> : vector<128x16xf32>
    %27 = tpu.matmul %24, %26, %cst_19 {dimension_numbers = #tpu.dot_dimension_numbers<[1], [0], [0], [1], [0, 0, 1, 1], [], []>} : vector<128x8xf32>, vector<8x16xf32>, vector<128x16xf32> -> vector<128x16xf32>
    %28 = arith.addf %23, %27 : vector<128x16xf32>
    %c16_20 = arith.constant 16 : index
    %c0_21 = arith.constant 0 : index
    %29 = vector.load %arg11[%c16_20, %c0_21] : memref<160x8xf32, #tpu.memory_space<vmem>>, vector<128x8xf32>
    %c2 = arith.constant 2 : index
    %c0_22 = arith.constant 0 : index
    %c0_23 = arith.constant 0 : index
    %30 = vector.load %arg2[%c2, %c0_22, %c0_23] : memref<5x8x16xf32, #tpu.memory_space<vmem>>, vector<1x8x16xf32>
    %31 = vector.shape_cast %30 : vector<1x8x16xf32> to vector<8x16xf32>
    %cst_24 = arith.constant dense<0.000000e+00> : vector<128x16xf32>
    %32 = tpu.matmul %29, %31, %cst_24 {dimension_numbers = #tpu.dot_dimension_numbers<[1], [0], [0], [1], [0, 0, 1, 1], [], []>} : vector<128x8xf32>, vector<8x16xf32>, vector<128x16xf32> -> vector<128x16xf32>
    %33 = arith.addf %28, %32 : vector<128x16xf32>
    %c24 = arith.constant 24 : index
    %c0_25 = arith.constant 0 : index
    %34 = vector.load %arg11[%c24, %c0_25] : memref<160x8xf32, #tpu.memory_space<vmem>>, vector<128x8xf32>
    %c3 = arith.constant 3 : index
    %c0_26 = arith.constant 0 : index
    %c0_27 = arith.constant 0 : index
    %35 = vector.load %arg2[%c3, %c0_26, %c0_27] : memref<5x8x16xf32, #tpu.memory_space<vmem>>, vector<1x8x16xf32>
    %36 = vector.shape_cast %35 : vector<1x8x16xf32> to vector<8x16xf32>
    %cst_28 = arith.constant dense<0.000000e+00> : vector<128x16xf32>
    %37 = tpu.matmul %34, %36, %cst_28 {dimension_numbers = #tpu.dot_dimension_numbers<[1], [0], [0], [1], [0, 0, 1, 1], [], []>} : vector<128x8xf32>, vector<8x16xf32>, vector<128x16xf32> -> vector<128x16xf32>
    %38 = arith.addf %33, %37 : vector<128x16xf32>
    %c32 = arith.constant 32 : index
    %c0_29 = arith.constant 0 : index
    %39 = vector.load %arg11[%c32, %c0_29] : memref<160x8xf32, #tpu.memory_space<vmem>>, vector<128x8xf32>
    %c4 = arith.constant 4 : index
    %c0_30 = arith.constant 0 : index
    %c0_31 = arith.constant 0 : index
    %40 = vector.load %arg2[%c4, %c0_30, %c0_31] : memref<5x8x16xf32, #tpu.memory_space<vmem>>, vector<1x8x16xf32>
    %41 = vector.shape_cast %40 : vector<1x8x16xf32> to vector<8x16xf32>
    %cst_32 = arith.constant dense<0.000000e+00> : vector<128x16xf32>
    %42 = tpu.matmul %39, %41, %cst_32 {dimension_numbers = #tpu.dot_dimension_numbers<[1], [0], [0], [1], [0, 0, 1, 1], [], []>} : vector<128x8xf32>, vector<8x16xf32>, vector<128x16xf32> -> vector<128x16xf32>
    %43 = arith.addf %38, %42 : vector<128x16xf32>
    %c0_33 = arith.constant 0 : index
    %c0_34 = arith.constant 0 : index
    %44 = vector.load %arg3[%c0_33, %c0_34] : memref<1x16xf32, #tpu.memory_space<vmem>>, vector<1x16xf32>
    %45 = vector.broadcast %44 : vector<1x16xf32> to vector<128x16xf32>
    %46 = arith.addf %43, %45 : vector<128x16xf32>
    %cst_35 = arith.constant 0.000000e+00 : f32
    %47 = vector.broadcast %cst_35 : f32 to vector<128x16xf32>
    %48 = arith.subf %47, %46 : vector<128x16xf32>
    %cst_36 = arith.constant 6.000000e+01 : f32
    %49 = vector.broadcast %cst_36 : f32 to vector<128x16xf32>
    %50 = arith.minimumf %48, %49 : vector<128x16xf32>
    %51 = math.exp %50 : vector<128x16xf32>
    %cst_37 = arith.constant 1.000000e+00 : f32
    %52 = vector.broadcast %cst_37 : f32 to vector<128x16xf32>
    %53 = arith.addf %52, %51 : vector<128x16xf32>
    %54 = tpu.reciprocal %53 {approx = true} : vector<128x16xf32> -> vector<128x16xf32>
    %55 = arith.mulf %53, %54 : vector<128x16xf32>
    %cst_38 = arith.constant 2.000000e+00 : f32
    %56 = vector.broadcast %cst_38 : f32 to vector<128x16xf32>
    %57 = arith.subf %56, %55 : vector<128x16xf32>
    %58 = arith.mulf %54, %57 : vector<128x16xf32>
    %59 = arith.mulf %46, %58 : vector<128x16xf32>
    %cst_39 = arith.constant 0.000000e+00 : f32
    %60 = vector.broadcast %cst_39 : f32 to vector<16x16xf32>
    %c0_40 = arith.constant 0 : index
    %c0_41 = arith.constant 0 : index
    %61 = vector.load %arg12[%c0_40, %c0_41] : memref<160x16xf32, #tpu.memory_space<vmem>>, vector<16x16xf32>
    tpu.vector_store %arg12[%c0_40, %c0_41], %60 {strides = array<i32>} : memref<160x16xf32, #tpu.memory_space<vmem>>, vector<16x16xf32>,
    %c144_42 = arith.constant 144 : index
    %c0_43 = arith.constant 0 : index
    %62 = vector.load %arg12[%c144_42, %c0_43] : memref<160x16xf32, #tpu.memory_space<vmem>>, vector<16x16xf32>
    tpu.vector_store %arg12[%c144_42, %c0_43], %60 {strides = array<i32>} : memref<160x16xf32, #tpu.memory_space<vmem>>, vector<16x16xf32>,
    %c16_44 = arith.constant 16 : index
    %c0_45 = arith.constant 0 : index
    %63 = vector.load %arg12[%c16_44, %c0_45] : memref<160x16xf32, #tpu.memory_space<vmem>>, vector<128x16xf32>
    tpu.vector_store %arg12[%c16_44, %c0_45], %59 {strides = array<i32>} : memref<160x16xf32, #tpu.memory_space<vmem>>, vector<128x16xf32>,
    %cst_46 = arith.constant 0.000000e+00 : f32
    %64 = vector.broadcast %cst_46 : f32 to vector<128x16xf32>
    %c0_47 = arith.constant 0 : index
    %c0_48 = arith.constant 0 : index
    %65 = vector.load %arg12[%c0_47, %c0_48] : memref<160x16xf32, #tpu.memory_space<vmem>>, vector<128x16xf32>
    %c0_49 = arith.constant 0 : index
    %c0_50 = arith.constant 0 : index
    %c0_51 = arith.constant 0 : index
    %66 = vector.load %arg4[%c0_49, %c0_50, %c0_51] : memref<5x16x16xf32, #tpu.memory_space<vmem>>, vector<1x16x16xf32>
    %67 = vector.shape_cast %66 : vector<1x16x16xf32> to vector<16x16xf32>
    %cst_52 = arith.constant dense<0.000000e+00> : vector<128x16xf32>
    %68 = tpu.matmul %65, %67, %cst_52 {dimension_numbers = #tpu.dot_dimension_numbers<[1], [0], [0], [1], [0, 0, 1, 1], [], []>} : vector<128x16xf32>, vector<16x16xf32>, vector<128x16xf32> -> vector<128x16xf32>
    %69 = arith.addf %64, %68 : vector<128x16xf32>
    %c8_53 = arith.constant 8 : index
    %c0_54 = arith.constant 0 : index
    %70 = vector.load %arg12[%c8_53, %c0_54] : memref<160x16xf32, #tpu.memory_space<vmem>>, vector<128x16xf32>
    %c1_55 = arith.constant 1 : index
    %c0_56 = arith.constant 0 : index
    %c0_57 = arith.constant 0 : index
    %71 = vector.load %arg4[%c1_55, %c0_56, %c0_57] : memref<5x16x16xf32, #tpu.memory_space<vmem>>, vector<1x16x16xf32>
    %72 = vector.shape_cast %71 : vector<1x16x16xf32> to vector<16x16xf32>
    %cst_58 = arith.constant dense<0.000000e+00> : vector<128x16xf32>
    %73 = tpu.matmul %70, %72, %cst_58 {dimension_numbers = #tpu.dot_dimension_numbers<[1], [0], [0], [1], [0, 0, 1, 1], [], []>} : vector<128x16xf32>, vector<16x16xf32>, vector<128x16xf32> -> vector<128x16xf32>
    %74 = arith.addf %69, %73 : vector<128x16xf32>
    %c16_59 = arith.constant 16 : index
    %c0_60 = arith.constant 0 : index
    %75 = vector.load %arg12[%c16_59, %c0_60] : memref<160x16xf32, #tpu.memory_space<vmem>>, vector<128x16xf32>
    %c2_61 = arith.constant 2 : index
    %c0_62 = arith.constant 0 : index
    %c0_63 = arith.constant 0 : index
    %76 = vector.load %arg4[%c2_61, %c0_62, %c0_63] : memref<5x16x16xf32, #tpu.memory_space<vmem>>, vector<1x16x16xf32>
    %77 = vector.shape_cast %76 : vector<1x16x16xf32> to vector<16x16xf32>
    %cst_64 = arith.constant dense<0.000000e+00> : vector<128x16xf32>
    %78 = tpu.matmul %75, %77, %cst_64 {dimension_numbers = #tpu.dot_dimension_numbers<[1], [0], [0], [1], [0, 0, 1, 1], [], []>} : vector<128x16xf32>, vector<16x16xf32>, vector<128x16xf32> -> vector<128x16xf32>
    %79 = arith.addf %74, %78 : vector<128x16xf32>
    %c24_65 = arith.constant 24 : index
    %c0_66 = arith.constant 0 : index
    %80 = vector.load %arg12[%c24_65, %c0_66] : memref<160x16xf32, #tpu.memory_space<vmem>>, vector<128x16xf32>
    %c3_67 = arith.constant 3 : index
    %c0_68 = arith.constant 0 : index
    %c0_69 = arith.constant 0 : index
    %81 = vector.load %arg4[%c3_67, %c0_68, %c0_69] : memref<5x16x16xf32, #tpu.memory_space<vmem>>, vector<1x16x16xf32>
    %82 = vector.shape_cast %81 : vector<1x16x16xf32> to vector<16x16xf32>
    %cst_70 = arith.constant dense<0.000000e+00> : vector<128x16xf32>
    %83 = tpu.matmul %80, %82, %cst_70 {dimension_numbers = #tpu.dot_dimension_numbers<[1], [0], [0], [1], [0, 0, 1, 1], [], []>} : vector<128x16xf32>, vector<16x16xf32>, vector<128x16xf32> -> vector<128x16xf32>
    %84 = arith.addf %79, %83 : vector<128x16xf32>
    %c32_71 = arith.constant 32 : index
    %c0_72 = arith.constant 0 : index
    %85 = vector.load %arg12[%c32_71, %c0_72] : memref<160x16xf32, #tpu.memory_space<vmem>>, vector<128x16xf32>
    %c4_73 = arith.constant 4 : index
    %c0_74 = arith.constant 0 : index
    %c0_75 = arith.constant 0 : index
    %86 = vector.load %arg4[%c4_73, %c0_74, %c0_75] : memref<5x16x16xf32, #tpu.memory_space<vmem>>, vector<1x16x16xf32>
    %87 = vector.shape_cast %86 : vector<1x16x16xf32> to vector<16x16xf32>
    %cst_76 = arith.constant dense<0.000000e+00> : vector<128x16xf32>
    %88 = tpu.matmul %85, %87, %cst_76 {dimension_numbers = #tpu.dot_dimension_numbers<[1], [0], [0], [1], [0, 0, 1, 1], [], []>} : vector<128x16xf32>, vector<16x16xf32>, vector<128x16xf32> -> vector<128x16xf32>
    %89 = arith.addf %84, %88 : vector<128x16xf32>
    %c0_77 = arith.constant 0 : index
    %c0_78 = arith.constant 0 : index
    %90 = vector.load %arg5[%c0_77, %c0_78] : memref<1x16xf32, #tpu.memory_space<vmem>>, vector<1x16xf32>
    %91 = vector.broadcast %90 : vector<1x16xf32> to vector<128x16xf32>
    %92 = arith.addf %89, %91 : vector<128x16xf32>
    %cst_79 = arith.constant 0.000000e+00 : f32
    %93 = vector.broadcast %cst_79 : f32 to vector<128x16xf32>
    %94 = arith.subf %93, %92 : vector<128x16xf32>
    %cst_80 = arith.constant 6.000000e+01 : f32
    %95 = vector.broadcast %cst_80 : f32 to vector<128x16xf32>
    %96 = arith.minimumf %94, %95 : vector<128x16xf32>
    %97 = math.exp %96 : vector<128x16xf32>
    %cst_81 = arith.constant 1.000000e+00 : f32
    %98 = vector.broadcast %cst_81 : f32 to vector<128x16xf32>
    %99 = arith.addf %98, %97 : vector<128x16xf32>
    %100 = tpu.reciprocal %99 {approx = true} : vector<128x16xf32> -> vector<128x16xf32>
    %101 = arith.mulf %99, %100 : vector<128x16xf32>
    %cst_82 = arith.constant 2.000000e+00 : f32
    %102 = vector.broadcast %cst_82 : f32 to vector<128x16xf32>
    %103 = arith.subf %102, %101 : vector<128x16xf32>
    %104 = arith.mulf %100, %103 : vector<128x16xf32>
    %105 = arith.mulf %92, %104 : vector<128x16xf32>
    %cst_83 = arith.constant 0.000000e+00 : f32
    %106 = vector.broadcast %cst_83 : f32 to vector<16x16xf32>
    %c0_84 = arith.constant 0 : index
    %c0_85 = arith.constant 0 : index
    %107 = vector.load %arg13[%c0_84, %c0_85] : memref<160x16xf32, #tpu.memory_space<vmem>>, vector<16x16xf32>
    tpu.vector_store %arg13[%c0_84, %c0_85], %106 {strides = array<i32>} : memref<160x16xf32, #tpu.memory_space<vmem>>, vector<16x16xf32>,
    %c144_86 = arith.constant 144 : index
    %c0_87 = arith.constant 0 : index
    %108 = vector.load %arg13[%c144_86, %c0_87] : memref<160x16xf32, #tpu.memory_space<vmem>>, vector<16x16xf32>
    tpu.vector_store %arg13[%c144_86, %c0_87], %106 {strides = array<i32>} : memref<160x16xf32, #tpu.memory_space<vmem>>, vector<16x16xf32>,
    %c16_88 = arith.constant 16 : index
    %c0_89 = arith.constant 0 : index
    %109 = vector.load %arg13[%c16_88, %c0_89] : memref<160x16xf32, #tpu.memory_space<vmem>>, vector<128x16xf32>
    tpu.vector_store %arg13[%c16_88, %c0_89], %105 {strides = array<i32>} : memref<160x16xf32, #tpu.memory_space<vmem>>, vector<128x16xf32>,
    %cst_90 = arith.constant 0.000000e+00 : f32
    %110 = vector.broadcast %cst_90 : f32 to vector<128x16xf32>
    %c0_91 = arith.constant 0 : index
    %c0_92 = arith.constant 0 : index
    %111 = vector.load %arg13[%c0_91, %c0_92] : memref<160x16xf32, #tpu.memory_space<vmem>>, vector<128x16xf32>
    %c0_93 = arith.constant 0 : index
    %c0_94 = arith.constant 0 : index
    %c0_95 = arith.constant 0 : index
    %112 = vector.load %arg6[%c0_93, %c0_94, %c0_95] : memref<5x16x16xf32, #tpu.memory_space<vmem>>, vector<1x16x16xf32>
    %113 = vector.shape_cast %112 : vector<1x16x16xf32> to vector<16x16xf32>
    %cst_96 = arith.constant dense<0.000000e+00> : vector<128x16xf32>
    %114 = tpu.matmul %111, %113, %cst_96 {dimension_numbers = #tpu.dot_dimension_numbers<[1], [0], [0], [1], [0, 0, 1, 1], [], []>} : vector<128x16xf32>, vector<16x16xf32>, vector<128x16xf32> -> vector<128x16xf32>
    %115 = arith.addf %110, %114 : vector<128x16xf32>
    %c8_97 = arith.constant 8 : index
    %c0_98 = arith.constant 0 : index
    %116 = vector.load %arg13[%c8_97, %c0_98] : memref<160x16xf32, #tpu.memory_space<vmem>>, vector<128x16xf32>
    %c1_99 = arith.constant 1 : index
    %c0_100 = arith.constant 0 : index
    %c0_101 = arith.constant 0 : index
    %117 = vector.load %arg6[%c1_99, %c0_100, %c0_101] : memref<5x16x16xf32, #tpu.memory_space<vmem>>, vector<1x16x16xf32>
    %118 = vector.shape_cast %117 : vector<1x16x16xf32> to vector<16x16xf32>
    %cst_102 = arith.constant dense<0.000000e+00> : vector<128x16xf32>
    %119 = tpu.matmul %116, %118, %cst_102 {dimension_numbers = #tpu.dot_dimension_numbers<[1], [0], [0], [1], [0, 0, 1, 1], [], []>} : vector<128x16xf32>, vector<16x16xf32>, vector<128x16xf32> -> vector<128x16xf32>
    %120 = arith.addf %115, %119 : vector<128x16xf32>
    %c16_103 = arith.constant 16 : index
    %c0_104 = arith.constant 0 : index
    %121 = vector.load %arg13[%c16_103, %c0_104] : memref<160x16xf32, #tpu.memory_space<vmem>>, vector<128x16xf32>
    %c2_105 = arith.constant 2 : index
    %c0_106 = arith.constant 0 : index
    %c0_107 = arith.constant 0 : index
    %122 = vector.load %arg6[%c2_105, %c0_106, %c0_107] : memref<5x16x16xf32, #tpu.memory_space<vmem>>, vector<1x16x16xf32>
    %123 = vector.shape_cast %122 : vector<1x16x16xf32> to vector<16x16xf32>
    %cst_108 = arith.constant dense<0.000000e+00> : vector<128x16xf32>
    %124 = tpu.matmul %121, %123, %cst_108 {dimension_numbers = #tpu.dot_dimension_numbers<[1], [0], [0], [1], [0, 0, 1, 1], [], []>} : vector<128x16xf32>, vector<16x16xf32>, vector<128x16xf32> -> vector<128x16xf32>
    %125 = arith.addf %120, %124 : vector<128x16xf32>
    %c24_109 = arith.constant 24 : index
    %c0_110 = arith.constant 0 : index
    %126 = vector.load %arg13[%c24_109, %c0_110] : memref<160x16xf32, #tpu.memory_space<vmem>>, vector<128x16xf32>
    %c3_111 = arith.constant 3 : index
    %c0_112 = arith.constant 0 : index
    %c0_113 = arith.constant 0 : index
    %127 = vector.load %arg6[%c3_111, %c0_112, %c0_113] : memref<5x16x16xf32, #tpu.memory_space<vmem>>, vector<1x16x16xf32>
    %128 = vector.shape_cast %127 : vector<1x16x16xf32> to vector<16x16xf32>
    %cst_114 = arith.constant dense<0.000000e+00> : vector<128x16xf32>
    %129 = tpu.matmul %126, %128, %cst_114 {dimension_numbers = #tpu.dot_dimension_numbers<[1], [0], [0], [1], [0, 0, 1, 1], [], []>} : vector<128x16xf32>, vector<16x16xf32>, vector<128x16xf32> -> vector<128x16xf32>
    %130 = arith.addf %125, %129 : vector<128x16xf32>
    %c32_115 = arith.constant 32 : index
    %c0_116 = arith.constant 0 : index
    %131 = vector.load %arg13[%c32_115, %c0_116] : memref<160x16xf32, #tpu.memory_space<vmem>>, vector<128x16xf32>
    %c4_117 = arith.constant 4 : index
    %c0_118 = arith.constant 0 : index
    %c0_119 = arith.constant 0 : index
    %132 = vector.load %arg6[%c4_117, %c0_118, %c0_119] : memref<5x16x16xf32, #tpu.memory_space<vmem>>, vector<1x16x16xf32>
    %133 = vector.shape_cast %132 : vector<1x16x16xf32> to vector<16x16xf32>
    %cst_120 = arith.constant dense<0.000000e+00> : vector<128x16xf32>
    %134 = tpu.matmul %131, %133, %cst_120 {dimension_numbers = #tpu.dot_dimension_numbers<[1], [0], [0], [1], [0, 0, 1, 1], [], []>} : vector<128x16xf32>, vector<16x16xf32>, vector<128x16xf32> -> vector<128x16xf32>
    %135 = arith.addf %130, %134 : vector<128x16xf32>
    %c0_121 = arith.constant 0 : index
    %c0_122 = arith.constant 0 : index
    %136 = vector.load %arg7[%c0_121, %c0_122] : memref<1x16xf32, #tpu.memory_space<vmem>>, vector<1x16xf32>
    %137 = vector.broadcast %136 : vector<1x16xf32> to vector<128x16xf32>
    %138 = arith.addf %135, %137 : vector<128x16xf32>
    %cst_123 = arith.constant 0.000000e+00 : f32
    %139 = vector.broadcast %cst_123 : f32 to vector<128x16xf32>
    %140 = arith.subf %139, %138 : vector<128x16xf32>
    %cst_124 = arith.constant 6.000000e+01 : f32
    %141 = vector.broadcast %cst_124 : f32 to vector<128x16xf32>
    %142 = arith.minimumf %140, %141 : vector<128x16xf32>
    %143 = math.exp %142 : vector<128x16xf32>
    %cst_125 = arith.constant 1.000000e+00 : f32
    %144 = vector.broadcast %cst_125 : f32 to vector<128x16xf32>
    %145 = arith.addf %144, %143 : vector<128x16xf32>
    %146 = tpu.reciprocal %145 {approx = true} : vector<128x16xf32> -> vector<128x16xf32>
    %147 = arith.mulf %145, %146 : vector<128x16xf32>
    %cst_126 = arith.constant 2.000000e+00 : f32
    %148 = vector.broadcast %cst_126 : f32 to vector<128x16xf32>
    %149 = arith.subf %148, %147 : vector<128x16xf32>
    %150 = arith.mulf %146, %149 : vector<128x16xf32>
    %151 = arith.mulf %138, %150 : vector<128x16xf32>
    %c0_127 = arith.constant 0 : index
    %c0_128 = arith.constant 0 : index
    %152 = vector.load %arg14[%c0_127, %c0_128] : memref<128x16xf32, #tpu.memory_space<vmem>>, vector<128x16xf32>
    tpu.vector_store %arg14[%c0_127, %c0_128], %151 {strides = array<i32>} : memref<128x16xf32, #tpu.memory_space<vmem>>, vector<128x16xf32>,
    %c0_129 = arith.constant 0 : index
    %c0_130 = arith.constant 0 : index
    %153 = vector.load %arg14[%c0_129, %c0_130] : memref<128x16xf32, #tpu.memory_space<vmem>>, vector<8x16xf32>
    %c0_131 = arith.constant 0 : index
    %c0_132 = arith.constant 0 : index
    %154 = vector.load %arg15[%c0_131, %c0_132] : memref<8x256xf32, #tpu.memory_space<vmem>>, vector<8x16xf32>
    tpu.vector_store %arg15[%c0_131, %c0_132], %153 {strides = array<i32>} : memref<8x256xf32, #tpu.memory_space<vmem>>, vector<8x16xf32>,
    %c8_133 = arith.constant 8 : index
    %c0_134 = arith.constant 0 : index
    %155 = vector.load %arg14[%c8_133, %c0_134] : memref<128x16xf32, #tpu.memory_space<vmem>>, vector<8x16xf32>
    %c0_135 = arith.constant 0 : index
    %c16_136 = arith.constant 16 : index
    %156 = vector.load %arg15[%c0_135, %c16_136] : memref<8x256xf32, #tpu.memory_space<vmem>>, vector<8x16xf32>
    tpu.vector_store %arg15[%c0_135, %c16_136], %155 {strides = array<i32>} : memref<8x256xf32, #tpu.memory_space<vmem>>, vector<8x16xf32>,
    %c16_137 = arith.constant 16 : index
    %c0_138 = arith.constant 0 : index
    %157 = vector.load %arg14[%c16_137, %c0_138] : memref<128x16xf32, #tpu.memory_space<vmem>>, vector<8x16xf32>
    %c0_139 = arith.constant 0 : index
    %c32_140 = arith.constant 32 : index
    %158 = vector.load %arg15[%c0_139, %c32_140] : memref<8x256xf32, #tpu.memory_space<vmem>>, vector<8x16xf32>
    tpu.vector_store %arg15[%c0_139, %c32_140], %157 {strides = array<i32>} : memref<8x256xf32, #tpu.memory_space<vmem>>, vector<8x16xf32>,
    %c24_141 = arith.constant 24 : index
    %c0_142 = arith.constant 0 : index
    %159 = vector.load %arg14[%c24_141, %c0_142] : memref<128x16xf32, #tpu.memory_space<vmem>>, vector<8x16xf32>
    %c0_143 = arith.constant 0 : index
    %c48 = arith.constant 48 : index
    %160 = vector.load %arg15[%c0_143, %c48] : memref<8x256xf32, #tpu.memory_space<vmem>>, vector<8x16xf32>
    tpu.vector_store %arg15[%c0_143, %c48], %159 {strides = array<i32>} : memref<8x256xf32, #tpu.memory_space<vmem>>, vector<8x16xf32>,
    %c32_144 = arith.constant 32 : index
    %c0_145 = arith.constant 0 : index
    %161 = vector.load %arg14[%c32_144, %c0_145] : memref<128x16xf32, #tpu.memory_space<vmem>>, vector<8x16xf32>
    %c0_146 = arith.constant 0 : index
    %c64 = arith.constant 64 : index
    %162 = vector.load %arg15[%c0_146, %c64] : memref<8x256xf32, #tpu.memory_space<vmem>>, vector<8x16xf32>
    tpu.vector_store %arg15[%c0_146, %c64], %161 {strides = array<i32>} : memref<8x256xf32, #tpu.memory_space<vmem>>, vector<8x16xf32>,
    %c40 = arith.constant 40 : index
    %c0_147 = arith.constant 0 : index
    %163 = vector.load %arg14[%c40, %c0_147] : memref<128x16xf32, #tpu.memory_space<vmem>>, vector<8x16xf32>
    %c0_148 = arith.constant 0 : index
    %c80 = arith.constant 80 : index
    %164 = vector.load %arg15[%c0_148, %c80] : memref<8x256xf32, #tpu.memory_space<vmem>>, vector<8x16xf32>
    tpu.vector_store %arg15[%c0_148, %c80], %163 {strides = array<i32>} : memref<8x256xf32, #tpu.memory_space<vmem>>, vector<8x16xf32>,
    %c48_149 = arith.constant 48 : index
    %c0_150 = arith.constant 0 : index
    %165 = vector.load %arg14[%c48_149, %c0_150] : memref<128x16xf32, #tpu.memory_space<vmem>>, vector<8x16xf32>
    %c0_151 = arith.constant 0 : index
    %c96 = arith.constant 96 : index
    %166 = vector.load %arg15[%c0_151, %c96] : memref<8x256xf32, #tpu.memory_space<vmem>>, vector<8x16xf32>
    tpu.vector_store %arg15[%c0_151, %c96], %165 {strides = array<i32>} : memref<8x256xf32, #tpu.memory_space<vmem>>, vector<8x16xf32>,
    %c56 = arith.constant 56 : index
    %c0_152 = arith.constant 0 : index
    %167 = vector.load %arg14[%c56, %c0_152] : memref<128x16xf32, #tpu.memory_space<vmem>>, vector<8x16xf32>
    %c0_153 = arith.constant 0 : index
    %c112 = arith.constant 112 : index
    %168 = vector.load %arg15[%c0_153, %c112] : memref<8x256xf32, #tpu.memory_space<vmem>>, vector<8x16xf32>
    tpu.vector_store %arg15[%c0_153, %c112], %167 {strides = array<i32>} : memref<8x256xf32, #tpu.memory_space<vmem>>, vector<8x16xf32>,
    %c64_154 = arith.constant 64 : index
    %c0_155 = arith.constant 0 : index
    %169 = vector.load %arg14[%c64_154, %c0_155] : memref<128x16xf32, #tpu.memory_space<vmem>>, vector<8x16xf32>
    %c0_156 = arith.constant 0 : index
    %c128 = arith.constant 128 : index
    %170 = vector.load %arg15[%c0_156, %c128] : memref<8x256xf32, #tpu.memory_space<vmem>>, vector<8x16xf32>
    tpu.vector_store %arg15[%c0_156, %c128], %169 {strides = array<i32>} : memref<8x256xf32, #tpu.memory_space<vmem>>, vector<8x16xf32>,
    %c72 = arith.constant 72 : index
    %c0_157 = arith.constant 0 : index
    %171 = vector.load %arg14[%c72, %c0_157] : memref<128x16xf32, #tpu.memory_space<vmem>>, vector<8x16xf32>
    %c0_158 = arith.constant 0 : index
    %c144_159 = arith.constant 144 : index
    %172 = vector.load %arg15[%c0_158, %c144_159] : memref<8x256xf32, #tpu.memory_space<vmem>>, vector<8x16xf32>
    tpu.vector_store %arg15[%c0_158, %c144_159], %171 {strides = array<i32>} : memref<8x256xf32, #tpu.memory_space<vmem>>, vector<8x16xf32>,
    %c80_160 = arith.constant 80 : index
    %c0_161 = arith.constant 0 : index
    %173 = vector.load %arg14[%c80_160, %c0_161] : memref<128x16xf32, #tpu.memory_space<vmem>>, vector<8x16xf32>
    %c0_162 = arith.constant 0 : index
    %c160 = arith.constant 160 : index
    %174 = vector.load %arg15[%c0_162, %c160] : memref<8x256xf32, #tpu.memory_space<vmem>>, vector<8x16xf32>
    tpu.vector_store %arg15[%c0_162, %c160], %173 {strides = array<i32>} : memref<8x256xf32, #tpu.memory_space<vmem>>, vector<8x16xf32>,
    %c88 = arith.constant 88 : index
    %c0_163 = arith.constant 0 : index
    %175 = vector.load %arg14[%c88, %c0_163] : memref<128x16xf32, #tpu.memory_space<vmem>>, vector<8x16xf32>
    %c0_164 = arith.constant 0 : index
    %c176 = arith.constant 176 : index
    %176 = vector.load %arg15[%c0_164, %c176] : memref<8x256xf32, #tpu.memory_space<vmem>>, vector<8x16xf32>
    tpu.vector_store %arg15[%c0_164, %c176], %175 {strides = array<i32>} : memref<8x256xf32, #tpu.memory_space<vmem>>, vector<8x16xf32>,
    %c96_165 = arith.constant 96 : index
    %c0_166 = arith.constant 0 : index
    %177 = vector.load %arg14[%c96_165, %c0_166] : memref<128x16xf32, #tpu.memory_space<vmem>>, vector<8x16xf32>
    %c0_167 = arith.constant 0 : index
    %c192 = arith.constant 192 : index
    %178 = vector.load %arg15[%c0_167, %c192] : memref<8x256xf32, #tpu.memory_space<vmem>>, vector<8x16xf32>
    tpu.vector_store %arg15[%c0_167, %c192], %177 {strides = array<i32>} : memref<8x256xf32, #tpu.memory_space<vmem>>, vector<8x16xf32>,
    %c104 = arith.constant 104 : index
    %c0_168 = arith.constant 0 : index
    %179 = vector.load %arg14[%c104, %c0_168] : memref<128x16xf32, #tpu.memory_space<vmem>>, vector<8x16xf32>
    %c0_169 = arith.constant 0 : index
    %c208 = arith.constant 208 : index
    %180 = vector.load %arg15[%c0_169, %c208] : memref<8x256xf32, #tpu.memory_space<vmem>>, vector<8x16xf32>
    tpu.vector_store %arg15[%c0_169, %c208], %179 {strides = array<i32>} : memref<8x256xf32, #tpu.memory_space<vmem>>, vector<8x16xf32>,
    %c112_170 = arith.constant 112 : index
    %c0_171 = arith.constant 0 : index
    %181 = vector.load %arg14[%c112_170, %c0_171] : memref<128x16xf32, #tpu.memory_space<vmem>>, vector<8x16xf32>
    %c0_172 = arith.constant 0 : index
    %c224 = arith.constant 224 : index
    %182 = vector.load %arg15[%c0_172, %c224] : memref<8x256xf32, #tpu.memory_space<vmem>>, vector<8x16xf32>
    tpu.vector_store %arg15[%c0_172, %c224], %181 {strides = array<i32>} : memref<8x256xf32, #tpu.memory_space<vmem>>, vector<8x16xf32>,
    %c120 = arith.constant 120 : index
    %c0_173 = arith.constant 0 : index
    %183 = vector.load %arg14[%c120, %c0_173] : memref<128x16xf32, #tpu.memory_space<vmem>>, vector<8x16xf32>
    %c0_174 = arith.constant 0 : index
    %c240 = arith.constant 240 : index
    %184 = vector.load %arg15[%c0_174, %c240] : memref<8x256xf32, #tpu.memory_space<vmem>>, vector<8x16xf32>
    tpu.vector_store %arg15[%c0_174, %c240], %183 {strides = array<i32>} : memref<8x256xf32, #tpu.memory_space<vmem>>, vector<8x16xf32>,
    %c0_175 = arith.constant 0 : index
    %c0_176 = arith.constant 0 : index
    %185 = vector.load %arg15[%c0_175, %c0_176] : memref<8x256xf32, #tpu.memory_space<vmem>>, vector<8x256xf32>
    %c0_177 = arith.constant 0 : index
    %c0_178 = arith.constant 0 : index
    %186 = vector.load %arg8[%c0_177, %c0_178] : memref<256x4xf32, #tpu.memory_space<vmem>>, vector<256x4xf32>
    %cst_179 = arith.constant dense<0.000000e+00> : vector<8x4xf32>
    %187 = tpu.matmul %185, %186, %cst_179 {dimension_numbers = #tpu.dot_dimension_numbers<[1], [0], [0], [1], [0, 0, 1, 1], [], []>} : vector<8x256xf32>, vector<256x4xf32>, vector<8x4xf32> -> vector<8x4xf32>
    %c0_180 = arith.constant 0 : index
    %c0_181 = arith.constant 0 : index
    %188 = vector.load %arg9[%c0_180, %c0_181] : memref<1x4xf32, #tpu.memory_space<vmem>>, vector<1x4xf32>
    %189 = vector.broadcast %188 : vector<1x4xf32> to vector<8x4xf32>
    %190 = arith.addf %187, %189 : vector<8x4xf32>
    %c0_182 = arith.constant 0 : index
    %c0_183 = arith.constant 0 : index
    %191 = vector.load %arg10[%c0_182, %c0_183] : memref<8x4xf32, #tpu.memory_space<vmem>>, vector<8x4xf32>
    tpu.vector_store %arg10[%c0_182, %c0_183], %190 {strides = array<i32>} : memref<8x4xf32, #tpu.memory_space<vmem>>, vector<8x4xf32>,
    return
  }
  func.func @transform_0(%arg0: i32) -> (i32, i32) {
    %c0_i32 = arith.constant 0 : i32
    %c0_i32_0 = arith.constant 0 : i32
    return %arg0, %c0_i32 : i32, i32
  }
  func.func @transform_1(%arg0: i32) -> (i32, i32, i32) {
    %c0_i32 = arith.constant 0 : i32
    %c0_i32_0 = arith.constant 0 : i32
    %c0_i32_1 = arith.constant 0 : i32
    %c0_i32_2 = arith.constant 0 : i32
    return %c0_i32, %c0_i32_0, %c0_i32_1 : i32, i32, i32
  }
  func.func @transform_2(%arg0: i32) -> (i32, i32) {
    %c0_i32 = arith.constant 0 : i32
    %c0_i32_0 = arith.constant 0 : i32
    %c0_i32_1 = arith.constant 0 : i32
    return %c0_i32, %c0_i32_0 : i32, i32
  }
  func.func @transform_3(%arg0: i32) -> (i32, i32, i32) {
    %c0_i32 = arith.constant 0 : i32
    %c0_i32_0 = arith.constant 0 : i32
    %c0_i32_1 = arith.constant 0 : i32
    %c0_i32_2 = arith.constant 0 : i32
    return %c0_i32, %c0_i32_0, %c0_i32_1 : i32, i32, i32
  }
  func.func @transform_4(%arg0: i32) -> (i32, i32) {
    %c0_i32 = arith.constant 0 : i32
    %c0_i32_0 = arith.constant 0 : i32
    %c0_i32_1 = arith.constant 0 : i32
    return %c0_i32, %c0_i32_0 : i32, i32
  }
  func.func @transform_5(%arg0: i32) -> (i32, i32, i32) {
    %c0_i32 = arith.constant 0 : i32
    %c0_i32_0 = arith.constant 0 : i32
    %c0_i32_1 = arith.constant 0 : i32
    %c0_i32_2 = arith.constant 0 : i32
    return %c0_i32, %c0_i32_0, %c0_i32_1 : i32, i32, i32
  }
  func.func @transform_6(%arg0: i32) -> (i32, i32) {
    %c0_i32 = arith.constant 0 : i32
    %c0_i32_0 = arith.constant 0 : i32
    %c0_i32_1 = arith.constant 0 : i32
    return %c0_i32, %c0_i32_0 : i32, i32
  }
  func.func @transform_7(%arg0: i32) -> (i32, i32) {
    %c0_i32 = arith.constant 0 : i32
    %c0_i32_0 = arith.constant 0 : i32
    %c0_i32_1 = arith.constant 0 : i32
    return %c0_i32, %c0_i32_0 : i32, i32
  }
  func.func @transform_8(%arg0: i32) -> (i32, i32) {
    %c0_i32 = arith.constant 0 : i32
    %c0_i32_0 = arith.constant 0 : i32
    %c0_i32_1 = arith.constant 0 : i32
    return %c0_i32, %c0_i32_0 : i32, i32
  }
  func.func @transform_9(%arg0: i32) -> (i32, i32) {
    %c0_i32 = arith.constant 0 : i32
    %c0_i32_0 = arith.constant 0 : i32
    return %arg0, %c0_i32 : i32, i32
  }
}

</mosaic_0001>

<bundles_post_ra>
// kernel: tpu_custom_call.1
= control target key start
LH: loop header
LB: loop body
LE: loop exit
PB: predicated region body
PF: predicated region fallthrough
CT: control target
= control target key end

     0   :  { %s6121_s30 = smov 0   ;;  %s7378_s0 = inlined_call_operand.vmem [shape: f32[256,8], index: 0, kind: input, shape index: {}]   ;;  %s7379_s1 = inlined_call_operand.vmem [shape: f32[5,8,16], index: 1, kind: input, shape index: {}]   ;;  %s7380_s2 = inlined_call_operand.vmem [shape: f32[1,16], index: 2, kind: input, shape index: {}]   ;;  %s7381_s3 = inlined_call_operand.vmem [shape: f32[5,16,16], index: 3, kind: input, shape index: {}]   ;;  %s7382_s4 = inlined_call_operand.vmem [shape: f32[1,16], index: 4, kind: input, shape index: {}]   ;;  %s7383_s5 = inlined_call_operand.vmem [shape: f32[5,16,16], index: 5, kind: input, shape index: {}]   ;;  %s7384_s6 = inlined_call_operand.vmem [shape: f32[1,16], index: 6, kind: input, shape index: {}]   ;;  %s7385_s7 = inlined_call_operand.vmem [shape: f32[256,4], index: 7, kind: input, shape index: {}]   ;;  %s7386_s8 = inlined_call_operand.vmem [shape: f32[1,4], index: 8, kind: input, shape index: {}]   ;;  %s7387_s9 = inlined_call_operand.vmem [shape: f32[16,4], index: 9, kind: output, shape index: {}]  }
   0x1 LB: > { %s6127_s10 = sadd.s32 4294967295, %s6061_s30   ;;  %p4537_p0 = scmp.ge.s32.totalorder %s6061_s30, 1  ;;  %s6061_s30 = sphi %s6121_s30, %s19_s30  }
   0x2   : > { %p288_p1 = scmp.lt.s32.totalorder %s6061_s30, 3 }
   0x4   : > { %p289_p2 = pnand %p4537_p0, %p288_p1 }
   0x5   : > { %v4541_v0 = vld [vmem:[%s7379_s1 + $0x8] sm:$0xff] (!%p289_p2)  ;;  %v6137_v1 = vld [vmem:[%s7379_s1 + $0x10] sm:$0xff] (!%p289_p2)  ;;  %vm509_vm0 = vcmask (!%p289_p2), 64512   ;;  %s4538_s15 = sshll.u32 (!%p289_p2), %s6127_s10, 4  ;;  %v6143_v2 = vld [vmem:[%s7379_s1 + $0x18] sm:$0xff] (!%p289_p2)  ;;  %v6063_v3 = vmov (!%p289_p2), 0.0  }
   0x6   : > { %292 = sbr.rel (%p289_p2) target bundleno = 1538 (0x602), region = 56  ;;  %5107 = vmatprep.subr.mxu1 (!%p289_p2), %v4541_v0  ;;  %5159 = vmatprep.subr.mxu0 (!%p289_p2), %v6137_v1  ;;  %511 = vst.msk [vmem:[#allocation2 + $0x8] sm:$0xff] (!%p289_p2), %vm509_vm0, %v6063_v3  ;;  %510 = vst.msk [vmem:[#allocation2] sm:$0xff] (!%p289_p2), %vm509_vm0, %v6063_v3  ;;  %p324_p3 = scmp.lt.s32.totalorder (!%p289_p2), %s4538_s15, 31  ;;  %v6157_v4 = vld [vmem:[%s7379_s1] sm:$0xff] (!%p289_p2)  ;;  %vm1755_vm1 = vcmask (!%p289_p2), 130048  }
   0x7   : > { %512 = vst.msk [vmem:[#allocation2 + $0x90] sm:$0xff] (!%p289_p2), %vm509_vm0, %v6063_v3  ;;  %513 = vst.msk [vmem:[#allocation2 + $0x98] sm:$0xff] (!%p289_p2), %vm509_vm0, %v6063_v3  ;;  %5108 = vmatpush3.msra.mxu1 (!%p289_p2), %v4541_v0  ;;  %5160 = vmatpush3.msra.mxu0 (!%p289_p2), %v6137_v1  ;;  %s6065_s28 = smov (!%p289_p2), 48   ;;  %s6066_s18 = smov (!%p289_p2), 32   ;;  %vm4279_vm2 = vcmask (!%p289_p2), 261248   ;;  %vm4286_vm3 = vcmask (!%p289_p2), 392448  }
   0x8   : > { %5185 = vmatprep.subr.mxu0 (!%p289_p2), %v6143_v2  ;;  %5133 = vmatprep.subr.mxu1 (!%p289_p2), %v6157_v4  ;;  %1756 = vst.msk [vmem:[#allocation3] sm:$0xff] (!%p289_p2), %vm1755_vm1, %v6063_v3  ;;  %1757 = vst.msk [vmem:[#allocation3 + $0x8] sm:$0xff] (!%p289_p2), %vm1755_vm1, %v6063_v3  ;;  %s6067_s29 = smov (!%p289_p2), 80   ;;  %s6069_s14 = smov (!%p289_p2), 96   ;;  %vm4293_vm4 = vcmask (!%p289_p2), 523648   ;;  %vm4300_vm5 = vcmask (!%p289_p2), 654848  }
   0x9   : > { %1758 = vst.msk [vmem:[#allocation3 + $0x90] sm:$0xff] (!%p289_p2), %vm1755_vm1, %v6063_v3  ;;  %1759 = vst.msk [vmem:[#allocation3 + $0x98] sm:$0xff] (!%p289_p2), %vm1755_vm1, %v6063_v3  ;;  %vm4307_vm6 = vcmask (!%p289_p2), 786048   ;;  %vm4314_vm7 = vcmask (!%p289_p2), 917248   ;;  %vm4321_vm8 = vcmask (!%p289_p2), 1048448   ;;  %p329_p4 = scmp.lt.s32.totalorder (!%p289_p2), %s6127_s10, 1 }
   0xa   : > { %3006 = vst.msk [vmem:[#allocation4] sm:$0xff] (!%p289_p2), %vm1755_vm1, %v6063_v3  ;;  %3007 = vst.msk [vmem:[#allocation4 + $0x8] sm:$0xff] (!%p289_p2), %vm1755_vm1, %v6063_v3  ;;  %vm4478_vm9 = vcmask (!%p289_p2), 31744  }
   0xb   : > { %3008 = vst.msk [vmem:[#allocation4 + $0x90] sm:$0xff] (!%p289_p2), %vm1755_vm1, %v6063_v3  ;;  %3009 = vst.msk [vmem:[#allocation4 + $0x98] sm:$0xff] (!%p289_p2), %vm1755_vm1, %v6063_v3  ;;  %v1792_v3 = vld [vmem:[%s7381_s3] sm:$0xff] (!%p289_p2) }
   0xd   : > { %s7389_s15 = smov (!%p324_p3, %s4538_s15), 31  ;;  %v6176_v8 = vld [vmem:[#allocation2 + $0x8] sm:$0xff]  ;;  %s7391_s10 = smov (!%p329_p4, %s6127_s10), 1 }
   0xe   : > { %s4539_s20 = sshll.u32 %s7389_s15, 3  ;;  %5109 = vmatprep.mubr.msk.f32.mxu1 %vm509_vm0, %v6176_v8  ;;  %s6070_s15 = smov 112  }
   0xf   : > { %s6165_s23 = scalar_lea.vmem %s7378_s0, %s4539_s20  ;;  %s6068_s20 = smov 64  }
  0x10   : > { %v6168_v5 = vld [vmem:[%s6165_s23] sm:$0xff]  ;;  %v6171_v6 = vld [vmem:[%s6165_s23 + $0x8] sm:$0xff]  ;;  %v6174_v7 = vld [vmem:[%s6165_s23 + $0x10] sm:$0xff] }
  0x11   : > { %v349_v9 = vsub.f32 0.0, %v6168_v5  ;;  %v350_v10 = vsub.f32 0.0, %v6171_v6  ;;  %v351_v11 = vsub.f32 0.0, %v6174_v7  ;;  %v6182_v12 = vld [vmem:[%s6165_s23 + $0x18] sm:$0xff]  ;;  %v6185_v13 = vld [vmem:[%s6165_s23 + $0x20] sm:$0xff]  ;;  %v6192_v16 = vld [vmem:[%s6165_s23 + $0x28] sm:$0xff] }
  0x12   : > { %v352_v14 = vsub.f32 0.0, %v6182_v12  ;;  %v353_v15 = vsub.f32 0.0, %v6185_v13  ;;  %v6195_v17 = vld [vmem:[%s6165_s23 + $0x30] sm:$0xff]  ;;  %v6198_v18 = vld [vmem:[%s6165_s23 + $0x38] sm:$0xff]  ;;  %v354_v22 = vsub.f32 0.0, %v6192_v16  ;;  %v6202_v23 = vld [vmem:[%s6165_s23 + $0x40] sm:$0xff] }
  0x13   : > { %v365_v19 = vmin.f32 %v349_v9, 60.0  ;;  %v366_v20 = vmin.f32 %v350_v10, 60.0  ;;  %v367_v21 = vmin.f32 %v351_v11, 60.0  ;;  %v355_v26 = vsub.f32 0.0, %v6195_v17  ;;  %v6207_v28 = vld [vmem:[%s6165_s23 + $0x48] sm:$0xff]  ;;  %v6210_v29 = vld [vmem:[%s6165_s23 + $0x50] sm:$0xff] }
  0x14   : > { %v368_v24 = vmin.f32 %v352_v14, 60.0  ;;  %v369_v25 = vmin.f32 %v353_v15, 60.0  ;;  %v356_v27 = vsub.f32 0.0, %v6198_v18  ;;  %v370_v35 = vmin.f32 %v354_v22, 60.0  ;;  %v6215_v40 = vld [vmem:[%s6165_s23 + $0x58] sm:$0xff]  ;;  %v6218_v41 = vld [vmem:[%s6165_s23 + $0x60] sm:$0xff] }
  0x15   : > { %v381_v30 = vmul.f32 1.442695, %v365_v19  ;;  %v383_v31 = vmul.f32 1.442695, %v366_v20  ;;  %v385_v32 = vmul.f32 1.442695, %v367_v21 }
  0x16   : > { %v387_v33 = vmul.f32 1.442695, %v368_v24  ;;  %v389_v34 = vmul.f32 1.442695, %v369_v25  ;;  %v371_v36 = vmin.f32 %v355_v26, 60.0  ;;  %v372_v37 = vmin.f32 %v356_v27, 60.0 }
  0x17   : > { %5799 = vpow2.f32 %v381_v30  ;;  %v357_v38 = vsub.f32 0.0, %v6202_v23  ;;  %v358_v39 = vsub.f32 0.0, %v6207_v28  ;;  %v391_v42 = vmul.f32 1.442695, %v370_v35  ;;  %v6224_v61 = vld [vmem:[%s6165_s23 + $0x68] sm:$0xff]  ;;  %v6227_v0 = vld [vmem:[%s6165_s23 + $0x70] sm:$0xff] }
  0x18   : > { %5801 = vpow2.f32 %v383_v31  ;;  %v393_v43 = vmul.f32 1.442695, %v371_v36  ;;  %v359_v44 = vsub.f32 0.0, %v6210_v29  ;;  %v395_v45 = vmul.f32 1.442695, %v372_v37  ;;  %v6230_v11 = vld [vmem:[%s6165_s23 + $0x78] sm:$0xff] }
  0x19   : > { %5803 = vpow2.f32 %v385_v32  ;;  %v373_v46 = vmin.f32 %v357_v38, 60.0  ;;  %v374_v47 = vmin.f32 %v358_v39, 60.0  ;;  %v360_v49 = vsub.f32 0.0, %v6215_v40  ;;  %s6064_s23 = smov 16  }
  0x1a   : > { %5805 = vpow2.f32 %v387_v33  ;;  %v375_v48 = vmin.f32 %v359_v44, 60.0  ;;  %v361_v50 = vsub.f32 0.0, %v6218_v41  ;;  %v362_v19 = vsub.f32 0.0, %v6224_v61 }
  0x1b   : > { %5807 = vpow2.f32 %v389_v34  ;;  %v397_v51 = vmul.f32 1.442695, %v373_v46  ;;  %v399_v52 = vmul.f32 1.442695, %v374_v47  ;;  %v376_v53 = vmin.f32 %v360_v49, 60.0 }
  0x1c   : > { %5809 = vpow2.f32 %v391_v42  ;;  %v377_v54 = vmin.f32 %v361_v50, 60.0  ;;  %v401_v55 = vmul.f32 1.442695, %v375_v48  ;;  %v363_v22 = vsub.f32 0.0, %v6227_v0 }
  0x1d   : > { %5811 = vpow2.f32 %v393_v43  ;;  %v403_v56 = vmul.f32 1.442695, %v376_v53  ;;  %v364_v26 = vsub.f32 0.0, %v6230_v11  ;;  %v378_v33 = vmin.f32 %v362_v19, 60.0 }
  0x1e   : > { %5813 = vpow2.f32 %v395_v45  ;;  %v405_v57 = vmul.f32 1.442695, %v377_v54  ;;  %v379_v36 = vmin.f32 %v363_v22, 60.0 }
  0x1f   : > { %5815 = vpow2.f32 %v397_v51  ;;  %v380_v39 = vmin.f32 %v364_v26, 60.0  ;;  %v407_v46 = vmul.f32 1.442695, %v378_v33 }
  0x20   : > { %5817 = vpow2.f32 %v399_v52  ;;  %v409_v49 = vmul.f32 1.442695, %v379_v36 }
  0x21   : > { %v5800_v58 = vpop.eup %5799  ;;  %5819 = vpow2.f32 %v401_v55  ;;  %v411_v52 = vmul.f32 1.442695, %v380_v39 }
  0x22   : > { %v5802_v59 = vpop.eup %5801  ;;  %v413_v60 = vadd.f32 1.0, %v5800_v58  ;;  %5821 = vpow2.f32 %v403_v56 }
  0x23   : > { %v5804_v62 = vpop.eup %5803  ;;  %v414_v63 = vadd.f32 1.0, %v5802_v59  ;;  %5823 = vpow2.f32 %v405_v57 }
  0x24   : > { %v5806_v9 = vpop.eup %5805  ;;  %5825 = vrcp.f32 %v413_v60  ;;  %v415_v10 = vadd.f32 1.0, %v5804_v62 }
  0x25   : > { %v5808_v14 = vpop.eup %5807  ;;  %5827 = vrcp.f32 %v414_v63  ;;  %v416_v15 = vadd.f32 1.0, %v5806_v9 }
  0x26   : > { %v5810_v20 = vpop.eup %5809  ;;  %5829 = vrcp.f32 %v415_v10  ;;  %v417_v21 = vadd.f32 1.0, %v5808_v14 }
  0x27   : > { %v5812_v24 = vpop.eup %5811  ;;  %5831 = vrcp.f32 %v416_v15  ;;  %v418_v25 = vadd.f32 1.0, %v5810_v20 }
  0x28   : > { %v5814_v27 = vpop.eup %5813  ;;  %5833 = vrcp.f32 %v417_v21  ;;  %v419_v30 = vadd.f32 1.0, %v5812_v24 }
  0x29   : > { %v5816_v31 = vpop.eup %5815  ;;  %5835 = vrcp.f32 %v418_v25  ;;  %v420_v32 = vadd.f32 1.0, %v5814_v27 }
  0x2a   : > { %v5818_v34 = vpop.eup %5817  ;;  %5837 = vrcp.f32 %v419_v30  ;;  %v421_v35 = vadd.f32 1.0, %v5816_v31 }
  0x2b   : > { %v5820_v37 = vpop.eup %5819  ;;  %5839 = vrcp.f32 %v420_v32  ;;  %v422_v38 = vadd.f32 1.0, %v5818_v34 }
  0x2c   : > { %v5822_v42 = vpop.eup %5821  ;;  %5841 = vrcp.f32 %v421_v35  ;;  %v423_v43 = vadd.f32 1.0, %v5820_v37 }
  0x2d   : > { %v5824_v44 = vpop.eup %5823  ;;  %5843 = vrcp.f32 %v422_v38  ;;  %v6235_v45 = vadd.f32 1.0, %v5822_v42 }
  0x2e   : > { %v5826_v47 = vpop.eup %5825  ;;  %5845 = vrcp.f32 %v423_v43  ;;  %v6237_v48 = vadd.f32 1.0, %v5824_v44 }
  0x2f   : > { %v5828_v50 = vpop.eup %5827  ;;  %v445_v51 = vmul.f32 %v5826_v47, %v413_v60  ;;  %5847 = vrcp.f32 %v6235_v45 }
  0x30   : > { %v5830_v53 = vpop.eup %5829  ;;  %v446_v54 = vmul.f32 %v5828_v50, %v414_v63  ;;  %5849 = vrcp.f32 %v6237_v48 }
  0x31   : > { %v5832_v55 = vpop.eup %5831  ;;  %v461_v56 = vsub.f32 2.0, %v445_v51  ;;  %v447_v57 = vmul.f32 %v5830_v53, %v415_v10  ;;  %5851 = vpow2.f32 %v407_v46 }
  0x32   : > { %v5834_v58 = vpop.eup %5833  ;;  %v462_v59 = vsub.f32 2.0, %v446_v54  ;;  %v448_v62 = vmul.f32 %v5832_v55, %v416_v15  ;;  %5853 = vpow2.f32 %v409_v49 }
  0x33   : > { %v5836_v9 = vpop.eup %5835  ;;  %v477_v14 = vmul.f32 %v5826_v47, %v461_v56  ;;  %v463_v19 = vsub.f32 2.0, %v447_v57  ;;  %v449_v20 = vmul.f32 %v5834_v58, %v417_v21  ;;  %5855 = vpow2.f32 %v411_v52 }
  0x34   : > { %v5838_v60 = vpop.eup %5837  ;;  %v478_v22 = vmul.f32 %v5828_v50, %v462_v59  ;;  %v464_v24 = vsub.f32 2.0, %v448_v62  ;;  %v450_v26 = vmul.f32 %v5836_v9, %v418_v25 }
  0x35   : > { %v5840_v63 = vpop.eup %5839  ;;  %v493_v27 = vmul.f32 %v477_v14, %v6168_v5  ;;  %v479_v31 = vmul.f32 %v5830_v53, %v463_v19  ;;  %v465_v33 = vsub.f32 2.0, %v449_v20  ;;  %v451_v10 = vmul.f32 %v5838_v60, %v419_v30 }
  0x36   : > { %v5842_v34 = vpop.eup %5841  ;;  %v494_v36 = vmul.f32 %v478_v22, %v6171_v6  ;;  %v480_v15 = vmul.f32 %v5832_v55, %v464_v24  ;;  %v466_v37 = vsub.f32 2.0, %v450_v26  ;;  %v452_v39 = vmul.f32 %v5840_v63, %v420_v32  ;;  %v6274_v26 = vld [vmem:[%s7379_s1 + $0x20] sm:$0xff] }
  0x37   : > { %v5844_v42 = vpop.eup %5843  ;;  %514 = vst.msk [vmem:[#allocation2 + $0x10] sm:$0xff] %vm509_vm0, %v493_v27  ;;  %v495_v21 = vmul.f32 %v479_v31, %v6174_v7  ;;  %v481_v44 = vmul.f32 %v5834_v58, %v465_v33  ;;  %v467_v46 = vsub.f32 2.0, %v451_v10  ;;  %v453_v25 = vmul.f32 %v5842_v34, %v421_v35 }
  0x38   : > { %v5846_v47 = vpop.eup %5845  ;;  %515 = vst.msk [vmem:[#allocation2 + $0x18] sm:$0xff] %vm509_vm0, %v494_v36  ;;  %v496_v5 = vmul.f32 %v480_v15, %v6182_v12  ;;  %v482_v30 = vmul.f32 %v5836_v9, %v466_v37  ;;  %v468_v49 = vsub.f32 2.0, %v452_v39  ;;  %v454_v50 = vmul.f32 %v5844_v42, %v422_v38 }
  0x39   : > { %v5848_v6 = vpop.eup %5847  ;;  %516 = vst.msk [vmem:[#allocation2 + $0x20] sm:$0xff] %vm509_vm0, %v495_v21  ;;  %v497_v32 = vmul.f32 %v481_v44, %v6185_v13  ;;  %v483_v51 = vmul.f32 %v5838_v60, %v467_v46  ;;  %v469_v52 = vsub.f32 2.0, %v453_v25  ;;  %v455_v53 = vmul.f32 %v5846_v47, %v423_v43 }
  0x3a   : > { %v5850_v7 = vpop.eup %5849  ;;  %517 = vst.msk [vmem:[#allocation2 + $0x28] sm:$0xff] %vm509_vm0, %v496_v5  ;;  %v498_v35 = vmul.f32 %v482_v30, %v6192_v16  ;;  %v484_v54 = vmul.f32 %v5840_v63, %v468_v49  ;;  %v470_v55 = vsub.f32 2.0, %v454_v50  ;;  %v456_v12 = vmul.f32 %v5848_v6, %v6235_v45 }
  0x3b   : > { %v5852_v56 = vpop.eup %5851  ;;  %518 = vst.msk [vmem:[#allocation2 + $0x30] sm:$0xff] %vm509_vm0, %v497_v32  ;;  %v499_v38 = vmul.f32 %v483_v51, %v6195_v17  ;;  %v485_v57 = vmul.f32 %v5842_v34, %v469_v52  ;;  %v471_v58 = vsub.f32 2.0, %v455_v53  ;;  %v457_v13 = vmul.f32 %v5850_v7, %v6237_v48  ;;  %v530_v51 = vld [vmem:[#allocation2] sm:$0xff]  ;;  %v1360_v52 = vld [vmem:[#allocation2 + $0x98] sm:$0xff]  ;;  %v4626_v53 = vld [vmem:[%s7381_s3 + $0x10] sm:$0xff] }
  0x3c   : > { %v5854_v59 = vpop.eup %5853  ;;  %519 = vst.msk [vmem:[#allocation2 + $0x38] sm:$0xff] %vm509_vm0, %v498_v35  ;;  %v500_v43 = vmul.f32 %v484_v54, %v6198_v18  ;;  %v486_v62 = vmul.f32 %v5844_v42, %v470_v55  ;;  %v472_v16 = vsub.f32 2.0, %v456_v12  ;;  %v426_v9 = vadd.f32 1.0, %v5852_v56  ;;  %v6462_v54 = vld [vmem:[#allocation3 + $0x8] sm:$0xff] }
  0x3d   : > { %v5856_v14 = vpop.eup %5855  ;;  %520 = vst.msk [vmem:[#allocation2 + $0x40] sm:$0xff] %vm509_vm0, %v499_v38  ;;  %v501_v45 = vmul.f32 %v485_v57, %v6202_v23  ;;  %v487_v19 = vmul.f32 %v5846_v47, %v471_v58  ;;  %v473_v20 = vsub.f32 2.0, %v457_v13  ;;  %v427_v17 = vadd.f32 1.0, %v5854_v59  ;;  %v1793_v55 = vld [vmem:[%s7381_s3 + $0x8] sm:$0xff] }
  0x3e   : > { %v6259_v60 = vld [vmem:[#allocation2 + $0x10] sm:$0xff]  ;;  %521 = vst.msk [vmem:[#allocation2 + $0x48] sm:$0xff] %vm509_vm0, %v500_v43  ;;  %v502_v48 = vmul.f32 %v486_v62, %v6207_v28  ;;  %v488_v22 = vmul.f32 %v5848_v6, %v472_v16  ;;  %5857 = vrcp.f32 %v426_v9  ;;  %v428_v18 = vadd.f32 1.0, %v5856_v14 }
  0x3f   : > { %5110 = vmatmul.mubr.msk.f32.vlgmr.msra.gmra.mrb[0].mxu1 %vm509_vm0, %v6259_v60  ;;  %5161 = vmatprep.mubr.msk.f32.mxu0 %vm509_vm0, %v6259_v60  ;;  %v6267_v24 = vld [vmem:[#allocation2 + $0x18] sm:$0xff]  ;;  %522 = vst.msk [vmem:[#allocation2 + $0x50] sm:$0xff] %vm509_vm0, %v501_v45  ;;  %v503_v23 = vmul.f32 %v487_v19, %v6210_v29  ;;  %v489_v28 = vmul.f32 %v5850_v7, %v473_v20  ;;  %5859 = vrcp.f32 %v427_v17  ;;  %v6478_v45 = vld [vmem:[%s7380_s2] ss:$0 sm:$0xff] }
  0x40   : > { %5162 = vmatmul.mubr.msk.f32.vlgmr.msra.gmra.mrb[0].mxu0 %vm509_vm0, %v6267_v24  ;;  %5112 = vmatprep.mubr.msk.f32.mxu1 %vm509_vm0, %v6267_v24  ;;  %v6280_v63 = vld [vmem:[#allocation2 + $0x20] sm:$0xff]  ;;  %523 = vst.msk [vmem:[#allocation2 + $0x58] sm:$0xff] %vm509_vm0, %v502_v48  ;;  %v504_v27 = vmul.f32 %v488_v22, %v6215_v40  ;;  %5861 = vrcp.f32 %v428_v18  ;;  %v4627_v7 = vld [vmem:[%s7381_s3 + $0x18] sm:$0xff]  ;;  %v6472_v12 = vpack.c.bf16 %v1793_v55, %v1792_v3 }
  0x41   : > { %5186 = vmatpush3.msra.mxu0 %v6143_v2  ;;  %5164 = vmatprep.mubr.msk.f32.mxu0 %vm509_vm0, %v6280_v63  ;;  %v6287_v29 = vld [vmem:[#allocation2 + $0x28] sm:$0xff]  ;;  %524 = vst.msk [vmem:[#allocation2 + $0x60] sm:$0xff] %vm509_vm0, %v503_v23  ;;  %v505_v31 = vmul.f32 %v489_v28, %v6218_v41  ;;  %v5517_v35 = vpack.c.bf16 %v4627_v7, %v4626_v53 }
  0x42   : > { %v6291_v33 = vld [vmem:[#allocation2 + $0x30] sm:$0xff]  ;;  %5134 = vmatpush3.msra.mxu1 %v6157_v4  ;;  %5211 = vmatprep.subr.mxu0 %v6274_v26  ;;  %525 = vst.msk [vmem:[#allocation2 + $0x68] sm:$0xff] %vm509_vm0, %v504_v27 }
  0x43   : > { %5113 = vmatmul.mubr.msk.f32.gmra.mrb[2].mxu1 %vm509_vm0, %v6280_v63  ;;  %526 = vst.msk [vmem:[#allocation2 + $0x70] sm:$0xff] %vm509_vm0, %v505_v31  ;;  %5589 = vmatprep.subr.mxu1 %v6137_v1  ;;  %v6306_v2 = vld [vmem:[#allocation2 + $0x38] sm:$0xff] }
  0x44   : > { %5165 = vmatmul.mubr.msk.f32.gmra.mrb[2].mxu0 %vm509_vm0, %v6287_v29  ;;  %5115 = vmatprep.mubr.msk.f32.mxu1 %vm509_vm0, %v6287_v29  ;;  %v6308_v4 = vld [vmem:[#allocation2 + $0x40] sm:$0xff] }
  0x45   : > { %5167 = vmatprep.mubr.msk.f32.mxu0 %vm509_vm0, %v6291_v33  ;;  %v6318_v10 = vld [vmem:[#allocation2 + $0x48] sm:$0xff] }
  0x46   : > { %v6320_v15 = vld [vmem:[#allocation2 + $0x50] sm:$0xff] }
  0x47   : > { %5116 = vmatmul.mubr.msk.f32.gmra.mrb[4].mxu1 %vm509_vm0, %v6291_v33  ;;  %v6330_v44 = vld [vmem:[#allocation2 + $0x58] sm:$0xff] }
  0x48   : > { %v5858_v40 = vpop.eup %5857  ;;  %5168 = vmatmul.mubr.msk.f32.gmra.mrb[4].mxu0 %vm509_vm0, %v6306_v2  ;;  %5118 = vmatprep.mubr.msk.f32.mxu1 %vm509_vm0, %v6306_v2  ;;  %v6339_v49 = vld [vmem:[#allocation2 + $0x60] sm:$0xff] }
  0x49   : > { %v5860_v41 = vpop.eup %5859  ;;  %5170 = vmatprep.mubr.msk.f32.mxu0 %vm509_vm0, %v6308_v4  ;;  %v458_v34 = vmul.f32 %v5858_v40, %v426_v9  ;;  %v543_v6 = vld [vmem:[#allocation2 + $0x68] sm:$0xff] }
  0x4a   : > { %v5862_v36 = vpop.eup %5861  ;;  %v459_v37 = vmul.f32 %v5860_v41, %v427_v17 }
  0x4b   : > { %5119 = vmatmul.mubr.msk.f32.gmra.mrb[6].mxu1 %vm509_vm0, %v6308_v4  ;;  %v474_v39 = vsub.f32 2.0, %v458_v34  ;;  %v460_v42 = vmul.f32 %v5862_v36, %v428_v18 }
  0x4c   : > { %5171 = vmatmul.mubr.msk.f32.gmra.mrb[6].mxu0 %vm509_vm0, %v6318_v10  ;;  %5121 = vmatprep.mubr.msk.f32.mxu1 %vm509_vm0, %v6318_v10  ;;  %v475_v21 = vsub.f32 2.0, %v459_v37 }
  0x4d   : > { %5173 = vmatprep.mubr.msk.f32.mxu0 %vm509_vm0, %v6320_v15  ;;  %v490_v46 = vmul.f32 %v5858_v40, %v474_v39  ;;  %v476_v25 = vsub.f32 2.0, %v460_v42 }
  0x4e   : > { %v491_v47 = vmul.f32 %v5860_v41, %v475_v21 }
  0x4f   : > { %5122 = vmatmul.mubr.msk.f32.gmra.mrb[8].mxu1 %vm509_vm0, %v6320_v15  ;;  %v506_v5 = vmul.f32 %v490_v46, %v6224_v61  ;;  %v492_v30 = vmul.f32 %v5862_v36, %v476_v25  ;;  %v544_v61 = vld [vmem:[#allocation2 + $0x70] sm:$0xff] }
  0x50   : > { %5174 = vmatmul.mubr.msk.f32.gmra.mrb[8].mxu0 %vm509_vm0, %v6330_v44  ;;  %5124 = vmatprep.mubr.msk.f32.mxu1 %vm509_vm0, %v6330_v44  ;;  %v507_v50 = vmul.f32 %v491_v47, %v6227_v0 }
  0x51   : > { %5187 = vmatprep.mubr.msk.f32.mxu0 %vm509_vm0, %v6267_v24  ;;  %527 = vst.msk [vmem:[#allocation2 + $0x78] sm:$0xff] %vm509_vm0, %v506_v5  ;;  %v508_v32 = vmul.f32 %v492_v30, %v6230_v11 }
  0x52   : > { %528 = vst.msk [vmem:[#allocation2 + $0x80] sm:$0xff] %vm509_vm0, %v507_v50 }
  0x53   : > { %5125 = vmatmul.mubr.msk.f32.gmra.mrb[10].mxu1 %vm509_vm0, %v6339_v49  ;;  %529 = vst.msk [vmem:[#allocation2 + $0x88] sm:$0xff] %vm509_vm0, %v508_v32 }
  0x54   : > { %5188 = vmatmul.mubr.msk.f32.vlgmr.msra.gmra.mrb[0].mxu0 %vm509_vm0, %v6280_v63  ;;  %5127 = vmatprep.mubr.msk.f32.mxu1 %vm509_vm0, %v543_v6 }
  0x55   : > { %5212 = vmatpush3.msra.mxu0 %v6274_v26  ;;  %5190 = vmatprep.mubr.msk.f32.mxu0 %vm509_vm0, %v6287_v29 }
  0x57   : > { %5128 = vmatmul.mubr.msk.f32.gmra.mrb[12].mxu1 %vm509_vm0, %v544_v61 }
  0x58   : > { %5191 = vmatmul.mubr.msk.f32.gmra.mrb[2].mxu0 %vm509_vm0, %v6291_v33  ;;  %v545_v0 = vld [vmem:[#allocation2 + $0x78] sm:$0xff] }
  0x59   : > { %5130 = vmatprep.mubr.msk.f32.mxu1 %vm509_vm0, %v545_v0  ;;  %v547_v11 = vld [vmem:[#allocation2 + $0x80] sm:$0xff]  ;;  %5193 = vmatprep.mubr.msk.f32.mxu0 %vm509_vm0, %v6306_v2 }
  0x5b   : > { %5131 = vmatmul.mubr.msk.f32.gmra.mrb[14].mxu1 %vm509_vm0, %v547_v11 }
  0x5c   : > { %5194 = vmatmul.mubr.msk.f32.gmra.mrb[4].mxu0 %vm509_vm0, %v6308_v4  ;;  %5135 = vmatprep.mubr.msk.f32.mxu1 %vm509_vm0, %v530_v51 }
  0x5d   : > { %5196 = vmatprep.mubr.msk.f32.mxu0 %vm509_vm0, %v6318_v10 }
  0x5f   : > { %5136 = vmatmul.mubr.msk.f32.vlgmr.msra.gmra.mrb[0].mxu1 %vm509_vm0, %v6176_v8  ;;  %v1133_v8 = vld [vmem:[#allocation2 + $0x90] sm:$0xff] }
  0x60   : > { %5197 = vmatmul.mubr.msk.f32.gmra.mrb[6].mxu0 %vm509_vm0, %v6320_v15  ;;  %5138 = vmatprep.mubr.msk.f32.mxu1 %vm509_vm0, %v6259_v60 }
  0x61   : > { %5199 = vmatprep.mubr.msk.f32.mxu0 %vm509_vm0, %v6330_v44  ;;  %5590 = vmatpush3.msra.mxu1 %v6137_v1  ;;  %v1132_v1 = vld [vmem:[#allocation2 + $0x88] sm:$0xff] }
  0x62   : > { %5518 = vmatprep.subr.bf16.mxu1 %v5517_v35 }
  0x63   : > { %5139 = vmatmul.mubr.msk.f32.gmra.mrb[2].mxu1 %vm509_vm0, %v6267_v24 }
  0x64   : > { %5200 = vmatmul.mubr.msk.f32.gmra.mrb[8].mxu0 %vm509_vm0, %v6339_v49  ;;  %5141 = vmatprep.mubr.msk.f32.mxu1 %vm509_vm0, %v6280_v63 }
  0x65   : > { %5202 = vmatprep.mubr.msk.f32.mxu0 %vm509_vm0, %v543_v6 }
  0x67   : > { %5142 = vmatmul.mubr.msk.f32.gmra.mrb[4].mxu1 %vm509_vm0, %v6287_v29 }
  0x68   : > { %5203 = vmatmul.mubr.msk.f32.gmra.mrb[10].mxu0 %vm509_vm0, %v544_v61  ;;  %5144 = vmatprep.mubr.msk.f32.mxu1 %vm509_vm0, %v6291_v33 }
  0x69   : > { %5205 = vmatprep.mubr.msk.f32.mxu0 %vm509_vm0, %v545_v0 }
  0x6b   : > { %5145 = vmatmul.mubr.msk.f32.gmra.mrb[6].mxu1 %vm509_vm0, %v6306_v2 }
  0x6c   : > { %5206 = vmatmul.mubr.msk.f32.gmra.mrb[12].mxu0 %vm509_vm0, %v547_v11  ;;  %5147 = vmatprep.mubr.msk.f32.mxu1 %vm509_vm0, %v6308_v4 }
  0x6d   : > { %5208 = vmatprep.mubr.msk.f32.mxu0 %vm509_vm0, %v1132_v1 }
  0x6f   : > { %5148 = vmatmul.mubr.msk.f32.gmra.mrb[8].mxu1 %vm509_vm0, %v6318_v10 }
  0x70   : > { %5209 = vmatmul.mubr.msk.f32.gmra.mrb[14].mxu0 %vm509_vm0, %v1133_v8  ;;  %5150 = vmatprep.mubr.msk.f32.mxu1 %vm509_vm0, %v6320_v15 }
  0x71   : > { %5213 = vmatprep.mubr.msk.f32.mxu0 %vm509_vm0, %v6280_v63 }
  0x73   : > { %5151 = vmatmul.mubr.msk.f32.gmra.mrb[10].mxu1 %vm509_vm0, %v6330_v44 }
  0x74   : > { %5214 = vmatmul.mubr.msk.f32.vlgmr.msra.gmra.mrb[0].mxu0 %vm509_vm0, %v6287_v29  ;;  %5153 = vmatprep.mubr.msk.f32.mxu1 %vm509_vm0, %v6339_v49 }
  0x75   : > { %5216 = vmatprep.mubr.msk.f32.mxu0 %vm509_vm0, %v6291_v33 }
  0x77   : > { %5154 = vmatmul.mubr.msk.f32.gmra.mrb[12].mxu1 %vm509_vm0, %v543_v6 }
  0x78   : > { %5217 = vmatmul.mubr.msk.f32.gmra.mrb[2].mxu0 %vm509_vm0, %v6306_v2  ;;  %5156 = vmatprep.mubr.msk.f32.mxu1 %vm509_vm0, %v544_v61 }
  0x79   : > { %5219 = vmatprep.mubr.msk.f32.mxu0 %vm509_vm0, %v6308_v4 }
  0x7b   : > { %5157 = vmatmul.mubr.msk.f32.gmra.mrb[14].mxu1 %vm509_vm0, %v545_v0 }
  0x7c   : > { %5220 = vmatmul.mubr.msk.f32.gmra.mrb[4].mxu0 %vm509_vm0, %v6318_v10  ;;  %5176 = vmatprep.mubr.msk.f32.mxu1 %vm509_vm0, %v6339_v49 }
  0x7d   : > { %5222 = vmatprep.mubr.msk.f32.mxu0 %vm509_vm0, %v6320_v15 }
  0x7f   : > { %5177 = vmatmul.mubr.msk.f32.vlgmr.msra.gmra.mrb[10].mxu1 %vm509_vm0, %v543_v6 }
  0x80   : > { %5223 = vmatmul.mubr.msk.f32.gmra.mrb[6].mxu0 %vm509_vm0, %v6330_v44  ;;  %5179 = vmatprep.mubr.msk.f32.mxu1 %vm509_vm0, %v544_v61 }
  0x81   : > { %5225 = vmatprep.mubr.msk.f32.mxu0 %vm509_vm0, %v6339_v49  ;;  %5520 = vmatpush3.bf16.msra.mxu1 %v5517_v35 }
  0x82   : > { %5522 = vmatprep.subr.bf16.mxu1 %v6472_v12 }
  0x83   : > { %5180 = vmatmul.mubr.msk.f32.gmra.mrb[12].mxu1 %vm509_vm0, %v545_v0 }
  0x84   : > { %5226 = vmatmul.mubr.msk.f32.gmra.mrb[8].mxu0 %vm509_vm0, %v543_v6  ;;  %5182 = vmatprep.mubr.msk.f32.mxu1 %vm509_vm0, %v547_v11 }
  0x85   : > { %5228 = vmatprep.mubr.msk.f32.mxu0 %vm509_vm0, %v544_v61 }
  0x87   : > { %5183 = vmatmul.mubr.msk.f32.gmra.mrb[14].mxu1 %vm509_vm0, %v1132_v1 }
  0x88   : > { %5229 = vmatmul.mubr.msk.f32.gmra.mrb[10].mxu0 %vm509_vm0, %v545_v0  ;;  %5241 = vmatprep.mubr.msk.f32.mxu1 %vm1755_vm1, %v6462_v54 }
  0x89   : > { %5231 = vmatprep.mubr.msk.f32.mxu0 %vm509_vm0, %v547_v11 }
  0x8c   : > { %5232 = vmatmul.mubr.msk.f32.gmra.mrb[12].mxu0 %vm509_vm0, %v1132_v1 }
  0x8d   : > { %5234 = vmatprep.mubr.msk.f32.mxu0 %vm509_vm0, %v1133_v8 }
  0x90   : > { %5235 = vmatmul.mubr.msk.f32.gmra.mrb[14].mxu0 %vm509_vm0, %v1360_v52 }
 0x132   : > { %v5137_v56 = vpop.f32.mrb[0].mxu1 }
 0x133   : > { %v812_v38 = vpop.f32.mrb[1].mxu1 }
 0x136   : > { %v5140_v57 = vpop.f32.mrb[2].mxu1 }
 0x137   : > { %v822_v58 = vpop.f32.mrb[3].mxu1 }
 0x13a   : > { %v5143_v13 = vpop.f32.mrb[4].mxu1 }
 0x13b   : > { %v832_v59 = vpop.f32.mrb[5].mxu1 }
 0x13e   : > { %v5146_v43 = vpop.f32.mrb[6].mxu1 }
 0x13f   : > { %v842_v62 = vpop.f32.mrb[7].mxu1 }
 0x142   : > { %v5149_v16 = vpop.f32.mrb[8].mxu1 }
 0x143   : > { %v852_v9 = vpop.f32.mrb[9].mxu1 }
 0x147   : > { %v5215_v14 = vpop.f32.mrb[0].mxu0 }
 0x148   : > { %v5591_v19 = vadd.f32 %v5215_v14, %v5137_v56  ;;  %v1477_v20 = vpop.f32.mrb[1].mxu0 }
 0x149   : > { %v5592_v17 = vadd.f32 %v1477_v20, %v812_v38 }
 0x14a   : > { %v6481_v60 = vadd.f32 %v5591_v19, %v6478_v45 }
 0x14b   : > { %v6484_v48 = vadd.f32 %v5592_v17, %v6478_v45  ;;  %v5218_v22 = vpop.f32.mrb[2].mxu0 }
 0x14c   : > { %v1596_v18 = vsub.f32 0.0, %v6481_v60  ;;  %v5593_v24 = vadd.f32 %v5218_v22, %v5140_v57  ;;  %v1487_v23 = vpop.f32.mrb[3].mxu0 }
 0x14d   : > { %v1595_v26 = vsub.f32 0.0, %v6484_v48  ;;  %v5594_v28 = vadd.f32 %v1487_v23, %v822_v58 }
 0x14e   : > { %v1612_v63 = vmin.f32 %v1596_v18, 60.0  ;;  %v6489_v27 = vadd.f32 %v5593_v24, %v6478_v45 }
 0x14f   : > { %v1611_v29 = vmin.f32 %v1595_v26, 60.0  ;;  %v6492_v31 = vadd.f32 %v5594_v28, %v6478_v45  ;;  %v5221_v33 = vpop.f32.mrb[4].mxu0 }
 0x150   : > { %v1629_v2 = vmul.f32 1.442695, %v1612_v63  ;;  %v1598_v4 = vsub.f32 0.0, %v6489_v27  ;;  %v5595_v40 = vadd.f32 %v5221_v33, %v5143_v13  ;;  %v1497_v41 = vpop.f32.mrb[5].mxu0 }
 0x151   : > { %v1627_v10 = vmul.f32 1.442695, %v1611_v29  ;;  %v1597_v34 = vsub.f32 0.0, %v6492_v31  ;;  %v5596_v36 = vadd.f32 %v1497_v41, %v832_v59 }
 0x152   : > { %5863 = vpow2.f32 %v1629_v2  ;;  %v1614_v15 = vmin.f32 %v1598_v4, 60.0  ;;  %v6497_v37 = vadd.f32 %v5595_v40, %v6478_v45  ;;  %v5178_v39 = vpop.f32.mrb[10].mxu1 }
 0x153   : > { %5865 = vpow2.f32 %v1627_v10  ;;  %v1613_v42 = vmin.f32 %v1597_v34, 60.0  ;;  %v6500_v21 = vadd.f32 %v5596_v36, %v6478_v45  ;;  %v1073_v44 = vpop.f32.mrb[11].mxu1  ;;  %v5224_v46 = vpop.f32.mrb[6].mxu0 }
 0x154   : > { %v1633_v25 = vmul.f32 1.442695, %v1614_v15  ;;  %v1600_v47 = vsub.f32 0.0, %v6497_v37  ;;  %v5597_v5 = vadd.f32 %v5224_v46, %v5146_v43  ;;  %v1507_v30 = vpop.f32.mrb[7].mxu0 }
 0x155   : > { %v1631_v49 = vmul.f32 1.442695, %v1613_v42  ;;  %v1599_v50 = vsub.f32 0.0, %v6500_v21  ;;  %v5598_v6 = vadd.f32 %v1507_v30, %v842_v62 }
 0x156   : > { %5867 = vpow2.f32 %v1633_v25  ;;  %v1616_v32 = vmin.f32 %v1600_v47, 60.0  ;;  %v6505_v61 = vadd.f32 %v5597_v5, %v6478_v45  ;;  %v5181_v0 = vpop.f32.mrb[12].mxu1 }
 0x157   : > { %5869 = vpow2.f32 %v1631_v49  ;;  %v1615_v11 = vmin.f32 %v1599_v50, 60.0  ;;  %v6508_v51 = vadd.f32 %v5598_v6, %v6478_v45  ;;  %v1083_v1 = vpop.f32.mrb[13].mxu1  ;;  %v5227_v8 = vpop.f32.mrb[8].mxu0 }
 0x158   : > { %v1637_v52 = vmul.f32 1.442695, %v1616_v32  ;;  %v1602_v53 = vsub.f32 0.0, %v6505_v61  ;;  %v5599_v7 = vadd.f32 %v5227_v8, %v5149_v16  ;;  %v1517_v35 = vpop.f32.mrb[9].mxu0 }
 0x159   : > { %v1635_v3 = vmul.f32 1.442695, %v1615_v11  ;;  %v1601_v55 = vsub.f32 0.0, %v6508_v51  ;;  %v5600_v56 = vadd.f32 %v1517_v35, %v852_v9 }
 0x15a   : > { %5871 = vpow2.f32 %v1637_v52  ;;  %v1618_v38 = vmin.f32 %v1602_v53, 60.0  ;;  %v6513_v57 = vadd.f32 %v5599_v7, %v6478_v45  ;;  %v5184_v58 = vpop.f32.mrb[14].mxu1 }
 0x15b   : > { %5873 = vpow2.f32 %v1635_v3  ;;  %v1617_v13 = vmin.f32 %v1601_v55, 60.0  ;;  %v6516_v59 = vadd.f32 %v5600_v56, %v6478_v45  ;;  %v1093_v43 = vpop.f32.mrb[15].mxu1  ;;  %v5230_v62 = vpop.f32.mrb[10].mxu0 }
 0x15c   : > { %v5864_v14 = vpop.eup %5863  ;;  %v1641_v16 = vmul.f32 1.442695, %v1618_v38  ;;  %v1604_v19 = vsub.f32 0.0, %v6513_v57  ;;  %v5601_v20 = vadd.f32 %v5230_v62, %v5178_v39  ;;  %v1527_v17 = vpop.f32.mrb[11].mxu0 }
 0x15d   : > { %v5866_v9 = vpop.eup %5865  ;;  %v1660_v22 = vadd.f32 1.0, %v5864_v14  ;;  %v1639_v18 = vmul.f32 1.442695, %v1617_v13  ;;  %v1603_v24 = vsub.f32 0.0, %v6516_v59  ;;  %v5602_v23 = vadd.f32 %v1527_v17, %v1073_v44 }
 0x15e   : > { %v1659_v26 = vadd.f32 1.0, %v5866_v9  ;;  %5875 = vpow2.f32 %v1641_v16  ;;  %v1620_v28 = vmin.f32 %v1604_v19, 60.0  ;;  %v6521_v63 = vadd.f32 %v5601_v20, %v6478_v45 }
 0x15f   : > { %5877 = vrcp.f32 %v1660_v22  ;;  %v1619_v29 = vmin.f32 %v1603_v24, 60.0  ;;  %v6524_v33 = vadd.f32 %v5602_v23, %v6478_v45  ;;  %v5233_v2 = vpop.f32.mrb[12].mxu0 }
 0x160   : > { %v5868_v4 = vpop.eup %5867  ;;  %5879 = vrcp.f32 %v1659_v26  ;;  %v1645_v40 = vmul.f32 1.442695, %v1620_v28  ;;  %v1606_v41 = vsub.f32 0.0, %v6521_v63  ;;  %v5603_v10 = vadd.f32 %v5233_v2, %v5181_v0  ;;  %v1537_v34 = vpop.f32.mrb[13].mxu0 }
 0x161   : > { %v5870_v36 = vpop.eup %5869  ;;  %v1662_v15 = vadd.f32 1.0, %v5868_v4  ;;  %5881 = vpow2.f32 %v1639_v18  ;;  %v1643_v39 = vmul.f32 1.442695, %v1619_v29  ;;  %v1605_v42 = vsub.f32 0.0, %v6524_v33 }
 0x162   : > { %v1661_v44 = vadd.f32 1.0, %v5870_v36  ;;  %5883 = vpow2.f32 %v1645_v40  ;;  %v1622_v46 = vmin.f32 %v1606_v41, 60.0  ;;  %v6529_v25 = vadd.f32 %v5603_v10, %v6478_v45 }
 0x163   : > { %5885 = vrcp.f32 %v1662_v15  ;;  %v1621_v47 = vmin.f32 %v1605_v42, 60.0  ;;  %v5604_v5 = vadd.f32 %v1537_v34, %v1083_v1  ;;  %v5236_v30 = vpop.f32.mrb[14].mxu0 }
 0x164   : > { %v5872_v49 = vpop.eup %5871  ;;  %5887 = vrcp.f32 %v1661_v44  ;;  %v1649_v50 = vmul.f32 1.442695, %v1622_v46  ;;  %v1608_v6 = vsub.f32 0.0, %v6529_v25  ;;  %v5605_v32 = vadd.f32 %v5236_v30, %v5184_v58  ;;  %v1547_v0 = vpop.f32.mrb[15].mxu0 }
 0x165   : > { %v5874_v11 = vpop.eup %5873  ;;  %v1664_v8 = vadd.f32 1.0, %v5872_v49  ;;  %5889 = vpow2.f32 %v1643_v39  ;;  %v1647_v52 = vmul.f32 1.442695, %v1621_v47  ;;  %v6533_v53 = vadd.f32 %v5604_v5, %v6478_v45 }
 0x166   : > { %v1663_v7 = vadd.f32 1.0, %v5874_v11  ;;  %5891 = vpow2.f32 %v1649_v50  ;;  %v1624_v35 = vmin.f32 %v1608_v6, 60.0  ;;  %v6536_v1 = vadd.f32 %v5605_v32, %v6478_v45 }
 0x167   : > { %5893 = vrcp.f32 %v1664_v8  ;;  %v1607_v3 = vsub.f32 0.0, %v6533_v53  ;;  %v5606_v55 = vadd.f32 %v1547_v0, %v1093_v43 }
 0x168   : > { %v5876_v56 = vpop.eup %5875  ;;  %5895 = vrcp.f32 %v1663_v7  ;;  %v1653_v38 = vmul.f32 1.442695, %v1624_v35  ;;  %v1610_v58 = vsub.f32 0.0, %v6536_v1 }
 0x169   : > { %v5878_v13 = vpop.eup %5877  ;;  %v1666_v62 = vadd.f32 1.0, %v5876_v56  ;;  %5897 = vpow2.f32 %v1647_v52  ;;  %v1623_v14 = vmin.f32 %v1607_v3, 60.0  ;;  %v6541_v16 = vadd.f32 %v5606_v55, %v6478_v45 }
 0x16a   : > { %v5880_v19 = vpop.eup %5879  ;;  %v1692_v20 = vmul.f32 %v5878_v13, %v1660_v22  ;;  %5899 = vpow2.f32 %v1653_v38  ;;  %v1626_v17 = vmin.f32 %v1610_v58, 60.0 }
 0x16b   : > { %v5882_v9 = vpop.eup %5881  ;;  %v1691_v18 = vmul.f32 %v5880_v19, %v1659_v26  ;;  %5901 = vrcp.f32 %v1666_v62  ;;  %v1651_v43 = vmul.f32 1.442695, %v1623_v14  ;;  %v1609_v24 = vsub.f32 0.0, %v6541_v16 }
 0x16c   : > { %v5884_v23 = vpop.eup %5883  ;;  %v1708_v28 = vsub.f32 2.0, %v1692_v20  ;;  %v1665_v29 = vadd.f32 1.0, %v5882_v9  ;;  %v1657_v2 = vmul.f32 1.442695, %v1626_v17 }
 0x16d   : > { %v5886_v4 = vpop.eup %5885  ;;  %v1707_v40 = vsub.f32 2.0, %v1691_v18  ;;  %v1668_v41 = vadd.f32 1.0, %v5884_v23  ;;  %5903 = vpow2.f32 %v1651_v43  ;;  %v1625_v45 = vmin.f32 %v1609_v24, 60.0 }
 0x16e   : > { %v5888_v10 = vpop.eup %5887  ;;  %v1724_v34 = vmul.f32 %v5878_v13, %v1708_v28  ;;  %v1694_v22 = vmul.f32 %v5886_v4, %v1662_v15  ;;  %5905 = vrcp.f32 %v1665_v29 }
 0x16f   : > { %v5890_v36 = vpop.eup %5889  ;;  %v1723_v39 = vmul.f32 %v5880_v19, %v1707_v40  ;;  %v1693_v26 = vmul.f32 %v5888_v10, %v1661_v44  ;;  %5907 = vrcp.f32 %v1668_v41  ;;  %v1655_v42 = vmul.f32 1.442695, %v1625_v45 }
 0x170   : > { %v5892_v46 = vpop.eup %5891  ;;  %v1740_v47 = vmul.f32 %v1724_v34, %v6481_v60  ;;  %v1710_v5 = vsub.f32 2.0, %v1694_v22  ;;  %v6545_v30 = vadd.f32 1.0, %v5890_v36  ;;  %5909 = vpow2.f32 %v1657_v2 }
 0x171   : > { %v5894_v49 = vpop.eup %5893  ;;  %v1739_v50 = vmul.f32 %v1723_v39, %v6484_v48  ;;  %v1709_v6 = vsub.f32 2.0, %v1693_v26  ;;  %v6548_v32 = vadd.f32 1.0, %v5892_v46  ;;  %5911 = vpow2.f32 %v1655_v42 }
 0x172   : > { %v5896_v15 = vpop.eup %5895  ;;  %1761 = vst.msk [vmem:[#allocation3 + $0x18] sm:$0xff] %vm1755_vm1, %v1740_v47  ;;  %v1726_v44 = vmul.f32 %v5886_v4, %v1710_v5  ;;  %v1696_v0 = vmul.f32 %v5894_v49, %v1664_v8  ;;  %5913 = vrcp.f32 %v6545_v30 }
 0x173   : > { %v5898_v11 = vpop.eup %5897  ;;  %1760 = vst.msk [vmem:[#allocation3 + $0x10] sm:$0xff] %vm1755_vm1, %v1739_v50  ;;  %v1725_v60 = vmul.f32 %v5888_v10, %v1709_v6  ;;  %v1695_v52 = vmul.f32 %v5896_v15, %v1663_v7  ;;  %5915 = vrcp.f32 %v6548_v32  ;;  %v4660_v7 = vld [vmem:[%s7381_s3 + $0x20] sm:$0xff] }
 0x174   : > { %v5900_v35 = vpop.eup %5899  ;;  %v1742_v48 = vmul.f32 %v1726_v44, %v6489_v27  ;;  %v1712_v3 = vsub.f32 2.0, %v1696_v0  ;;  %v1669_v55 = vadd.f32 1.0, %v5898_v11  ;;  %v4661_v27 = vld [vmem:[%s7381_s3 + $0x28] sm:$0xff] }
 0x175   : > { %v5902_v56 = vpop.eup %5901  ;;  %v1741_v38 = vmul.f32 %v1725_v60, %v6492_v31  ;;  %v1711_v58 = vsub.f32 2.0, %v1695_v52  ;;  %v1672_v13 = vadd.f32 1.0, %v5900_v35  ;;  %v6566_v23 = vpack.c.bf16 %v4661_v27, %v4660_v7 }
 0x176   : > { %1763 = vst.msk [vmem:[#allocation3 + $0x28] sm:$0xff] %vm1755_vm1, %v1742_v48  ;;  %v1728_v8 = vmul.f32 %v5894_v49, %v1712_v3  ;;  %v1698_v14 = vmul.f32 %v5902_v56, %v1666_v62  ;;  %5917 = vrcp.f32 %v1669_v55 }
 0x177   : > { %v5904_v19 = vpop.eup %5903  ;;  %1762 = vst.msk [vmem:[#allocation3 + $0x20] sm:$0xff] %vm1755_vm1, %v1741_v38  ;;  %v1727_v20 = vmul.f32 %v5896_v15, %v1711_v58  ;;  %5919 = vrcp.f32 %v1672_v13 }
 0x178   : > { %v5906_v31 = vpop.eup %5905  ;;  %v1744_v17 = vmul.f32 %v1728_v8, %v6497_v37  ;;  %v1714_v9 = vsub.f32 2.0, %v1698_v14  ;;  %v1671_v18 = vadd.f32 1.0, %v5904_v19 }
 0x179   : > { %v5908_v62 = vpop.eup %5907  ;;  %v1743_v43 = vmul.f32 %v1727_v20, %v6500_v21  ;;  %v1697_v24 = vmul.f32 %v5906_v31, %v1665_v29  ;;  %v6574_v21 = vld [vmem:[#allocation3 + $0x18] sm:$0xff] }
 0x17a   : > { %v5910_v28 = vpop.eup %5909  ;;  %1765 = vst.msk [vmem:[#allocation3 + $0x38] sm:$0xff] %vm1755_vm1, %v1744_v17  ;;  %v1730_v2 = vmul.f32 %v5902_v56, %v1714_v9  ;;  %v1700_v4 = vmul.f32 %v5908_v62, %v1668_v41  ;;  %5921 = vrcp.f32 %v1671_v18  ;;  %v6569_v40 = vld [vmem:[#allocation3 + $0x10] sm:$0xff] }
 0x17b   : > { %v5912_v45 = vpop.eup %5911  ;;  %1764 = vst.msk [vmem:[#allocation3 + $0x30] sm:$0xff] %vm1755_vm1, %v1743_v43  ;;  %v1713_v37 = vsub.f32 2.0, %v1697_v24  ;;  %v1674_v10 = vadd.f32 1.0, %v5910_v28  ;;  %5242 = vmatmul.mubr.msk.f32.vlgmr.msra.gmra.mrb[16].mxu1 %vm1755_vm1, %v6569_v40  ;;  %v1776_v28 = vld [vmem:[#allocation3] sm:$0xff] }
 0x17c   : > { %v5914_v29 = vpop.eup %5913  ;;  %v1746_v34 = vmul.f32 %v1730_v2, %v6505_v61  ;;  %v1716_v22 = vsub.f32 2.0, %v1700_v4  ;;  %v1673_v36 = vadd.f32 1.0, %v5912_v45  ;;  %5524 = vmatpush3.bf16.msra.mxu1 %v6472_v12  ;;  %5244 = vmatprep.mubr.msk.f32.mxu1 %vm1755_vm1, %v6574_v21  ;;  %v4678_v4 = vld [vmem:[%s7381_s3 + $0x30] sm:$0xff]  ;;  %v4679_v45 = vld [vmem:[%s7381_s3 + $0x38] sm:$0xff] }
 0x17d   : > { %v5916_v41 = vpop.eup %5915  ;;  %v1729_v39 = vmul.f32 %v5906_v31, %v1713_v37  ;;  %v1699_v26 = vmul.f32 %v5914_v29, %v6545_v30  ;;  %5923 = vrcp.f32 %v1674_v10  ;;  %5526 = vmatprep.subr.bf16.mxu1 %v6566_v23  ;;  %v6589_v5 = vld [vmem:[#allocation3 + $0x28] sm:$0xff]  ;;  %v5529_v37 = vpack.c.bf16 %v4679_v45, %v4678_v4 }
 0x17e   : > { %1767 = vst.msk [vmem:[#allocation3 + $0x48] sm:$0xff] %vm1755_vm1, %v1746_v34  ;;  %v1732_v42 = vmul.f32 %v5908_v62, %v1716_v22  ;;  %v1702_v46 = vmul.f32 %v5916_v41, %v6548_v32  ;;  %5925 = vrcp.f32 %v1673_v36  ;;  %v6584_v61 = vld [vmem:[#allocation3 + $0x20] sm:$0xff]  ;;  %v4715_v34 = vld [vmem:[%s7383_s5 + $0x10] sm:$0xff]  ;;  %v4716_v22 = vld [vmem:[%s7383_s5 + $0x18] sm:$0xff] }
 0x17f   : > { %v1745_v12 = vmul.f32 %v1729_v39, %v6508_v51  ;;  %v1715_v47 = vsub.f32 2.0, %v1699_v26  ;;  %5245 = vmatmul.mubr.msk.f32.gmra.mrb[18].mxu1 %vm1755_vm1, %v6584_v61  ;;  %v3042_v39 = vld [vmem:[%s7383_s5] sm:$0xff]  ;;  %v3043_v26 = vld [vmem:[%s7383_s5 + $0x8] sm:$0xff] }
 0x180   : > { %v5918_v30 = vpop.eup %5917  ;;  %v1748_v49 = vmul.f32 %v1732_v42, %v6513_v57  ;;  %v1718_v50 = vsub.f32 2.0, %v1702_v46  ;;  %5247 = vmatprep.mubr.msk.f32.mxu1 %vm1755_vm1, %v6589_v5  ;;  %v6804_v42 = vpack.c.bf16 %v3043_v26, %v3042_v39  ;;  %v6810_v46 = vld [vmem:[%s7382_s4] ss:$0 sm:$0xff] }
 0x181   : > { %v5920_v6 = vpop.eup %5919  ;;  %1766 = vst.msk [vmem:[#allocation3 + $0x40] sm:$0xff] %vm1755_vm1, %v1745_v12  ;;  %v1731_v32 = vmul.f32 %v5914_v29, %v1715_v47  ;;  %v1701_v15 = vmul.f32 %v5918_v30, %v1669_v55  ;;  %v6601_v57 = vld [vmem:[#allocation3 + $0x38] sm:$0xff] }
 0x182   : > { %1769 = vst.msk [vmem:[#allocation3 + $0x58] sm:$0xff] %vm1755_vm1, %v1748_v49  ;;  %v1734_v51 = vmul.f32 %v5916_v41, %v1718_v50  ;;  %v1704_v44 = vmul.f32 %v5920_v6, %v1672_v13  ;;  %v6596_v0 = vld [vmem:[#allocation3 + $0x30] sm:$0xff]  ;;  %v2610_v29 = vld [vmem:[#allocation3 + $0x98] sm:$0xff]  ;;  %v6794_v41 = vld [vmem:[#allocation4 + $0x8] sm:$0xff] }
 0x183   : > { %v1747_v11 = vmul.f32 %v1731_v32, %v6516_v59  ;;  %v1717_v60 = vsub.f32 2.0, %v1701_v15  ;;  %5248 = vmatmul.mubr.msk.f32.gmra.mrb[20].mxu1 %vm1755_vm1, %v6596_v0  ;;  %5381 = vmatprep.mubr.msk.f32.mxu0 %vm1755_vm1, %v6794_v41 }
 0x184   : > { %v5922_v52 = vpop.eup %5921  ;;  %v1750_v35 = vmul.f32 %v1734_v51, %v6521_v63  ;;  %v1720_v48 = vsub.f32 2.0, %v1704_v44  ;;  %5250 = vmatprep.mubr.msk.f32.mxu1 %vm1755_vm1, %v6601_v57 }
 0x185   : > { %1768 = vst.msk [vmem:[#allocation3 + $0x50] sm:$0xff] %vm1755_vm1, %v1747_v11  ;;  %v1733_v3 = vmul.f32 %v5918_v30, %v1717_v60  ;;  %v1703_v55 = vmul.f32 %v5922_v52, %v1671_v18  ;;  %v6615_v19 = vld [vmem:[#allocation3 + $0x48] sm:$0xff] }
 0x186   : > { %1771 = vst.msk [vmem:[#allocation3 + $0x68] sm:$0xff] %vm1755_vm1, %v1750_v35  ;;  %v1736_v59 = vmul.f32 %v5920_v6, %v1720_v48 }
 0x187   : > { %v5924_v56 = vpop.eup %5923  ;;  %v1749_v38 = vmul.f32 %v1733_v3, %v6524_v33  ;;  %v1719_v58 = vsub.f32 2.0, %v1703_v55 }
 0x188   : > { %v5926_v13 = vpop.eup %5925  ;;  %v1752_v8 = vmul.f32 %v1736_v59, %v6529_v25  ;;  %v1706_v14 = vmul.f32 %v5924_v56, %v1674_v10  ;;  %v6610_v63 = vld [vmem:[#allocation3 + $0x40] sm:$0xff] }
 0x189   : > { %1770 = vst.msk [vmem:[#allocation3 + $0x60] sm:$0xff] %vm1755_vm1, %v1749_v38  ;;  %v1735_v7 = vmul.f32 %v5922_v52, %v1719_v58  ;;  %v1705_v27 = vmul.f32 %v5926_v13, %v1673_v36  ;;  %5251 = vmatmul.mubr.msk.f32.gmra.mrb[22].mxu1 %vm1755_vm1, %v6610_v63  ;;  %v6626_v18 = vld [vmem:[#allocation3 + $0x58] sm:$0xff]  ;;  %v5537_v36 = vpack.c.bf16 %v4716_v22, %v4715_v34 }
 0x18a   : > { %1773 = vst.msk [vmem:[#allocation3 + $0x78] sm:$0xff] %vm1755_vm1, %v1752_v8  ;;  %v1722_v20 = vsub.f32 2.0, %v1706_v14  ;;  %5253 = vmatprep.mubr.msk.f32.mxu1 %vm1755_vm1, %v6615_v19 }
 0x18b   : > { %v1751_v33 = vmul.f32 %v1735_v7, %v6533_v53  ;;  %v1721_v25 = vsub.f32 2.0, %v1705_v27  ;;  %5538 = vmatprep.subr.bf16.mxu0 %v5537_v36 }
 0x18c   : > { %v1738_v31 = vmul.f32 %v5924_v56, %v1722_v20  ;;  %v6621_v17 = vld [vmem:[#allocation3 + $0x50] sm:$0xff]  ;;  %5540 = vmatpush3.bf16.msra.mxu0 %v5537_v36 }
 0x18d   : > { %1772 = vst.msk [vmem:[#allocation3 + $0x70] sm:$0xff] %vm1755_vm1, %v1751_v33  ;;  %v1737_v9 = vmul.f32 %v5926_v13, %v1721_v25  ;;  %5254 = vmatmul.mubr.msk.f32.gmra.mrb[24].mxu1 %vm1755_vm1, %v6621_v17  ;;  %v6638_v24 = vld [vmem:[#allocation3 + $0x68] sm:$0xff]  ;;  %5542 = vmatprep.subr.bf16.mxu0 %v6804_v42 }
 0x18e   : > { %v1754_v62 = vmul.f32 %v1738_v31, %v6536_v1  ;;  %5256 = vmatprep.mubr.msk.f32.mxu1 %vm1755_vm1, %v6626_v18 }
 0x18f   : > { %v1753_v43 = vmul.f32 %v1737_v9, %v6541_v16 }
 0x190   : > { %1775 = vst.msk [vmem:[#allocation3 + $0x88] sm:$0xff] %vm1755_vm1, %v1754_v62  ;;  %v6633_v53 = vld [vmem:[#allocation3 + $0x60] sm:$0xff] }
 0x191   : > { %1774 = vst.msk [vmem:[#allocation3 + $0x80] sm:$0xff] %vm1755_vm1, %v1753_v43  ;;  %5257 = vmatmul.mubr.msk.f32.gmra.mrb[26].mxu1 %vm1755_vm1, %v6633_v53  ;;  %v6646_v16 = vld [vmem:[#allocation3 + $0x78] sm:$0xff] }
 0x192   : > { %5259 = vmatprep.mubr.msk.f32.mxu1 %vm1755_vm1, %v6638_v24 }
 0x194   : > { %v6642_v1 = vld [vmem:[#allocation3 + $0x70] sm:$0xff] }
 0x195   : > { %5260 = vmatmul.mubr.msk.f32.gmra.mrb[28].mxu1 %vm1755_vm1, %v6642_v1 }
 0x196   : > { %5262 = vmatprep.mubr.msk.f32.mxu1 %vm1755_vm1, %v6646_v16 }
 0x198   : > { %v6650_v2 = vld [vmem:[#allocation3 + $0x80] sm:$0xff] }
 0x199   : > { %5263 = vmatmul.mubr.msk.f32.gmra.mrb[30].mxu1 %vm1755_vm1, %v6650_v2 }
 0x19a   : > { %5269 = vmatprep.mubr.msk.f32.mxu1 %vm1755_vm1, %v1776_v28 }
 0x19d   : > { %5270 = vmatmul.mubr.msk.f32.vlgmr.msra.gmra.mrb[16].mxu1 %vm1755_vm1, %v6462_v54  ;;  %v4696_v54 = vld [vmem:[%s7381_s3 + $0x40] sm:$0xff] }
 0x19e   : > { %5528 = vmatpush3.bf16.msra.mxu1 %v6566_v23  ;;  %5272 = vmatprep.mubr.msk.f32.mxu1 %vm1755_vm1, %v6569_v40  ;;  %v4697_v23 = vld [vmem:[%s7381_s3 + $0x48] sm:$0xff] }
 0x19f   : > { %5530 = vmatprep.subr.bf16.mxu1 %v5529_v37  ;;  %v5533_v10 = vpack.c.bf16 %v4697_v23, %v4696_v54 }
 0x1a1   : > { %5273 = vmatmul.mubr.msk.f32.gmra.mrb[18].mxu1 %vm1755_vm1, %v6574_v21 }
 0x1a2   : > { %5275 = vmatprep.mubr.msk.f32.mxu1 %vm1755_vm1, %v6584_v61 }
 0x1a5   : > { %5276 = vmatmul.mubr.msk.f32.gmra.mrb[20].mxu1 %vm1755_vm1, %v6589_v5 }
 0x1a6   : > { %5278 = vmatprep.mubr.msk.f32.mxu1 %vm1755_vm1, %v6596_v0 }
 0x1a9   : > { %5279 = vmatmul.mubr.msk.f32.gmra.mrb[22].mxu1 %vm1755_vm1, %v6601_v57 }
 0x1aa   : > { %5281 = vmatprep.mubr.msk.f32.mxu1 %vm1755_vm1, %v6610_v63 }
 0x1ad   : > { %5282 = vmatmul.mubr.msk.f32.gmra.mrb[24].mxu1 %vm1755_vm1, %v6615_v19 }
 0x1ae   : > { %5284 = vmatprep.mubr.msk.f32.mxu1 %vm1755_vm1, %v6621_v17 }
 0x1b1   : > { %5285 = vmatmul.mubr.msk.f32.gmra.mrb[26].mxu1 %vm1755_vm1, %v6626_v18 }
 0x1b2   : > { %5287 = vmatprep.mubr.msk.f32.mxu1 %vm1755_vm1, %v6633_v53 }
 0x1b5   : > { %5288 = vmatmul.mubr.msk.f32.gmra.mrb[28].mxu1 %vm1755_vm1, %v6638_v24 }
 0x1b6   : > { %5290 = vmatprep.mubr.msk.f32.mxu1 %vm1755_vm1, %v6642_v1 }
 0x1b9   : > { %5291 = vmatmul.mubr.msk.f32.gmra.mrb[30].mxu1 %vm1755_vm1, %v6646_v16 }
 0x1ba   : > { %5297 = vmatprep.mubr.msk.f32.mxu1 %vm1755_vm1, %v6569_v40  ;;  %v2154_v40 = vld [vmem:[#allocation3 + $0x88] sm:$0xff] }
 0x1bd   : > { %5298 = vmatmul.mubr.msk.f32.vlgmr.msra.gmra.mrb[16].mxu1 %vm1755_vm1, %v6574_v21 }
 0x1be   : > { %5532 = vmatpush3.bf16.msra.mxu1 %v5529_v37  ;;  %5300 = vmatprep.mubr.msk.f32.mxu1 %vm1755_vm1, %v6584_v61 }
 0x1bf   : > { %5534 = vmatprep.subr.bf16.mxu1 %v5533_v10 }
 0x1c1   : > { %5301 = vmatmul.mubr.msk.f32.gmra.mrb[18].mxu1 %vm1755_vm1, %v6589_v5 }
 0x1c2   : > { %5303 = vmatprep.mubr.msk.f32.mxu1 %vm1755_vm1, %v6596_v0 }
 0x1c5   : > { %5304 = vmatmul.mubr.msk.f32.gmra.mrb[20].mxu1 %vm1755_vm1, %v6601_v57 }
 0x1c6   : > { %5306 = vmatprep.mubr.msk.f32.mxu1 %vm1755_vm1, %v6610_v63 }
 0x1c9   : > { %5307 = vmatmul.mubr.msk.f32.gmra.mrb[22].mxu1 %vm1755_vm1, %v6615_v19 }
 0x1ca   : > { %5309 = vmatprep.mubr.msk.f32.mxu1 %vm1755_vm1, %v6621_v17 }
 0x1cd   : > { %5310 = vmatmul.mubr.msk.f32.gmra.mrb[24].mxu1 %vm1755_vm1, %v6626_v18 }
 0x1ce   : > { %5312 = vmatprep.mubr.msk.f32.mxu1 %vm1755_vm1, %v6633_v53 }
 0x1d1   : > { %5313 = vmatmul.mubr.msk.f32.gmra.mrb[26].mxu1 %vm1755_vm1, %v6638_v24 }
 0x1d2   : > { %5315 = vmatprep.mubr.msk.f32.mxu1 %vm1755_vm1, %v6642_v1 }
 0x1d5   : > { %5316 = vmatmul.mubr.msk.f32.gmra.mrb[28].mxu1 %vm1755_vm1, %v6646_v16 }
 0x1d6   : > { %5318 = vmatprep.mubr.msk.f32.mxu1 %vm1755_vm1, %v6650_v2 }
 0x1d9   : > { %5319 = vmatmul.mubr.msk.f32.gmra.mrb[30].mxu1 %vm1755_vm1, %v2154_v40 }
 0x1da   : > { %5325 = vmatprep.mubr.msk.f32.mxu1 %vm1755_vm1, %v6574_v21  ;;  %v2382_v21 = vld [vmem:[#allocation3 + $0x90] sm:$0xff] }
 0x1dd   : > { %5326 = vmatmul.mubr.msk.f32.vlgmr.msra.gmra.mrb[16].mxu1 %vm1755_vm1, %v6584_v61 }
 0x1de   : > { %5536 = vmatpush3.bf16.msra.mxu1 %v5533_v10  ;;  %5328 = vmatprep.mubr.msk.f32.mxu1 %vm1755_vm1, %v6589_v5 }
 0x1e1   : > { %5329 = vmatmul.mubr.msk.f32.gmra.mrb[18].mxu1 %vm1755_vm1, %v6596_v0 }
 0x1e2   : > { %5331 = vmatprep.mubr.msk.f32.mxu1 %vm1755_vm1, %v6601_v57 }
 0x1e5   : > { %5332 = vmatmul.mubr.msk.f32.gmra.mrb[20].mxu1 %vm1755_vm1, %v6610_v63 }
 0x1e6   : > { %5334 = vmatprep.mubr.msk.f32.mxu1 %vm1755_vm1, %v6615_v19 }
 0x1e9   : > { %5335 = vmatmul.mubr.msk.f32.gmra.mrb[22].mxu1 %vm1755_vm1, %v6621_v17 }
 0x1ea   : > { %5337 = vmatprep.mubr.msk.f32.mxu1 %vm1755_vm1, %v6626_v18 }
 0x1ed   : > { %5338 = vmatmul.mubr.msk.f32.gmra.mrb[24].mxu1 %vm1755_vm1, %v6633_v53 }
 0x1ee   : > { %5340 = vmatprep.mubr.msk.f32.mxu1 %vm1755_vm1, %v6638_v24 }
 0x1f1   : > { %5341 = vmatmul.mubr.msk.f32.gmra.mrb[26].mxu1 %vm1755_vm1, %v6642_v1 }
 0x1f2   : > { %5343 = vmatprep.mubr.msk.f32.mxu1 %vm1755_vm1, %v6646_v16 }
 0x1f5   : > { %5344 = vmatmul.mubr.msk.f32.gmra.mrb[28].mxu1 %vm1755_vm1, %v6650_v2 }
 0x1f6   : > { %5346 = vmatprep.mubr.msk.f32.mxu1 %vm1755_vm1, %v2154_v40 }
 0x1f9   : > { %5347 = vmatmul.mubr.msk.f32.gmra.mrb[30].mxu1 %vm1755_vm1, %v2382_v21 }
 0x1fa   : > { %5353 = vmatprep.mubr.msk.f32.mxu1 %vm1755_vm1, %v6584_v61 }
 0x1fd   : > { %5354 = vmatmul.mubr.msk.f32.vlgmr.msra.gmra.mrb[16].mxu1 %vm1755_vm1, %v6589_v5 }
 0x1fe   : > { %5356 = vmatprep.mubr.msk.f32.mxu1 %vm1755_vm1, %v6596_v0 }
 0x201   : > { %5357 = vmatmul.mubr.msk.f32.gmra.mrb[18].mxu1 %vm1755_vm1, %v6601_v57 }
 0x202   : > { %5359 = vmatprep.mubr.msk.f32.mxu1 %vm1755_vm1, %v6610_v63 }
 0x205   : > { %5360 = vmatmul.mubr.msk.f32.gmra.mrb[20].mxu1 %vm1755_vm1, %v6615_v19 }
 0x206   : > { %5362 = vmatprep.mubr.msk.f32.mxu1 %vm1755_vm1, %v6621_v17 }
 0x209   : > { %5363 = vmatmul.mubr.msk.f32.gmra.mrb[22].mxu1 %vm1755_vm1, %v6626_v18 }
 0x20a   : > { %5365 = vmatprep.mubr.msk.f32.mxu1 %vm1755_vm1, %v6633_v53 }
 0x20d   : > { %5366 = vmatmul.mubr.msk.f32.gmra.mrb[24].mxu1 %vm1755_vm1, %v6638_v24 }
 0x20e   : > { %5368 = vmatprep.mubr.msk.f32.mxu1 %vm1755_vm1, %v6642_v1 }
 0x211   : > { %5369 = vmatmul.mubr.msk.f32.gmra.mrb[26].mxu1 %vm1755_vm1, %v6646_v16 }
 0x212   : > { %5371 = vmatprep.mubr.msk.f32.mxu1 %vm1755_vm1, %v6650_v2 }
 0x215   : > { %5372 = vmatmul.mubr.msk.f32.gmra.mrb[28].mxu1 %vm1755_vm1, %v2154_v40 }
 0x216   : > { %5374 = vmatprep.mubr.msk.f32.mxu1 %vm1755_vm1, %v2382_v21 }
 0x219   : > { %5375 = vmatmul.mubr.msk.f32.gmra.mrb[30].mxu1 %vm1755_vm1, %v2610_v29 }
 0x2d0   : > { %v5355_v61 = vpop.f32.mrb[16].mxu1 }
 0x2d1   : > { %v6813_v12 = vadd.f32 %v5355_v61, %v6810_v46  ;;  %v2728_v47 = vpop.f32.mrb[17].mxu1 }
 0x2d2   : > { %v6816_v5 = vadd.f32 %v6810_v46, %v2728_v47 }
 0x2d3   : > { %v2847_v30 = vsub.f32 0.0, %v6813_v12 }
 0x2d4   : > { %v2846_v49 = vsub.f32 0.0, %v6816_v5  ;;  %v5358_v50 = vpop.f32.mrb[18].mxu1 }
 0x2d5   : > { %v2863_v6 = vmin.f32 %v2847_v30, 60.0  ;;  %v6821_v32 = vadd.f32 %v5358_v50, %v6810_v46  ;;  %v2738_v15 = vpop.f32.mrb[19].mxu1 }
 0x2d6   : > { %v2862_v51 = vmin.f32 %v2846_v49, 60.0  ;;  %v6824_v44 = vadd.f32 %v6810_v46, %v2738_v15 }
 0x2d7   : > { %v2880_v0 = vmul.f32 1.442695, %v2863_v6  ;;  %v2849_v11 = vsub.f32 0.0, %v6821_v32 }
 0x2d8   : > { %v2878_v60 = vmul.f32 1.442695, %v2862_v51  ;;  %v2848_v57 = vsub.f32 0.0, %v6824_v44  ;;  %v5361_v52 = vpop.f32.mrb[20].mxu1 }
 0x2d9   : > { %5927 = vpow2.f32 %v2880_v0  ;;  %v2865_v35 = vmin.f32 %v2849_v11, 60.0  ;;  %v6829_v48 = vadd.f32 %v5361_v52, %v6810_v46  ;;  %v2748_v3 = vpop.f32.mrb[21].mxu1 }
 0x2da   : > { %5929 = vpow2.f32 %v2878_v60  ;;  %v2864_v55 = vmin.f32 %v2848_v57, 60.0  ;;  %v6832_v59 = vadd.f32 %v6810_v46, %v2748_v3 }
 0x2db   : > { %v2884_v56 = vmul.f32 1.442695, %v2865_v35  ;;  %v2851_v38 = vsub.f32 0.0, %v6829_v48 }
 0x2dc   : > { %v2882_v58 = vmul.f32 1.442695, %v2864_v55  ;;  %v2850_v13 = vsub.f32 0.0, %v6832_v59  ;;  %v5364_v8 = vpop.f32.mrb[22].mxu1 }
 0x2dd   : > { %5931 = vpow2.f32 %v2884_v56  ;;  %v2867_v14 = vmin.f32 %v2851_v38, 60.0  ;;  %v6837_v63 = vadd.f32 %v5364_v8, %v6810_v46  ;;  %v2758_v7 = vpop.f32.mrb[23].mxu1 }
 0x2de   : > { %5933 = vpow2.f32 %v2882_v58  ;;  %v2866_v27 = vmin.f32 %v2850_v13, 60.0  ;;  %v6840_v19 = vadd.f32 %v6810_v46, %v2758_v7 }
 0x2df   : > { %v2888_v20 = vmul.f32 1.442695, %v2867_v14  ;;  %v2853_v33 = vsub.f32 0.0, %v6837_v63 }
 0x2e0   : > { %v2886_v25 = vmul.f32 1.442695, %v2866_v27  ;;  %v2852_v31 = vsub.f32 0.0, %v6840_v19  ;;  %v5367_v17 = vpop.f32.mrb[24].mxu1 }
 0x2e1   : > { %5935 = vpow2.f32 %v2888_v20  ;;  %v2869_v9 = vmin.f32 %v2853_v33, 60.0  ;;  %v6845_v18 = vadd.f32 %v5367_v17, %v6810_v46  ;;  %v2768_v62 = vpop.f32.mrb[25].mxu1 }
 0x2e2   : > { %5937 = vpow2.f32 %v2886_v25  ;;  %v2868_v43 = vmin.f32 %v2852_v31, 60.0  ;;  %v6848_v53 = vadd.f32 %v6810_v46, %v2768_v62 }
 0x2e3   : > { %v5928_v24 = vpop.eup %5927  ;;  %v2892_v1 = vmul.f32 1.442695, %v2869_v9  ;;  %v2855_v16 = vsub.f32 0.0, %v6845_v18 }
 0x2e4   : > { %v5930_v28 = vpop.eup %5929  ;;  %v2911_v2 = vadd.f32 1.0, %v5928_v24  ;;  %v2890_v4 = vmul.f32 1.442695, %v2868_v43  ;;  %v2854_v45 = vsub.f32 0.0, %v6848_v53  ;;  %v5370_v37 = vpop.f32.mrb[26].mxu1 }
 0x2e5   : > { %v2910_v54 = vadd.f32 1.0, %v5930_v28  ;;  %5939 = vpow2.f32 %v2892_v1  ;;  %v2871_v23 = vmin.f32 %v2855_v16, 60.0  ;;  %v6853_v10 = vadd.f32 %v5370_v37, %v6810_v46  ;;  %v2778_v40 = vpop.f32.mrb[27].mxu1 }
 0x2e6   : > { %5941 = vrcp.f32 %v2911_v2  ;;  %v2870_v21 = vmin.f32 %v2854_v45, 60.0  ;;  %v6856_v29 = vadd.f32 %v6810_v46, %v2778_v40 }
 0x2e7   : > { %v5932_v34 = vpop.eup %5931  ;;  %5943 = vrcp.f32 %v2910_v54  ;;  %v2896_v22 = vmul.f32 1.442695, %v2871_v23  ;;  %v2857_v36 = vsub.f32 0.0, %v6853_v10 }
 0x2e8   : > { %v5934_v39 = vpop.eup %5933  ;;  %v2913_v26 = vadd.f32 1.0, %v5932_v34  ;;  %5945 = vpow2.f32 %v2890_v4  ;;  %v2894_v61 = vmul.f32 1.442695, %v2870_v21  ;;  %v2856_v47 = vsub.f32 0.0, %v6856_v29  ;;  %v5373_v30 = vpop.f32.mrb[28].mxu1 }
 0x2e9   : > { %v2912_v49 = vadd.f32 1.0, %v5934_v39  ;;  %5947 = vpow2.f32 %v2896_v22  ;;  %v2873_v50 = vmin.f32 %v2857_v36, 60.0  ;;  %v6861_v6 = vadd.f32 %v5373_v30, %v6810_v46  ;;  %v2788_v15 = vpop.f32.mrb[29].mxu1 }
 0x2ea   : > { %5949 = vrcp.f32 %v2913_v26  ;;  %v2872_v51 = vmin.f32 %v2856_v47, 60.0  ;;  %v6864_v0 = vadd.f32 %v6810_v46, %v2788_v15 }
 0x2eb   : > { %v5936_v11 = vpop.eup %5935  ;;  %5951 = vrcp.f32 %v2912_v49  ;;  %v2900_v60 = vmul.f32 1.442695, %v2873_v50  ;;  %v2859_v57 = vsub.f32 0.0, %v6861_v6 }
 0x2ec   : > { %v5938_v52 = vpop.eup %5937  ;;  %v2915_v35 = vadd.f32 1.0, %v5936_v11  ;;  %5953 = vpow2.f32 %v2894_v61  ;;  %v2898_v3 = vmul.f32 1.442695, %v2872_v51  ;;  %v2858_v55 = vsub.f32 0.0, %v6864_v0  ;;  %v5376_v56 = vpop.f32.mrb[30].mxu1 }
 0x2ed   : > { %v2914_v38 = vadd.f32 1.0, %v5938_v52  ;;  %5955 = vpow2.f32 %v2900_v60  ;;  %v2875_v58 = vmin.f32 %v2859_v57, 60.0  ;;  %v6869_v13 = vadd.f32 %v5376_v56, %v6810_v46  ;;  %v2798_v8 = vpop.f32.mrb[31].mxu1 }
 0x2ee   : > { %5957 = vrcp.f32 %v2915_v35  ;;  %v2874_v14 = vmin.f32 %v2858_v55, 60.0  ;;  %v6872_v7 = vadd.f32 %v6810_v46, %v2798_v8 }
 0x2ef   : > { %v5940_v27 = vpop.eup %5939  ;;  %5959 = vrcp.f32 %v2914_v38  ;;  %v2904_v20 = vmul.f32 1.442695, %v2875_v58  ;;  %v2861_v33 = vsub.f32 0.0, %v6869_v13 }
 0x2f0   : > { %v5942_v25 = vpop.eup %5941  ;;  %v2917_v31 = vadd.f32 1.0, %v5940_v27  ;;  %5961 = vpow2.f32 %v2898_v3  ;;  %v2902_v17 = vmul.f32 1.442695, %v2874_v14  ;;  %v2860_v9 = vsub.f32 0.0, %v6872_v7 }
 0x2f1   : > { %v5944_v62 = vpop.eup %5943  ;;  %v2943_v43 = vmul.f32 %v5942_v25, %v2911_v2  ;;  %5963 = vpow2.f32 %v2904_v20  ;;  %v2877_v24 = vmin.f32 %v2861_v33, 60.0 }
 0x2f2   : > { %v5946_v1 = vpop.eup %5945  ;;  %v2942_v16 = vmul.f32 %v5944_v62, %v2910_v54  ;;  %5965 = vrcp.f32 %v2917_v31  ;;  %v2876_v46 = vmin.f32 %v2860_v9, 60.0 }
 0x2f3   : > { %v5948_v28 = vpop.eup %5947  ;;  %v2959_v4 = vsub.f32 2.0, %v2943_v43  ;;  %v2916_v45 = vadd.f32 1.0, %v5946_v1  ;;  %5967 = vpow2.f32 %v2902_v17  ;;  %v2908_v37 = vmul.f32 1.442695, %v2877_v24 }
 0x2f4   : > { %v5950_v23 = vpop.eup %5949  ;;  %v2958_v40 = vsub.f32 2.0, %v2942_v16  ;;  %v2919_v21 = vadd.f32 1.0, %v5948_v28  ;;  %v2906_v34 = vmul.f32 1.442695, %v2876_v46 }
 0x2f5   : > { %v5952_v22 = vpop.eup %5951  ;;  %v2975_v36 = vmul.f32 %v5942_v25, %v2959_v4  ;;  %v2945_v39 = vmul.f32 %v5950_v23, %v2913_v26  ;;  %5969 = vrcp.f32 %v2916_v45 }
 0x2f6   : > { %v5954_v2 = vpop.eup %5953  ;;  %v2974_v61 = vmul.f32 %v5944_v62, %v2958_v40  ;;  %v2944_v47 = vmul.f32 %v5952_v22, %v2912_v49  ;;  %5971 = vrcp.f32 %v2919_v21 }
 0x2f7   : > { %v5956_v54 = vpop.eup %5955  ;;  %v2991_v30 = vmul.f32 %v2975_v36, %v6813_v12  ;;  %v2961_v50 = vsub.f32 2.0, %v2945_v39  ;;  %v6877_v15 = vadd.f32 1.0, %v5954_v2  ;;  %5973 = vpow2.f32 %v2908_v37 }
 0x2f8   : > { %v5958_v51 = vpop.eup %5957  ;;  %v2990_v11 = vmul.f32 %v2974_v61, %v6816_v5  ;;  %v2960_v60 = vsub.f32 2.0, %v2944_v47  ;;  %v6880_v57 = vadd.f32 1.0, %v5956_v54  ;;  %5975 = vpow2.f32 %v2906_v34 }
 0x2f9   : > { %v5960_v26 = vpop.eup %5959  ;;  %3011 = vst.msk [vmem:[#allocation4 + $0x18] sm:$0xff] %vm1755_vm1, %v2991_v30  ;;  %v2977_v52 = vmul.f32 %v5950_v23, %v2961_v50  ;;  %v2947_v49 = vmul.f32 %v5958_v51, %v2915_v35  ;;  %5977 = vrcp.f32 %v6877_v15 }
 0x2fa   : > { %v5962_v3 = vpop.eup %5961  ;;  %3010 = vst.msk [vmem:[#allocation4 + $0x10] sm:$0xff] %vm1755_vm1, %v2990_v11  ;;  %v2976_v12 = vmul.f32 %v5952_v22, %v2960_v60  ;;  %v2946_v55 = vmul.f32 %v5960_v26, %v2914_v38  ;;  %5979 = vrcp.f32 %v6880_v57  ;;  %v4749_v38 = vld [vmem:[%s7383_s5 + $0x20] sm:$0xff] }
 0x2fb   : > { %v5964_v56 = vpop.eup %5963  ;;  %v2993_v5 = vmul.f32 %v2977_v52, %v6821_v32  ;;  %v2963_v58 = vsub.f32 2.0, %v2947_v49  ;;  %v2920_v8 = vadd.f32 1.0, %v5962_v3  ;;  %v4750_v32 = vld [vmem:[%s7383_s5 + $0x28] sm:$0xff] }
 0x2fc   : > { %v5966_v14 = vpop.eup %5965  ;;  %v2992_v27 = vmul.f32 %v2976_v12, %v6824_v44  ;;  %v2962_v20 = vsub.f32 2.0, %v2946_v55  ;;  %v2923_v33 = vadd.f32 1.0, %v5964_v56  ;;  %v6898_v46 = vpack.c.bf16 %v4750_v32, %v4749_v38 }
 0x2fd   : > { %v5968_v35 = vpop.eup %5967  ;;  %3013 = vst.msk [vmem:[#allocation4 + $0x28] sm:$0xff] %vm1755_vm1, %v2993_v5  ;;  %v2979_v25 = vmul.f32 %v5958_v51, %v2963_v58  ;;  %v2949_v17 = vmul.f32 %v5966_v14, %v2917_v31  ;;  %5981 = vrcp.f32 %v2920_v8 }
 0x2fe   : > { %3012 = vst.msk [vmem:[#allocation4 + $0x20] sm:$0xff] %vm1755_vm1, %v2992_v27  ;;  %v2978_v9 = vmul.f32 %v5960_v26, %v2962_v20  ;;  %5983 = vrcp.f32 %v2923_v33  ;;  %v2922_v44 = vadd.f32 1.0, %v5968_v35 }
 0x2ff   : > { %v5970_v62 = vpop.eup %5969  ;;  %v2995_v43 = vmul.f32 %v2979_v25, %v6829_v48  ;;  %v2965_v24 = vsub.f32 2.0, %v2949_v17 }
 0x300   : > { %v5972_v1 = vpop.eup %5971  ;;  %v2994_v31 = vmul.f32 %v2978_v9, %v6832_v59  ;;  %v2948_v16 = vmul.f32 %v5970_v62, %v2916_v45  ;;  %5985 = vrcp.f32 %v2922_v44  ;;  %v6906_v59 = vld [vmem:[#allocation4 + $0x18] sm:$0xff] }
 0x301   : > { %v5974_v28 = vpop.eup %5973  ;;  %3015 = vst.msk [vmem:[#allocation4 + $0x38] sm:$0xff] %vm1755_vm1, %v2995_v43  ;;  %v2981_v4 = vmul.f32 %v5966_v14, %v2965_v24  ;;  %v2951_v37 = vmul.f32 %v5972_v1, %v2919_v21  ;;  %v6901_v23 = vld [vmem:[#allocation4 + $0x10] sm:$0xff] }
 0x302   : > { %v5976_v40 = vpop.eup %5975  ;;  %3014 = vst.msk [vmem:[#allocation4 + $0x30] sm:$0xff] %vm1755_vm1, %v2994_v31  ;;  %v2964_v34 = vsub.f32 2.0, %v2948_v16  ;;  %v2925_v48 = vadd.f32 1.0, %v5974_v28  ;;  %5382 = vmatmul.mubr.msk.f32.vlgmr.msra.gmra.mrb[16].mxu0 %vm1755_vm1, %v6901_v23  ;;  %v3026_v28 = vld [vmem:[#allocation4] sm:$0xff] }
 0x303   : > { %v5978_v45 = vpop.eup %5977  ;;  %v2997_v22 = vmul.f32 %v2981_v4, %v6837_v63  ;;  %v2967_v36 = vsub.f32 2.0, %v2951_v37  ;;  %v2924_v39 = vadd.f32 1.0, %v5976_v40  ;;  %5544 = vmatpush3.bf16.msra.mxu0 %v6804_v42  ;;  %5384 = vmatprep.mubr.msk.f32.mxu0 %vm1755_vm1, %v6906_v59  ;;  %v4767_v37 = vld [vmem:[%s7383_s5 + $0x30] sm:$0xff]  ;;  %v4768_v40 = vld [vmem:[%s7383_s5 + $0x38] sm:$0xff] }
 0x304   : > { %v5980_v21 = vpop.eup %5979  ;;  %v2980_v2 = vmul.f32 %v5970_v62, %v2964_v34  ;;  %v2950_v61 = vmul.f32 %v5978_v45, %v6877_v15  ;;  %5987 = vrcp.f32 %v2925_v48  ;;  %5546 = vmatprep.subr.bf16.mxu0 %v6898_v46  ;;  %v6921_v50 = vld [vmem:[#allocation4 + $0x28] sm:$0xff]  ;;  %v5549_v34 = vpack.c.bf16 %v4768_v40, %v4767_v37 }
 0x305   : > { %3017 = vst.msk [vmem:[#allocation4 + $0x48] sm:$0xff] %vm1755_vm1, %v2997_v22  ;;  %v2983_v47 = vmul.f32 %v5972_v1, %v2967_v36  ;;  %v2953_v54 = vmul.f32 %v5980_v21, %v6880_v57  ;;  %5989 = vrcp.f32 %v2924_v39  ;;  %v6916_v63 = vld [vmem:[#allocation4 + $0x20] sm:$0xff] }
 0x306   : > { %v2996_v42 = vmul.f32 %v2980_v2, %v6840_v19  ;;  %v2966_v30 = vsub.f32 2.0, %v2950_v61  ;;  %5385 = vmatmul.mubr.msk.f32.gmra.mrb[18].mxu0 %vm1755_vm1, %v6916_v63  ;;  %v7123_v22 = vld [vmem:[%s7384_s6] ss:$0 sm:$0xff] }
 0x307   : > { %v5982_v15 = vpop.eup %5981  ;;  %v2999_v51 = vmul.f32 %v2983_v47, %v6845_v18  ;;  %v2969_v11 = vsub.f32 2.0, %v2953_v54  ;;  %5387 = vmatprep.mubr.msk.f32.mxu0 %vm1755_vm1, %v6921_v50 }
 0x308   : > { %v5984_v60 = vpop.eup %5983  ;;  %3016 = vst.msk [vmem:[#allocation4 + $0x40] sm:$0xff] %vm1755_vm1, %v2996_v42  ;;  %v2982_v57 = vmul.f32 %v5978_v45, %v2966_v30  ;;  %v2952_v26 = vmul.f32 %v5982_v15, %v2920_v8  ;;  %v6933_v18 = vld [vmem:[#allocation4 + $0x38] sm:$0xff] }
 0x309   : > { %3019 = vst.msk [vmem:[#allocation4 + $0x58] sm:$0xff] %vm1755_vm1, %v2999_v51  ;;  %v2985_v19 = vmul.f32 %v5980_v21, %v2969_v11  ;;  %v2955_v52 = vmul.f32 %v5984_v60, %v2923_v33  ;;  %v6928_v49 = vld [vmem:[#allocation4 + $0x30] sm:$0xff]  ;;  %v3860_v45 = vld [vmem:[#allocation4 + $0x98] sm:$0xff] }
 0x30a   : > { %v5986_v3 = vpop.eup %5985  ;;  %v2998_v12 = vmul.f32 %v2982_v57, %v6848_v53  ;;  %v2968_v55 = vsub.f32 2.0, %v2952_v26  ;;  %5388 = vmatmul.mubr.msk.f32.gmra.mrb[20].mxu0 %vm1755_vm1, %v6928_v49 }
 0x30b   : > { %v3001_v56 = vmul.f32 %v2985_v19, %v6853_v10  ;;  %v2971_v5 = vsub.f32 2.0, %v2955_v52  ;;  %v2954_v58 = vmul.f32 %v5986_v3, %v2922_v44  ;;  %5390 = vmatprep.mubr.msk.f32.mxu0 %vm1755_vm1, %v6933_v18 }
 0x30c   : > { %3018 = vst.msk [vmem:[#allocation4 + $0x50] sm:$0xff] %vm1755_vm1, %v2998_v12  ;;  %v2984_v8 = vmul.f32 %v5982_v15, %v2968_v55  ;;  %v6947_v32 = vld [vmem:[#allocation4 + $0x48] sm:$0xff] }
 0x30d   : > { %3021 = vst.msk [vmem:[#allocation4 + $0x68] sm:$0xff] %vm1755_vm1, %v3001_v56  ;;  %v2987_v14 = vmul.f32 %v5984_v60, %v2971_v5  ;;  %v2970_v53 = vsub.f32 2.0, %v2954_v58 }
 0x30e   : > { %v5988_v27 = vpop.eup %5987  ;;  %v3000_v20 = vmul.f32 %v2984_v8, %v6856_v29 }
 0x30f   : > { %v5990_v33 = vpop.eup %5989  ;;  %v3003_v35 = vmul.f32 %v2987_v14, %v6861_v6  ;;  %v2986_v25 = vmul.f32 %v5986_v3, %v2970_v53  ;;  %v2957_v10 = vmul.f32 %v5988_v27, %v2925_v48  ;;  %v6942_v17 = vld [vmem:[#allocation4 + $0x40] sm:$0xff] }
 0x310   : > { %3020 = vst.msk [vmem:[#allocation4 + $0x60] sm:$0xff] %vm1755_vm1, %v3000_v20  ;;  %v2956_v38 = vmul.f32 %v5990_v33, %v2924_v39  ;;  %5391 = vmatmul.mubr.msk.f32.gmra.mrb[22].mxu0 %vm1755_vm1, %v6942_v17  ;;  %v6958_v24 = vld [vmem:[#allocation4 + $0x58] sm:$0xff] }
 0x311   : > { %3023 = vst.msk [vmem:[#allocation4 + $0x78] sm:$0xff] %vm1755_vm1, %v3003_v35  ;;  %v3002_v9 = vmul.f32 %v2986_v25, %v6864_v0  ;;  %v2973_v29 = vsub.f32 2.0, %v2957_v10  ;;  %5393 = vmatprep.mubr.msk.f32.mxu0 %vm1755_vm1, %v6947_v32 }
 0x312   : > { %v2972_v6 = vsub.f32 2.0, %v2956_v38 }
 0x313   : > { %3022 = vst.msk [vmem:[#allocation4 + $0x70] sm:$0xff] %vm1755_vm1, %v3002_v9  ;;  %v2989_v44 = vmul.f32 %v5988_v27, %v2973_v29  ;;  %v6954_v62 = vld [vmem:[#allocation4 + $0x50] sm:$0xff] }
 0x314   : > { %v2988_v43 = vmul.f32 %v5990_v33, %v2972_v6  ;;  %5394 = vmatmul.mubr.msk.f32.gmra.mrb[24].mxu0 %vm1755_vm1, %v6954_v62  ;;  %v6970_v16 = vld [vmem:[#allocation4 + $0x68] sm:$0xff] }
 0x315   : > { %v3005_v1 = vmul.f32 %v2989_v44, %v6869_v13  ;;  %5396 = vmatprep.mubr.msk.f32.mxu0 %vm1755_vm1, %v6958_v24 }
 0x316   : > { %v3004_v0 = vmul.f32 %v2988_v43, %v6872_v7 }
 0x317   : > { %3025 = vst.msk [vmem:[#allocation4 + $0x88] sm:$0xff] %vm1755_vm1, %v3005_v1  ;;  %v6965_v31 = vld [vmem:[#allocation4 + $0x60] sm:$0xff] }
 0x318   : > { %3024 = vst.msk [vmem:[#allocation4 + $0x80] sm:$0xff] %vm1755_vm1, %v3004_v0  ;;  %5397 = vmatmul.mubr.msk.f32.gmra.mrb[26].mxu0 %vm1755_vm1, %v6965_v31  ;;  %v6978_v7 = vld [vmem:[#allocation4 + $0x78] sm:$0xff] }
 0x319   : > { %5399 = vmatprep.mubr.msk.f32.mxu0 %vm1755_vm1, %v6970_v16 }
 0x31a   : > { %v6974_v13 = vld [vmem:[#allocation4 + $0x70] sm:$0xff] }
 0x31c   : > { %5400 = vmatmul.mubr.msk.f32.gmra.mrb[28].mxu0 %vm1755_vm1, %v6974_v13 }
 0x31d   : > { %5402 = vmatprep.mubr.msk.f32.mxu0 %vm1755_vm1, %v6978_v7 }
 0x31f   : > { %v6982_v4 = vld [vmem:[#allocation4 + $0x80] sm:$0xff] }
 0x320   : > { %5403 = vmatmul.mubr.msk.f32.gmra.mrb[30].mxu0 %vm1755_vm1, %v6982_v4 }
 0x321   : > { %5409 = vmatprep.mubr.msk.f32.mxu0 %vm1755_vm1, %v3026_v28 }
 0x324   : > { %5410 = vmatmul.mubr.msk.f32.vlgmr.msra.gmra.mrb[16].mxu0 %vm1755_vm1, %v6794_v41  ;;  %v4785_v41 = vld [vmem:[%s7383_s5 + $0x40] sm:$0xff] }
 0x325   : > { %5548 = vmatpush3.bf16.msra.mxu0 %v6898_v46  ;;  %5412 = vmatprep.mubr.msk.f32.mxu0 %vm1755_vm1, %v6901_v23  ;;  %v4786_v46 = vld [vmem:[%s7383_s5 + $0x48] sm:$0xff] }
 0x326   : > { %5550 = vmatprep.subr.bf16.mxu0 %v5549_v34  ;;  %v5553_v48 = vpack.c.bf16 %v4786_v46, %v4785_v41 }
 0x328   : > { %5413 = vmatmul.mubr.msk.f32.gmra.mrb[18].mxu0 %vm1755_vm1, %v6906_v59 }
 0x329   : > { %5415 = vmatprep.mubr.msk.f32.mxu0 %vm1755_vm1, %v6916_v63 }
 0x32c   : > { %5416 = vmatmul.mubr.msk.f32.gmra.mrb[20].mxu0 %vm1755_vm1, %v6921_v50 }
 0x32d   : > { %5418 = vmatprep.mubr.msk.f32.mxu0 %vm1755_vm1, %v6928_v49 }
 0x330   : > { %5419 = vmatmul.mubr.msk.f32.gmra.mrb[22].mxu0 %vm1755_vm1, %v6933_v18 }
 0x331   : > { %5421 = vmatprep.mubr.msk.f32.mxu0 %vm1755_vm1, %v6942_v17 }
 0x334   : > { %5422 = vmatmul.mubr.msk.f32.gmra.mrb[24].mxu0 %vm1755_vm1, %v6947_v32 }
 0x335   : > { %5424 = vmatprep.mubr.msk.f32.mxu0 %vm1755_vm1, %v6954_v62 }
 0x338   : > { %5425 = vmatmul.mubr.msk.f32.gmra.mrb[26].mxu0 %vm1755_vm1, %v6958_v24 }
 0x339   : > { %5427 = vmatprep.mubr.msk.f32.mxu0 %vm1755_vm1, %v6965_v31 }
 0x33c   : > { %5428 = vmatmul.mubr.msk.f32.gmra.mrb[28].mxu0 %vm1755_vm1, %v6970_v16 }
 0x33d   : > { %5430 = vmatprep.mubr.msk.f32.mxu0 %vm1755_vm1, %v6974_v13 }
 0x340   : > { %5431 = vmatmul.mubr.msk.f32.gmra.mrb[30].mxu0 %vm1755_vm1, %v6978_v7 }
 0x341   : > { %5437 = vmatprep.mubr.msk.f32.mxu0 %vm1755_vm1, %v6901_v23  ;;  %v3404_v23 = vld [vmem:[#allocation4 + $0x88] sm:$0xff] }
 0x344   : > { %5438 = vmatmul.mubr.msk.f32.vlgmr.msra.gmra.mrb[16].mxu0 %vm1755_vm1, %v6906_v59 }
 0x345   : > { %5552 = vmatpush3.bf16.msra.mxu0 %v5549_v34  ;;  %5440 = vmatprep.mubr.msk.f32.mxu0 %vm1755_vm1, %v6916_v63 }
 0x346   : > { %5554 = vmatprep.subr.bf16.mxu0 %v5553_v48 }
 0x348   : > { %5441 = vmatmul.mubr.msk.f32.gmra.mrb[18].mxu0 %vm1755_vm1, %v6921_v50 }
 0x349   : > { %5443 = vmatprep.mubr.msk.f32.mxu0 %vm1755_vm1, %v6928_v49 }
 0x34c   : > { %5444 = vmatmul.mubr.msk.f32.gmra.mrb[20].mxu0 %vm1755_vm1, %v6933_v18 }
 0x34d   : > { %5446 = vmatprep.mubr.msk.f32.mxu0 %vm1755_vm1, %v6942_v17 }
 0x350   : > { %5447 = vmatmul.mubr.msk.f32.gmra.mrb[22].mxu0 %vm1755_vm1, %v6947_v32 }
 0x351   : > { %5449 = vmatprep.mubr.msk.f32.mxu0 %vm1755_vm1, %v6954_v62 }
 0x354   : > { %5450 = vmatmul.mubr.msk.f32.gmra.mrb[24].mxu0 %vm1755_vm1, %v6958_v24 }
 0x355   : > { %5452 = vmatprep.mubr.msk.f32.mxu0 %vm1755_vm1, %v6965_v31 }
 0x358   : > { %5453 = vmatmul.mubr.msk.f32.gmra.mrb[26].mxu0 %vm1755_vm1, %v6970_v16 }
 0x359   : > { %5455 = vmatprep.mubr.msk.f32.mxu0 %vm1755_vm1, %v6974_v13 }
 0x35c   : > { %5456 = vmatmul.mubr.msk.f32.gmra.mrb[28].mxu0 %vm1755_vm1, %v6978_v7 }
 0x35d   : > { %5458 = vmatprep.mubr.msk.f32.mxu0 %vm1755_vm1, %v6982_v4 }
 0x360   : > { %5459 = vmatmul.mubr.msk.f32.gmra.mrb[30].mxu0 %vm1755_vm1, %v3404_v23 }
 0x361   : > { %5465 = vmatprep.mubr.msk.f32.mxu0 %vm1755_vm1, %v6906_v59  ;;  %v3632_v59 = vld [vmem:[#allocation4 + $0x90] sm:$0xff] }
 0x364   : > { %5466 = vmatmul.mubr.msk.f32.vlgmr.msra.gmra.mrb[16].mxu0 %vm1755_vm1, %v6916_v63 }
 0x365   : > { %5556 = vmatpush3.bf16.msra.mxu0 %v5553_v48  ;;  %5468 = vmatprep.mubr.msk.f32.mxu0 %vm1755_vm1, %v6921_v50 }
 0x368   : > { %5469 = vmatmul.mubr.msk.f32.gmra.mrb[18].mxu0 %vm1755_vm1, %v6928_v49 }
 0x369   : > { %5471 = vmatprep.mubr.msk.f32.mxu0 %vm1755_vm1, %v6933_v18 }
 0x36c   : > { %5472 = vmatmul.mubr.msk.f32.gmra.mrb[20].mxu0 %vm1755_vm1, %v6942_v17 }
 0x36d   : > { %5474 = vmatprep.mubr.msk.f32.mxu0 %vm1755_vm1, %v6947_v32 }
 0x370   : > { %5475 = vmatmul.mubr.msk.f32.gmra.mrb[22].mxu0 %vm1755_vm1, %v6954_v62 }
 0x371   : > { %5477 = vmatprep.mubr.msk.f32.mxu0 %vm1755_vm1, %v6958_v24 }
 0x374   : > { %5478 = vmatmul.mubr.msk.f32.gmra.mrb[24].mxu0 %vm1755_vm1, %v6965_v31 }
 0x375   : > { %5480 = vmatprep.mubr.msk.f32.mxu0 %vm1755_vm1, %v6970_v16 }
 0x378   : > { %5481 = vmatmul.mubr.msk.f32.gmra.mrb[26].mxu0 %vm1755_vm1, %v6974_v13 }
 0x379   : > { %5483 = vmatprep.mubr.msk.f32.mxu0 %vm1755_vm1, %v6978_v7 }
 0x37c   : > { %5484 = vmatmul.mubr.msk.f32.gmra.mrb[28].mxu0 %vm1755_vm1, %v6982_v4 }
 0x37d   : > { %5486 = vmatprep.mubr.msk.f32.mxu0 %vm1755_vm1, %v3404_v23 }
 0x380   : > { %5487 = vmatmul.mubr.msk.f32.gmra.mrb[30].mxu0 %vm1755_vm1, %v3632_v59 }
 0x381   : > { %5493 = vmatprep.mubr.msk.f32.mxu0 %vm1755_vm1, %v6916_v63 }
 0x384   : > { %5494 = vmatmul.mubr.msk.f32.vlgmr.msra.gmra.mrb[16].mxu0 %vm1755_vm1, %v6921_v50 }
 0x385   : > { %5496 = vmatprep.mubr.msk.f32.mxu0 %vm1755_vm1, %v6928_v49 }
 0x388   : > { %5497 = vmatmul.mubr.msk.f32.gmra.mrb[18].mxu0 %vm1755_vm1, %v6933_v18 }
 0x389   : > { %5499 = vmatprep.mubr.msk.f32.mxu0 %vm1755_vm1, %v6942_v17 }
 0x38c   : > { %5500 = vmatmul.mubr.msk.f32.gmra.mrb[20].mxu0 %vm1755_vm1, %v6947_v32 }
 0x38d   : > { %5502 = vmatprep.mubr.msk.f32.mxu0 %vm1755_vm1, %v6954_v62 }
 0x390   : > { %5503 = vmatmul.mubr.msk.f32.gmra.mrb[22].mxu0 %vm1755_vm1, %v6958_v24 }
 0x391   : > { %5505 = vmatprep.mubr.msk.f32.mxu0 %vm1755_vm1, %v6965_v31 }
 0x394   : > { %5506 = vmatmul.mubr.msk.f32.gmra.mrb[24].mxu0 %vm1755_vm1, %v6970_v16 }
 0x395   : > { %5508 = vmatprep.mubr.msk.f32.mxu0 %vm1755_vm1, %v6974_v13 }
 0x398   : > { %5509 = vmatmul.mubr.msk.f32.gmra.mrb[26].mxu0 %vm1755_vm1, %v6978_v7 }
 0x399   : > { %5511 = vmatprep.mubr.msk.f32.mxu0 %vm1755_vm1, %v6982_v4 }
 0x39c   : > { %5512 = vmatmul.mubr.msk.f32.gmra.mrb[28].mxu0 %vm1755_vm1, %v3404_v23 }
 0x39d   : > { %5514 = vmatprep.mubr.msk.f32.mxu0 %vm1755_vm1, %v3632_v59 }
 0x3a0   : > { %5515 = vmatmul.mubr.msk.f32.gmra.mrb[30].mxu0 %vm1755_vm1, %v3860_v45 }
 0x457   : > { %v5495_v36 = vpop.f32.mrb[16].mxu0 }
 0x458   : > { %v7126_v39 = vadd.f32 %v5495_v36, %v7123_v22  ;;  %v3978_v21 = vpop.f32.mrb[17].mxu0 }
 0x459   : > { %v7129_v2 = vadd.f32 %v7123_v22, %v3978_v21 }
 0x45a   : > { %v4097_v61 = vsub.f32 0.0, %v7126_v39 }
 0x45b   : > { %v4096_v47 = vsub.f32 0.0, %v7129_v2  ;;  %v5498_v54 = vpop.f32.mrb[18].mxu0 }
 0x45c   : > { %v4113_v63 = vmin.f32 %v4097_v61, 60.0  ;;  %v7134_v42 = vadd.f32 %v5498_v54, %v7123_v22  ;;  %v3988_v30 = vpop.f32.mrb[19].mxu0 }
 0x45d   : > { %v4112_v50 = vmin.f32 %v4096_v47, 60.0  ;;  %v7137_v15 = vadd.f32 %v7123_v22, %v3988_v30 }
 0x45e   : > { %v4130_v51 = vmul.f32 1.442695, %v4113_v63  ;;  %v4099_v11 = vsub.f32 0.0, %v7134_v42 }
 0x45f   : > { %v4128_v60 = vmul.f32 1.442695, %v4112_v50  ;;  %v4098_v57 = vsub.f32 0.0, %v7137_v15  ;;  %v5501_v26 = vpop.f32.mrb[20].mxu0 }
 0x460   : > { %5991 = vpow2.f32 %v4130_v51  ;;  %v4115_v19 = vmin.f32 %v4099_v11, 60.0  ;;  %v7142_v52 = vadd.f32 %v5501_v26, %v7123_v22  ;;  %v3998_v49 = vpop.f32.mrb[21].mxu0 }
 0x461   : > { %5993 = vpow2.f32 %v4128_v60  ;;  %v4114_v3 = vmin.f32 %v4098_v57, 60.0  ;;  %v7145_v12 = vadd.f32 %v7123_v22, %v3998_v49 }
 0x462   : > { %v4134_v55 = vmul.f32 1.442695, %v4115_v19  ;;  %v4101_v18 = vsub.f32 0.0, %v7142_v52 }
 0x463   : > { %v4132_v56 = vmul.f32 1.442695, %v4114_v3  ;;  %v4100_v5 = vsub.f32 0.0, %v7145_v12  ;;  %v5504_v58 = vpop.f32.mrb[22].mxu0 }
 0x464   : > { %5995 = vpow2.f32 %v4134_v55  ;;  %v4117_v8 = vmin.f32 %v4101_v18, 60.0  ;;  %v7150_v14 = vadd.f32 %v5504_v58, %v7123_v22  ;;  %v4008_v53 = vpop.f32.mrb[23].mxu0 }
 0x465   : > { %5997 = vpow2.f32 %v4132_v56  ;;  %v4116_v27 = vmin.f32 %v4100_v5, 60.0  ;;  %v7153_v20 = vadd.f32 %v7123_v22, %v4008_v53 }
 0x466   : > { %v4138_v33 = vmul.f32 1.442695, %v4117_v8  ;;  %v4103_v35 = vsub.f32 0.0, %v7150_v14 }
 0x467   : > { %v4136_v25 = vmul.f32 1.442695, %v4116_v27  ;;  %v4102_v10 = vsub.f32 0.0, %v7153_v20  ;;  %v5507_v17 = vpop.f32.mrb[24].mxu0 }
 0x468   : > { %5999 = vpow2.f32 %v4138_v33  ;;  %v4119_v38 = vmin.f32 %v4103_v35, 60.0  ;;  %v7158_v32 = vadd.f32 %v5507_v17, %v7123_v22  ;;  %v4018_v9 = vpop.f32.mrb[25].mxu0 }
 0x469   : > { %6001 = vpow2.f32 %v4136_v25  ;;  %v4118_v29 = vmin.f32 %v4102_v10, 60.0  ;;  %v7161_v6 = vadd.f32 %v7123_v22, %v4018_v9 }
 0x46a   : > { %v5992_v44 = vpop.eup %5991  ;;  %v4142_v62 = vmul.f32 1.442695, %v4119_v38  ;;  %v4105_v43 = vsub.f32 0.0, %v7158_v32 }
 0x46b   : > { %v5994_v24 = vpop.eup %5993  ;;  %v4161_v1 = vadd.f32 1.0, %v5992_v44  ;;  %v4140_v0 = vmul.f32 1.442695, %v4118_v29  ;;  %v4104_v31 = vsub.f32 0.0, %v7161_v6  ;;  %v5510_v16 = vpop.f32.mrb[26].mxu0 }
 0x46c   : > { %v4160_v13 = vadd.f32 1.0, %v5994_v24  ;;  %6003 = vpow2.f32 %v4142_v62  ;;  %v4121_v7 = vmin.f32 %v4105_v43, 60.0  ;;  %v7166_v28 = vadd.f32 %v5510_v16, %v7123_v22  ;;  %v4028_v4 = vpop.f32.mrb[27].mxu0 }
 0x46d   : > { %6005 = vrcp.f32 %v4161_v1  ;;  %v4120_v37 = vmin.f32 %v4104_v31, 60.0  ;;  %v7169_v40 = vadd.f32 %v7123_v22, %v4028_v4 }
 0x46e   : > { %v5996_v34 = vpop.eup %5995  ;;  %6007 = vrcp.f32 %v4160_v13  ;;  %v4146_v41 = vmul.f32 1.442695, %v4121_v7  ;;  %v4107_v46 = vsub.f32 0.0, %v7166_v28 }
 0x46f   : > { %v5998_v48 = vpop.eup %5997  ;;  %v4163_v23 = vadd.f32 1.0, %v5996_v34  ;;  %6009 = vpow2.f32 %v4140_v0  ;;  %v4144_v59 = vmul.f32 1.442695, %v4120_v37  ;;  %v4106_v45 = vsub.f32 0.0, %v7169_v40  ;;  %v5513_v36 = vpop.f32.mrb[28].mxu0 }
 0x470   : > { %v4162_v21 = vadd.f32 1.0, %v5998_v48  ;;  %6011 = vpow2.f32 %v4146_v41  ;;  %v4123_v61 = vmin.f32 %v4107_v46, 60.0  ;;  %v7174_v47 = vadd.f32 %v5513_v36, %v7123_v22  ;;  %v4038_v54 = vpop.f32.mrb[29].mxu0 }
 0x471   : > { %6013 = vrcp.f32 %v4163_v23  ;;  %v4122_v63 = vmin.f32 %v4106_v45, 60.0  ;;  %v7177_v30 = vadd.f32 %v7123_v22, %v4038_v54 }
 0x472   : > { %v6000_v50 = vpop.eup %5999  ;;  %6015 = vrcp.f32 %v4162_v21  ;;  %v4150_v51 = vmul.f32 1.442695, %v4123_v61  ;;  %v4109_v11 = vsub.f32 0.0, %v7174_v47 }
 0x473   : > { %v6002_v60 = vpop.eup %6001  ;;  %v4165_v57 = vadd.f32 1.0, %v6000_v50  ;;  %6017 = vpow2.f32 %v4144_v59  ;;  %v4148_v26 = vmul.f32 1.442695, %v4122_v63  ;;  %v4108_v19 = vsub.f32 0.0, %v7177_v30  ;;  %v5516_v49 = vpop.f32.mrb[30].mxu0 }
 0x474   : > { %v4164_v3 = vadd.f32 1.0, %v6002_v60  ;;  %6019 = vpow2.f32 %v4150_v51  ;;  %v4125_v55 = vmin.f32 %v4109_v11, 60.0  ;;  %v7182_v18 = vadd.f32 %v5516_v49, %v7123_v22  ;;  %v4048_v56 = vpop.f32.mrb[31].mxu0 }
 0x475   : > { %6021 = vrcp.f32 %v4165_v57  ;;  %v4124_v5 = vmin.f32 %v4108_v19, 60.0  ;;  %v7185_v58 = vadd.f32 %v7123_v22, %v4048_v56 }
 0x476   : > { %v6004_v8 = vpop.eup %6003  ;;  %6023 = vrcp.f32 %v4164_v3  ;;  %v4154_v53 = vmul.f32 1.442695, %v4125_v55  ;;  %v4111_v27 = vsub.f32 0.0, %v7182_v18 }
 0x477   : > { %v6006_v33 = vpop.eup %6005  ;;  %v4167_v35 = vadd.f32 1.0, %v6004_v8  ;;  %6025 = vpow2.f32 %v4148_v26  ;;  %v4152_v25 = vmul.f32 1.442695, %v4124_v5  ;;  %v4110_v10 = vsub.f32 0.0, %v7185_v58 }
 0x478   : > { %v6008_v17 = vpop.eup %6007  ;;  %v4193_v38 = vmul.f32 %v6006_v33, %v4161_v1  ;;  %6027 = vpow2.f32 %v4154_v53  ;;  %v4127_v9 = vmin.f32 %v4111_v27, 60.0 }
 0x479   : > { %v6010_v29 = vpop.eup %6009  ;;  %v4192_v44 = vmul.f32 %v6008_v17, %v4160_v13  ;;  %6029 = vrcp.f32 %v4167_v35  ;;  %v4126_v22 = vmin.f32 %v4110_v10, 60.0  ;;  %v4385_v10 = vld [vmem:[%s7385_s7 + $0x80] sm:$0xff] }
 0x47a   : > { %v6012_v62 = vpop.eup %6011  ;;  %v4209_v43 = vsub.f32 2.0, %v4193_v38  ;;  %v4166_v24 = vadd.f32 1.0, %v6010_v29  ;;  %6031 = vpow2.f32 %v4152_v25  ;;  %v4158_v0 = vmul.f32 1.442695, %v4127_v9 }
 0x47b   : > { %v6014_v31 = vpop.eup %6013  ;;  %v4208_v16 = vsub.f32 2.0, %v4192_v44  ;;  %v7189_v7 = vadd.f32 1.0, %v6012_v62  ;;  %v4156_v4 = vmul.f32 1.442695, %v4126_v22  ;;  %v4370_v22 = vld [vmem:[%s7385_s7 + $0x8] sm:$0xff] }
 0x47c   : > { %v6016_v37 = vpop.eup %6015  ;;  %v4225_v34 = vmul.f32 %v6006_v33, %v4209_v43  ;;  %v4195_v41 = vmul.f32 %v6014_v31, %v4163_v23  ;;  %6033 = vrcp.f32 %v4166_v24 }
 0x47d   : > { %v6018_v1 = vpop.eup %6017  ;;  %v4224_v46 = vmul.f32 %v6008_v17, %v4208_v16  ;;  %v4194_v48 = vmul.f32 %v6016_v37, %v4162_v21  ;;  %6035 = vrcp.f32 %v7189_v7  ;;  %v4369_v17 = vld [vmem:[%s7385_s7] sm:$0xff] }
 0x47e   : > { %v6020_v13 = vpop.eup %6019  ;;  %v4241_v59 = vmul.f32 %v4225_v34, %v7126_v39  ;;  %v4211_v45 = vsub.f32 2.0, %v4195_v41  ;;  %v7193_v36 = vadd.f32 1.0, %v6018_v1  ;;  %6037 = vpow2.f32 %v4158_v0 }
 0x47f   : > { %v6022_v61 = vpop.eup %6021  ;;  %v4240_v54 = vmul.f32 %v4224_v46, %v7129_v2  ;;  %v4210_v63 = vsub.f32 2.0, %v4194_v48  ;;  %v7196_v50 = vadd.f32 1.0, %v6020_v13  ;;  %6039 = vpow2.f32 %v4156_v4 }
 0x480   : > { %v6024_v23 = vpop.eup %6023  ;;  %4257 = vst.msk [vmem:[#allocation5 + $0x8] sm:$0xff] %vm1755_vm1, %v4241_v59  ;;  %v4227_v21 = vmul.f32 %v6014_v31, %v4211_v45  ;;  %v4197_v51 = vmul.f32 %v6022_v61, %v4165_v57  ;;  %6041 = vrcp.f32 %v7193_v36  ;;  %v4387_v59 = vld [vmem:[%s7385_s7 + $0x90] sm:$0xff]  ;;  %v4388_v45 = vld [vmem:[%s7385_s7 + $0x98] sm:$0xff] }
 0x481   : > { %v6026_v11 = vpop.eup %6025  ;;  %4256 = vst.msk [vmem:[#allocation5] sm:$0xff] %vm1755_vm1, %v4240_v54  ;;  %v4226_v39 = vmul.f32 %v6016_v37, %v4210_v63  ;;  %v4196_v60 = vmul.f32 %v6024_v23, %v4164_v3  ;;  %6043 = vrcp.f32 %v7196_v50  ;;  %v4371_v54 = vld [vmem:[%s7385_s7 + $0x10] sm:$0xff]  ;;  %v4372_v63 = vld [vmem:[%s7385_s7 + $0x18] sm:$0xff] }
 0x482   : > { %v6028_v26 = vpop.eup %6027  ;;  %v4243_v2 = vmul.f32 %v4227_v21, %v7134_v42  ;;  %v4213_v19 = vsub.f32 2.0, %v4197_v51  ;;  %v7203_v49 = vadd.f32 1.0, %v6026_v11  ;;  %v5563_v51 = vpack.c.bf16 %v4372_v63, %v4371_v54  ;;  %v4379_v54 = vld [vmem:[%s7385_s7 + $0x50] sm:$0xff]  ;;  %v4380_v63 = vld [vmem:[%s7385_s7 + $0x58] sm:$0xff] }
 0x483   : > { %v6030_v55 = vpop.eup %6029  ;;  %v4242_v56 = vmul.f32 %v4226_v39, %v7137_v15  ;;  %v4212_v5 = vsub.f32 2.0, %v4196_v60  ;;  %v7206_v57 = vadd.f32 1.0, %v6028_v26  ;;  %v4389_v60 = vld [vmem:[%s7385_s7 + $0xa0] sm:$0xff]  ;;  %v4390_v26 = vld [vmem:[%s7385_s7 + $0xa8] sm:$0xff] }
 0x484   : > { %v6032_v8 = vpop.eup %6031  ;;  %4259 = vst.msk [vmem:[#allocation5 + $0x18] sm:$0xff] %vm1755_vm1, %v4243_v2  ;;  %v4229_v53 = vmul.f32 %v6022_v61, %v4213_v19  ;;  %v4199_v27 = vmul.f32 %v6030_v55, %v4167_v35  ;;  %6045 = vrcp.f32 %v7203_v49  ;;  %v4386_v35 = vld [vmem:[%s7385_s7 + $0x88] sm:$0xff] }
 0x485   : > { %4258 = vst.msk [vmem:[#allocation5 + $0x10] sm:$0xff] %vm1755_vm1, %v4242_v56  ;;  %v4228_v3 = vmul.f32 %v6024_v23, %v4212_v5  ;;  %6047 = vrcp.f32 %v7206_v57  ;;  %v7212_v42 = vadd.f32 1.0, %v6032_v8  ;;  %v5557_v44 = vpack.c.bf16 %v4386_v35, %v4385_v10  ;;  %v4373_v8 = vld [vmem:[%s7385_s7 + $0x20] sm:$0xff] }
 0x486   : > { %v6034_v33 = vpop.eup %6033  ;;  %v4245_v15 = vmul.f32 %v4229_v53, %v7142_v52  ;;  %v4215_v25 = vsub.f32 2.0, %v4199_v27  ;;  %v5565_v56 = vpack.c.bf16 %v4390_v26, %v4389_v60  ;;  %v4374_v53 = vld [vmem:[%s7385_s7 + $0x28] sm:$0xff]  ;;  %v4399_v26 = vld [vmem:[%s7385_s7 + $0xf0] sm:$0xff] }
 0x487   : > { %v6036_v38 = vpop.eup %6035  ;;  %v4244_v9 = vmul.f32 %v4228_v3, %v7145_v12  ;;  %v4198_v29 = vmul.f32 %v6034_v33, %v4166_v24  ;;  %6049 = vrcp.f32 %v7212_v42  ;;  %v4274_v52 = vld [vmem:[#allocation5 + $0x8] sm:$0xff]  ;;  %v5559_v12 = vpack.c.bf16 %v4370_v22, %v4369_v17  ;;  %5558 = vmatprep.subr.bf16.mxu1 %v5557_v44  ;;  %v4391_v17 = vld [vmem:[%s7385_s7 + $0xb0] sm:$0xff] }
 0x488   : > { %v6038_v62 = vpop.eup %6037  ;;  %4261 = vst.msk [vmem:[#allocation5 + $0x28] sm:$0xff] %vm1755_vm1, %v4245_v15  ;;  %v4231_v43 = vmul.f32 %v6030_v55, %v4215_v25  ;;  %v4201_v0 = vmul.f32 %v6036_v38, %v7189_v7  ;;  %4276 = vrot.lane.b32.xlu0 %v4274_v52, %s6064_s23  ;;  %v4272_v31 = vld [vmem:[#allocation5] sm:$0xff]  ;;  %v4382_v60 = vld [vmem:[%s7385_s7 + $0x68] sm:$0xff] }
 0x489   : > { %v6040_v24 = vpop.eup %6039  ;;  %4260 = vst.msk [vmem:[#allocation5 + $0x20] sm:$0xff] %vm1755_vm1, %v4244_v9  ;;  %v4214_v16 = vsub.f32 2.0, %v4198_v29  ;;  %v7233_v4 = vadd.f32 1.0, %v6038_v62  ;;  %4273 = vst.msk [vmem:[#allocation6] sm:$0xff] %vm1755_vm1, %v4272_v31  ;;  %5560 = vmatpush3.bf16.msra.mxu1 %v5559_v12  ;;  %v4375_v9 = vld [vmem:[%s7385_s7 + $0x30] sm:$0xff]  ;;  %v4376_v29 = vld [vmem:[%s7385_s7 + $0x38] sm:$0xff] }
 0x48a   : > { %v6042_v37 = vpop.eup %6041  ;;  %v4247_v34 = vmul.f32 %v4231_v43, %v7150_v14  ;;  %v4217_v41 = vsub.f32 2.0, %v4201_v0  ;;  %v7237_v1 = vadd.f32 1.0, %v6040_v24  ;;  %v5571_v22 = vpack.c.bf16 %v4376_v29, %v4375_v9 }
 0x48b   : > { %v6044_v7 = vpop.eup %6043  ;;  %v4230_v46 = vmul.f32 %v6034_v33, %v4214_v16  ;;  %v4200_v48 = vmul.f32 %v6042_v37, %v7193_v36  ;;  %6051 = vrcp.f32 %v7233_v4  ;;  %v4288_v13 = vld [vmem:[#allocation5 + $0x18] sm:$0xff]  ;;  %v5561_v36 = vpack.c.bf16 %v4388_v45, %v4387_v59  ;;  %v4395_v45 = vld [vmem:[%s7385_s7 + $0xd0] sm:$0xff] }
 0x48c   : > { %4263 = vst.msk [vmem:[#allocation5 + $0x38] sm:$0xff] %vm1755_vm1, %v4247_v34  ;;  %v4233_v14 = vmul.f32 %v6036_v38, %v4217_v41  ;;  %v4203_v61 = vmul.f32 %v6044_v7, %v7196_v50  ;;  %6053 = vrcp.f32 %v7237_v1  ;;  %4290 = vrot.lane.b32.xlu1 %v4288_v13, %s6065_s28  ;;  %v4281_v55 = vld [vmem:[#allocation5 + $0x10] sm:$0xff]  ;;  %v5567_v33 = vpack.c.bf16 %v4374_v53, %v4373_v8  ;;  %v4377_v41 = vld [vmem:[%s7385_s7 + $0x40] sm:$0xff] }
 0x48d   : > { %v4246_v23 = vmul.f32 %v4230_v46, %v7153_v20  ;;  %v4216_v21 = vsub.f32 2.0, %v4200_v48  ;;  %5562 = vmatprep.subr.bf16.mxu1 %v5561_v36 }
 0x48e   : > { %v6046_v11 = vpop.eup %6045  ;;  %v4249_v50 = vmul.f32 %v4233_v14, %v7158_v32  ;;  %v4219_v39 = vsub.f32 2.0, %v4203_v61  ;;  %5564 = vmatpush3.bf16.msra.mxu1 %v5563_v51  ;;  %v4396_v14 = vld [vmem:[%s7385_s7 + $0xd8] sm:$0xff] }
 0x48f   : > { %v6048_v2 = vpop.eup %6047  ;;  %4262 = vst.msk [vmem:[#allocation5 + $0x30] sm:$0xff] %vm1755_vm1, %v4246_v23  ;;  %v4232_v19 = vmul.f32 %v6042_v37, %v4216_v21  ;;  %v4202_v20 = vmul.f32 %v6046_v11, %v7203_v49  ;;  %5566 = vmatprep.subr.bf16.mxu1 %v5565_v56  ;;  %v4302_v35 = vld [vmem:[#allocation5 + $0x28] sm:$0xff]  ;;  %v4393_v37 = vld [vmem:[%s7385_s7 + $0xc0] sm:$0xff]  ;;  %v5577_v36 = vpack.c.bf16 %v4396_v14, %v4395_v45 }
 0x490   : > { %4265 = vst.msk [vmem:[#allocation5 + $0x48] sm:$0xff] %vm1755_vm1, %v4249_v50  ;;  %v4235_v32 = vmul.f32 %v6044_v7, %v4219_v39  ;;  %v4205_v5 = vmul.f32 %v6048_v2, %v7206_v57  ;;  %4283 = vrot.lane.b32.xlu1 %v4281_v55, %s6066_s18  ;;  %v4295_v12 = vld [vmem:[#allocation5 + $0x20] sm:$0xff]  ;;  %v5579_v21 = vpack.c.bf16 %v4380_v63, %v4379_v54  ;;  %v4398_v50 = vld [vmem:[%s7385_s7 + $0xe8] sm:$0xff] }
 0x491   : > { %v6050_v49 = vpop.eup %6049  ;;  %v4248_v27 = vmul.f32 %v4232_v19, %v7161_v6  ;;  %v4218_v3 = vsub.f32 2.0, %v4202_v20  ;;  %v4392_v6 = vld [vmem:[%s7385_s7 + $0xb8] sm:$0xff]  ;;  %v4381_v39 = vld [vmem:[%s7385_s7 + $0x60] sm:$0xff]  ;;  %v4383_v20 = vld [vmem:[%s7385_s7 + $0x70] sm:$0xff] }
 0x492   : > { %v4251_v15 = vmul.f32 %v4235_v32, %v7166_v28  ;;  %v4221_v57 = vsub.f32 2.0, %v4205_v5  ;;  %v4204_v25 = vmul.f32 %v6050_v49, %v7212_v42  ;;  %5568 = vmatpush3.bf16.msra.mxu1 %v5567_v33  ;;  %v5569_v42 = vpack.c.bf16 %v4392_v6, %v4391_v17  ;;  %v4400_v19 = vld [vmem:[%s7385_s7 + $0xf8] sm:$0xff] }
 0x493   : > { %4264 = vst.msk [vmem:[#allocation5 + $0x40] sm:$0xff] %vm1755_vm1, %v4248_v27  ;;  %v4234_v10 = vmul.f32 %v6046_v11, %v4218_v3  ;;  %v4397_v11 = vld [vmem:[%s7385_s7 + $0xe0] sm:$0xff]  ;;  %v5585_v56 = vpack.c.bf16 %v4400_v19, %v4399_v26  ;;  %v4384_v32 = vld [vmem:[%s7385_s7 + $0x78] sm:$0xff] }
 0x494   : > { %4267 = vst.msk [vmem:[#allocation5 + $0x58] sm:$0xff] %vm1755_vm1, %v4251_v15  ;;  %v4237_v38 = vmul.f32 %v6048_v2, %v4221_v57  ;;  %v4220_v28 = vsub.f32 2.0, %v4204_v25  ;;  %4304 = vrot.lane.b32.xlu1 %v4302_v35, %s6067_s29  ;;  %5570 = vmatprep.subr.bf16.mxu1 %v5569_v42  ;;  %v5583_v2 = vpack.c.bf16 %v4382_v60, %v4381_v39  ;;  %v4316_v53 = vld [vmem:[#allocation5 + $0x38] sm:$0xff] }
 0x495   : > { %v6052_v52 = vpop.eup %6051  ;;  %v4250_v44 = vmul.f32 %v4234_v10, %v7169_v40  ;;  %v4394_v40 = vld [vmem:[%s7385_s7 + $0xc8] sm:$0xff]  ;;  %v5587_v8 = vpack.c.bf16 %v4384_v32, %v4383_v20 }
 0x496   : > { %v6054_v62 = vpop.eup %6053  ;;  %v4253_v43 = vmul.f32 %v4237_v38, %v7174_v47  ;;  %v4236_v0 = vmul.f32 %v6050_v49, %v4220_v28  ;;  %v4207_v31 = vmul.f32 %v6052_v52, %v7233_v4  ;;  %5572 = vmatpush3.bf16.msra.mxu1 %v5571_v22  ;;  %v5573_v34 = vpack.c.bf16 %v4394_v40, %v4393_v37  ;;  %v4309_v55 = vld [vmem:[#allocation5 + $0x30] sm:$0xff] }
 0x497   : > { %4266 = vst.msk [vmem:[#allocation5 + $0x50] sm:$0xff] %vm1755_vm1, %v4250_v44  ;;  %v4206_v24 = vmul.f32 %v6054_v62, %v7237_v1  ;;  %v4325_v16 = vld [vmem:[#allocation5 + $0x48] sm:$0xff] }
 0x498   : > { %4269 = vst.msk [vmem:[#allocation5 + $0x68] sm:$0xff] %vm1755_vm1, %v4253_v43  ;;  %v4252_v47 = vmul.f32 %v4236_v0, %v7177_v30  ;;  %v4223_v4 = vsub.f32 2.0, %v4207_v31  ;;  %4297 = vrot.lane.b32.xlu1 %v4295_v12, %s6068_s20  ;;  %4327 = vrot.lane.b32.xlu0 %v4325_v16, %s6064_s23  ;;  %v4378_v1 = vld [vmem:[%s7385_s7 + $0x48] sm:$0xff] }
 0x499   : > { %v4222_v7 = vsub.f32 2.0, %v4206_v24  ;;  %v5575_v46 = vpack.c.bf16 %v4378_v1, %v4377_v41  ;;  %5574 = vmatprep.subr.bf16.mxu1 %v5573_v34 }
 0x49a   : > { %4268 = vst.msk [vmem:[#allocation5 + $0x60] sm:$0xff] %vm1755_vm1, %v4252_v47  ;;  %v4239_v30 = vmul.f32 %v6052_v52, %v4223_v4  ;;  %v4323_v48 = vld [vmem:[#allocation5 + $0x40] sm:$0xff] }
 0x49b   : > { %v4238_v13 = vmul.f32 %v6054_v62, %v4222_v7  ;;  %v4337_v59 = vld [vmem:[#allocation5 + $0x58] sm:$0xff]  ;;  %4324 = vst.msk [vmem:[#allocation6 + $0x8] sm:$0xff] %vm1755_vm1, %v4323_v48  ;;  %5576 = vmatpush3.bf16.msra.mxu1 %v5575_v46  ;;  %v4804_v62 = vld [vmem:[%s7386_s8] ss:$0 sm:$0xff] }
 0x49c   : > { %v4255_v61 = vmul.f32 %v4239_v30, %v7182_v18  ;;  %4339 = vrot.lane.b32.xlu0 %v4337_v59, %s6065_s28  ;;  %5578 = vmatprep.subr.bf16.mxu1 %v5577_v36 }
 0x49d   : > { %v4254_v23 = vmul.f32 %v4238_v13, %v7185_v58  ;;  %v5581_v58 = vpack.c.bf16 %v4398_v50, %v4397_v11 }
 0x49e   : > { %4271 = vst.msk [vmem:[#allocation5 + $0x78] sm:$0xff] %vm1755_vm1, %v4255_v61  ;;  %v4331_v51 = vld [vmem:[#allocation5 + $0x50] sm:$0xff] }
 0x49f   : > { %4270 = vst.msk [vmem:[#allocation5 + $0x70] sm:$0xff] %vm1755_vm1, %v4254_v23  ;;  %4333 = vrot.lane.b32.xlu1 %v4331_v51, %s6066_s18  ;;  %v4349_v18 = vld [vmem:[#allocation5 + $0x68] sm:$0xff]  ;;  %5580 = vmatpush3.bf16.msra.mxu1 %v5579_v21 }
 0x4a0   : > { %4351 = vrot.lane.b32.xlu0 %v4349_v18, %s6067_s29  ;;  %5582 = vmatprep.subr.bf16.mxu1 %v5581_v58 }
 0x4a1   : > { %v4343_v5 = vld [vmem:[#allocation5 + $0x60] sm:$0xff] }
 0x4a3   : > { %4311 = vrot.lane.b32.xlu1 %v4309_v55, %s6069_s14  ;;  %5584 = vmatpush3.bf16.msra.mxu1 %v5583_v2 }
 0x4a4   : > { %4345 = vrot.lane.b32.xlu0 %v4343_v5, %s6068_s20  ;;  %5586 = vmatprep.subr.bf16.mxu1 %v5585_v56  ;;  %s4540_s20 = sshll.u32 %s7391_s10, 3 }
 0x4a5   : > { %v4361_v27 = vld [vmem:[#allocation5 + $0x78] sm:$0xff]  ;;  %s332_s21 = scalar_lea.vmem %s7387_s9, %s4540_s20 }
 0x4a6   : > { %v4355_v49 = vld [vmem:[#allocation5 + $0x70] sm:$0xff] }
 0x4a7   : > { %4318 = vrot.lane.b32.xlu1 %v4316_v53, %s6070_s15  ;;  %5588 = vmatpush3.bf16.msra.mxu1 %v5587_v8 }
 0x4a8   : > { %4357 = vrot.lane.b32.xlu0 %v4355_v49, %s6069_s14 }
 0x4ac   : > { %4363 = vrot.lane.b32.xlu0 %v4361_v27, %s6070_s15 }
 0x4fa   : > { %v4277_v3 = vpop.permute.xlu0 %4276 }
 0x4fb   : > { %4280 = vst.msk [vmem:[#allocation6] sm:$0xff] %vm4279_vm2, %v4277_v3 }
 0x4fe   : > { %v4291_v33 = vpop.permute.xlu1 %4290 }
 0x502   : > { %v4284_v15 = vpop.permute.xlu1 %4283 }
 0x503   : > { %4287 = vst.msk [vmem:[#allocation6] sm:$0xff] %vm4286_vm3, %v4284_v15 }
 0x504   : > { %4294 = vst.msk [vmem:[#allocation6] sm:$0xff] %vm4293_vm4, %v4291_v33 }
 0x506   : > { %v4305_v57 = vpop.permute.xlu1 %4304 }
 0x50a   : > { %v4298_v25 = vpop.permute.xlu1 %4297  ;;  %v4328_v10 = vpop.permute.xlu0 %4327 }
 0x50b   : > { %4301 = vst.msk [vmem:[#allocation6] sm:$0xff] %vm4300_vm5, %v4298_v25 }
 0x50c   : > { %4330 = vst.msk [vmem:[#allocation6 + $0x8] sm:$0xff] %vm4279_vm2, %v4328_v10 }
 0x50d   : > { %4308 = vst.msk [vmem:[#allocation6] sm:$0xff] %vm4307_vm6, %v4305_v57 }
 0x50e   : > { %v4340_v35 = vpop.permute.xlu0 %4339 }
 0x511   : > { %v4334_v17 = vpop.permute.xlu1 %4333 }
 0x512   : > { %4336 = vst.msk [vmem:[#allocation6 + $0x8] sm:$0xff] %vm4286_vm3, %v4334_v17  ;;  %v4352_v6 = vpop.permute.xlu0 %4351 }
 0x513   : > { %4342 = vst.msk [vmem:[#allocation6 + $0x8] sm:$0xff] %vm4293_vm4, %v4340_v35 }
 0x515   : > { %v4312_v38 = vpop.permute.xlu1 %4311 }
 0x516   : > { %4315 = vst.msk [vmem:[#allocation6] sm:$0xff] %vm4314_vm7, %v4312_v38  ;;  %v4346_v28 = vpop.permute.xlu0 %4345 }
 0x517   : > { %4348 = vst.msk [vmem:[#allocation6 + $0x8] sm:$0xff] %vm4300_vm5, %v4346_v28 }
 0x518   : > { %4354 = vst.msk [vmem:[#allocation6 + $0x8] sm:$0xff] %vm4307_vm6, %v4352_v6 }
 0x519   : > { %v4319_v42 = vpop.permute.xlu1 %4318 }
 0x51a   : > { %4322 = vst.msk [vmem:[#allocation6] sm:$0xff] %vm4321_vm8, %v4319_v42  ;;  %v4358_v9 = vpop.permute.xlu0 %4357 }
 0x51b   : > { %4360 = vst.msk [vmem:[#allocation6 + $0x8] sm:$0xff] %vm4314_vm7, %v4358_v9 }
 0x51e   : > { %v4364_v29 = vpop.permute.xlu0 %4363 }
 0x51f   : > { %4366 = vst.msk [vmem:[#allocation6 + $0x8] sm:$0xff] %vm4321_vm8, %v4364_v29 }
 0x521   : > { %v4367_v44 = vld [vmem:[#allocation6] sm:$0xff] }
 0x526   : > { %v4368_v52 = vld [vmem:[#allocation6 + $0x8] sm:$0xff] }
 0x527   : > { %4472 = vmatprep.mubr.f32.mxu1 %v4368_v52 }
 0x528   : > { %4473 = vmatmul.mubr.f32.vlgmr.msra.gmra.mrb[32].mxu1 %v4367_v44 }
 0x5fb   : > { %v5104_v22 = vpop.f32.mrb[32].mxu1 }
 0x5fc   : > { %v5105_v43 = vpop.f32.mrb[33].mxu1 }
 0x5fd   : > { %v5106_v0 = vadd.f32 %v5105_v43, %v5104_v22 }
 0x5ff   : > { %v4475_v31 = vadd.f32 %v5106_v0, %v4804_v62 }
 0x601   : > { %4479 = vst.msk [vmem:[%s332_s21] sm:$0xff] %vm4478_vm9, %v4475_v31 }
 0x602 PF: > { %s19_s30 = sadd.s32 1, %s6061_s30  }
 0x603   : > { %p16_p5 = scmp.ge.s32.totalorder %s19_s30, 4  }
 0x605   :  { %18 = sbr.rel (!%p16_p5) target bundleno = 1 (0x1), region = 98 }

</bundles_post_ra>
